<compile_context>
chip_gen: v7x
topology: tpu7x:2x2x1
jax: 0.10.0
libtpu: 0.0.40
codegen_flags: <defaults>
</compile_context>

<pallas_src>
import functools

import jax
import jax.numpy as jnp
from jax.experimental import pallas as pl
from jax.experimental.pallas import tpu as pltpu

LANE = 128     # channel dims are zero-padded to a multiple of the lane width
SLACK = 8      # spare rows so the flattened 3x3-window slices never run OOB


def _round_up(x, m):
    return (x + m - 1) // m * m


def _conv_block_kernel(
    x_hbm, w1_ref, b1_ref, w2_ref, b2_ref, o_ref, xbuf, h1buf, sem,
    *, TH, W, Wx, Cp, Kp,
):
    n = pl.program_id(0)          # batch element
    s = pl.program_id(1)          # row stripe within the batch element
    S = pl.num_programs(1)

    LD = (TH + 4) * Wx            # flat x rows per stripe (2-row halo each side)
    LDS = LD + SLACK              # DMA length (x_flat carries SLACK extra rows)
    L1 = (TH + 2) * Wx            # intermediate (h1) flat rows (1-row halo)
    L2 = TH * Wx                  # output flat rows

    def start_fetch(stripe, slot):
        pltpu.make_async_copy(
            x_hbm.at[n, pl.ds(stripe * L2, LDS), :],
            xbuf.at[slot],
            sem.at[slot],
        ).start()

    # First stripe of this batch element: issue its own DMA; also clear the
    # tiny h1 scratch slack region (only the slice overrun ever reads it).
    @pl.when(s == 0)
    def _():
        h1buf[L1:L1 + SLACK, :] = jnp.zeros((SLACK, Kp), h1buf.dtype)
        start_fetch(0, 0)

    slot = s % 2
    pltpu.make_async_copy(        # wait for this stripe's input (src = shape only)
        x_hbm.at[n, pl.ds(0, LDS), :], xbuf.at[slot], sem.at[slot]
    ).wait()

    @pl.when(s + 1 < S)           # prefetch the next stripe into the other slot
    def _():
        start_fetch(s + 1, 1 - slot)

    # ---- conv1 + bias + ReLU : 3 matmuls, K = 3*Cp ------------------------
    acc1 = jnp.zeros((L1, Kp), jnp.float32)
    for kh in range(3):
        base = kh * Wx
        lhs = jnp.concatenate(
            [xbuf[slot, base + kw: base + kw + L1, :] for kw in range(3)],
            axis=-1)
        acc1 = acc1 + jnp.dot(lhs, w1_ref[kh],
                              preferred_element_type=jnp.float32)
    h1 = jnp.maximum(acc1 + b1_ref[...], 0.0).reshape(TH + 2, Wx, Kp)

    # Zero conv2's two zero-padding columns and, at the image top/bottom,
    # the halo rows (interior stripes keep the real neighbouring h1 rows).
    rows = jax.lax.broadcasted_iota(jnp.int32, (TH + 2, Wx, 1), 0)
    cols = jax.lax.broadcasted_iota(jnp.int32, (TH + 2, Wx, 1), 1)
    keep = jnp.logical_and(cols != 0, cols != W + 1)
    keep = jnp.logical_and(keep, jnp.logical_or(s > 0, rows >= 1))
    keep = jnp.logical_and(keep, jnp.logical_or(s < S - 1, rows <= TH))
    h1 = jnp.where(keep, h1, 0.0)

    h1buf[0:L1, :] = h1.reshape(L1, Kp).astype(h1buf.dtype)

    # ---- conv2 + bias + ReLU : 3 matmuls, K = 3*Kp ------------------------
    acc2 = jnp.zeros((L2, Kp), jnp.float32)
    for kh in range(3):
        base = kh * Wx
        lhs = jnp.concatenate(
            [h1buf[base + kw: base + kw + L2, :] for kw in range(3)], axis=-1)
        acc2 = acc2 + jnp.dot(lhs, w2_ref[kh],
                              preferred_element_type=jnp.float32)
    out = jnp.maximum(acc2 + b2_ref[...], 0.0)
    # Lane-dense flat store: (TH*Wx, Kp) with TH*Wx % 8 == 0 and Kp % 128 == 0.
    o_ref[...] = out.reshape(1, L2, Kp).astype(o_ref.dtype)


def unet_conv_block(x_nchw, w1_oihw, b1, w2_oihw, b2,
                    *, compute_dtype=jnp.float32, stripe_rows=8):
    """PyTorch-equivalent forward. x: [N, Cin, H, W] -> [N, Cout, H, W]."""
    N, Cin, H, W = x_nchw.shape
    Cout = w1_oihw.shape[0]
    Cp = _round_up(Cin, LANE)
    Kp = _round_up(Cout, LANE)

    # Largest divisor of H not exceeding stripe_rows (keeps every stripe full).
    TH = min(stripe_rows, H)
    while H % TH != 0:
        TH -= 1
    S = H // TH
    Wx = W + 3                    # 2 zero cols left, 1 right (flat-window trick)
    Hx = H + 4                    # 2 zero rows top and bottom (2-row halo)

    # --- layout prep: NCHW -> NHWC, spatial halo pad, channel pad to lanes ---
    x = jnp.transpose(x_nchw, (0, 2, 3, 1)).astype(compute_dtype)
    x = jnp.pad(x, ((0, 0), (2, 2), (2, 1), (0, Cp - Cin)))
    x_flat = x.reshape(N, Hx * Wx, Cp)
    x_flat = jnp.pad(x_flat, ((0, 0), (0, SLACK), (0, 0)))   # DMA slack rows

    def prep_w(w, cin, cin_p):
        # OIHW -> [kh, kw*cin_p + ci, co_p] with zero-padded channels.
        wt = jnp.transpose(w, (2, 3, 1, 0)).astype(compute_dtype)   # [3,3,ci,co]
        wt = jnp.pad(wt, ((0, 0), (0, 0), (0, cin_p - cin), (0, Kp - Cout)))
        return wt.reshape(3, 3 * cin_p, Kp)

    w1_k = prep_w(w1_oihw, Cin, Cp)
    w2_k = prep_w(w2_oihw, Cout, Kp)
    b1_p = jnp.pad(b1.astype(jnp.float32), (0, Kp - Cout)).reshape(1, Kp)
    b2_p = jnp.pad(b2.astype(jnp.float32), (0, Kp - Cout)).reshape(1, Kp)

    LD = (TH + 4) * Wx
    L1 = (TH + 2) * Wx
    L2 = TH * Wx
    itemsize = jnp.dtype(compute_dtype).itemsize
    vmem_bytes = (
        2 * (LD + SLACK) * Cp * itemsize             # x stripe, double buffered
        + (L1 + SLACK) * Kp * itemsize               # h1 scratch
        + (9 * Cp * Kp + 9 * Kp * Kp) * itemsize     # weight slabs
        + 2 * L2 * Kp * 4                            # output block (dbl buffered)
    )
    vmem_limit = int(min(32 * 2**20, max(16 * 2**20, 6 * vmem_bytes)))

    cost = pl.CostEstimate(
        flops=2 * N * H * Wx * 9 * (Cp * Kp + Kp * Kp),
        transcendentals=0,
        bytes_accessed=int(x_flat.size * itemsize + N * H * Wx * Kp * 4
                           + (w1_k.size + w2_k.size) * itemsize),
    )

    kernel = functools.partial(
        _conv_block_kernel, TH=TH, W=W, Wx=Wx, Cp=Cp, Kp=Kp)

    out_padded = pl.pallas_call(
        kernel,
        out_shape=jax.ShapeDtypeStruct((N, H * Wx, Kp), jnp.float32),
        grid_spec=pltpu.PrefetchScalarGridSpec(
            num_scalar_prefetch=0,
            grid=(N, S),
            in_specs=[
                pl.BlockSpec(memory_space=pl.ANY),                       # x (HBM)
                pl.BlockSpec((3, 3 * Cp, Kp), lambda n, s: (0, 0, 0)),   # w1
                pl.BlockSpec((1, Kp), lambda n, s: (0, 0)),              # b1
                pl.BlockSpec((3, 3 * Kp, Kp), lambda n, s: (0, 0, 0)),   # w2
                pl.BlockSpec((1, Kp), lambda n, s: (0, 0)),              # b2
            ],
            out_specs=pl.BlockSpec((1, L2, Kp), lambda n, s: (n, s, 0)),
            scratch_shapes=[
                pltpu.VMEM((2, LD + SLACK, Cp), compute_dtype),  # x stripe x2
                pltpu.VMEM((L1 + SLACK, Kp), compute_dtype),     # h1 scratch
                pltpu.SemaphoreType.DMA((2,)),
            ],
        ),
        compiler_params=pltpu.CompilerParams(
            dimension_semantics=("parallel", "arbitrary"),
            vmem_limit_bytes=vmem_limit,
        ),
        cost_estimate=cost,
    )(x_flat, w1_k, b1_p, w2_k, b2_p)

    # Drop pad columns / channels, back to NCHW (cheap XLA reshape/slice).
    out = out_padded.reshape(N, H, Wx, Kp)[:, :, :W, :Cout]
    return jnp.transpose(out, (0, 3, 1, 2))


def reference(x_nchw, w1_oihw, b1, w2_oihw, b2):
    """Pure-JAX reference matching torch.nn.functional semantics."""
    dn = ("NCHW", "OIHW", "NCHW")
    y = jax.lax.conv_general_dilated(x_nchw, w1_oihw, (1, 1), "SAME",
                                     dimension_numbers=dn)
    y = jax.nn.relu(y + b1[None, :, None, None])
    y = jax.lax.conv_general_dilated(y, w2_oihw, (1, 1), "SAME",
                                     dimension_numbers=dn)
    return jax.nn.relu(y + b2[None, :, None, None])


if __name__ == "__main__":
    # Small shapes: batch=2, input_channels=4, output_channels=8, spatial=16.
    N, Cin, Cout, H, W = 2, 4, 8, 16, 16

    key = jax.random.PRNGKey(0)
    kx, kw1, kb1, kw2, kb2 = jax.random.split(key, 5)

    x = jax.random.normal(kx, (N, Cin, H, W), dtype=jnp.float32)
    w1 = jax.random.normal(kw1, (Cout, Cin, 3, 3), dtype=jnp.float32) * 0.1
    b1 = jax.random.normal(kb1, (Cout,), dtype=jnp.float32) * 0.1
    w2 = jax.random.normal(kw2, (Cout, Cout, 3, 3), dtype=jnp.float32) * 0.1
    b2 = jax.random.normal(kb2, (Cout,), dtype=jnp.float32) * 0.1

    ref = jax.block_until_ready(reference(x, w1, b1, w2, b2))

    # f32 compute path (tight tolerance).
    out = jax.block_until_ready(unet_conv_block(x, w1, b1, w2, b2))
    assert out.shape == (N, Cout, H, W), out.shape
    err = float(jnp.max(jnp.abs(out - ref)))
    assert jnp.allclose(out, ref, atol=1e-3, rtol=1e-3), err

    # bf16 storage/compute path (f32 accumulation) -- looser tolerance.
    out_bf16 = jax.block_until_ready(
        unet_conv_block(x, w1, b1, w2, b2, compute_dtype=jnp.bfloat16))
    err_bf16 = float(jnp.max(jnp.abs(out_bf16 - ref)))
    assert jnp.allclose(out_bf16, ref, atol=8e-2, rtol=8e-2), err_bf16

    print("KERNEL_OK")
</pallas_src>

<mosaic_0001>
module attributes {stable_mosaic.version = 11 : i64} {
  func.func @_conv_block_kernel(%arg0: i32, %arg1: i32, %arg2: memref<2x388x128xf32, #tpu.memory_space<any>>, %arg3: memref<3x384x128xf32, #tpu.memory_space<vmem>>, %arg4: memref<1x128xf32, #tpu.memory_space<vmem>>, %arg5: memref<3x384x128xf32, #tpu.memory_space<vmem>>, %arg6: memref<1x128xf32, #tpu.memory_space<vmem>>, %arg7: memref<1x152x128xf32, #tpu.memory_space<vmem>>, %arg8: memref<2x236x128xf32, #tpu.memory_space<vmem>>, %arg9: memref<198x128xf32, #tpu.memory_space<vmem>>, %arg10: memref<2x!tpu.dma_semaphore, #tpu.memory_space<semaphore_mem>>) attributes {dimension_semantics = [#tpu.dimension_semantics<parallel>, #tpu.dimension_semantics<arbitrary>], iteration_bounds = array<i64: 2, 2>, scalar_prefetch = 0 : i64, scratch_operands = 3 : i64, tpu.core_type = #tpu.core_type<tc>, window_params = [{}, {pipeline_mode = #tpu.pipeline_mode<synchronous>, transform_indices = @transform_1, window_bounds = array<i64: 3, 384, 128>}, {pipeline_mode = #tpu.pipeline_mode<synchronous>, transform_indices = @transform_2, window_bounds = array<i64: 1, 128>}, {pipeline_mode = #tpu.pipeline_mode<synchronous>, transform_indices = @transform_3, window_bounds = array<i64: 3, 384, 128>}, {pipeline_mode = #tpu.pipeline_mode<synchronous>, transform_indices = @transform_4, window_bounds = array<i64: 1, 128>}, {transform_indices = @transform_5, window_bounds = array<i64: 1, 152, 128>}]} {
    %c0_i32 = arith.constant 0 : i32
    %0 = arith.cmpi eq, %arg1, %c0_i32 : i32
    %1 = arith.extui %0 : i1 to i32
    %c0_i32_0 = arith.constant 0 : i32
    %2 = arith.cmpi ne, %1, %c0_i32_0 : i32
    scf.if %2 {
      %cst_80 = arith.constant 0.000000e+00 : f32
      %129 = vector.broadcast %cst_80 : f32 to vector<8x128xf32>
      %c190 = arith.constant 190 : index
      %c0_81 = arith.constant 0 : index
      %130 = vector.load %arg9[%c190, %c0_81] : memref<198x128xf32, #tpu.memory_space<vmem>>, vector<8x128xf32>
      tpu.vector_store %arg9[%c190, %c0_81], %129 {strides = array<i32>} : memref<198x128xf32, #tpu.memory_space<vmem>>, vector<8x128xf32>,
      %c0_i32_82 = arith.constant 0 : i32
      %c0_i32_83 = arith.constant 0 : i32
      %c0_i32_84 = arith.constant 0 : i32
      %c0_i32_85 = arith.constant 0 : i32
      %131 = tpu.memref_slice %arg2[%arg0, %c0_i32_84, %c0_i32_85] : memref<2x388x128xf32, #tpu.memory_space<any>> -> memref<1x236x128xf32, #tpu.memory_space<any>>
      %132 = tpu.memref_squeeze %131 : memref<1x236x128xf32, #tpu.memory_space<any>> -> memref<236x128xf32, #tpu.memory_space<any>>
      %c0_i32_86 = arith.constant 0 : i32
      %c0_i32_87 = arith.constant 0 : i32
      %133 = tpu.memref_slice %arg8[%c0_i32_82, %c0_i32_86, %c0_i32_87] : memref<2x236x128xf32, #tpu.memory_space<vmem>> -> memref<1x236x128xf32, #tpu.memory_space<vmem>>
      %134 = tpu.memref_squeeze %133 : memref<1x236x128xf32, #tpu.memory_space<vmem>> -> memref<236x128xf32, #tpu.memory_space<vmem>>
      %135 = tpu.memref_slice %arg10[%c0_i32_83] : memref<2x!tpu.dma_semaphore, #tpu.memory_space<semaphore_mem>> -> memref<1x!tpu.dma_semaphore, #tpu.memory_space<semaphore_mem>>
      %136 = tpu.memref_squeeze %135 : memref<1x!tpu.dma_semaphore, #tpu.memory_space<semaphore_mem>> -> memref<!tpu.dma_semaphore, #tpu.memory_space<semaphore_mem>>
      tpu.enqueue_dma source(%132 : memref<236x128xf32, #tpu.memory_space<any>>) target(%134 : memref<236x128xf32, #tpu.memory_space<vmem>>) target_semaphore(%136 : memref<!tpu.dma_semaphore, #tpu.memory_space<semaphore_mem>>)
    } else {
    }
    %c2_i32 = arith.constant 2 : i32
    %c0_i32_1 = arith.constant 0 : i32
    %3 = arith.cmpi eq, %c2_i32, %c0_i32_1 : i32
    %c1_i32 = arith.constant 1 : i32
    %4 = arith.select %3, %c1_i32, %c2_i32 : i32
    %5 = arith.remsi %arg1, %4 : i32
    %c0_i32_2 = arith.constant 0 : i32
    %6 = arith.cmpi ne, %5, %c0_i32_2 : i32
    %c0_i32_3 = arith.constant 0 : i32
    %7 = arith.cmpi slt, %5, %c0_i32_3 : i32
    %c0_i32_4 = arith.constant 0 : i32
    %8 = arith.cmpi slt, %4, %c0_i32_4 : i32
    %9 = arith.xori %7, %8 : i1
    %10 = arith.andi %9, %6 : i1
    %11 = arith.addi %5, %4 : i32
    %12 = arith.select %10, %11, %5 : i32
    %c0_i32_5 = arith.constant 0 : i32
    %c0_i32_6 = arith.constant 0 : i32
    %13 = tpu.memref_slice %arg2[%arg0, %c0_i32_5, %c0_i32_6] : memref<2x388x128xf32, #tpu.memory_space<any>> -> memref<1x236x128xf32, #tpu.memory_space<any>>
    %14 = tpu.memref_squeeze %13 : memref<1x236x128xf32, #tpu.memory_space<any>> -> memref<236x128xf32, #tpu.memory_space<any>>
    %c0_i32_7 = arith.constant 0 : i32
    %c0_i32_8 = arith.constant 0 : i32
    %15 = tpu.memref_slice %arg8[%12, %c0_i32_7, %c0_i32_8] : memref<2x236x128xf32, #tpu.memory_space<vmem>> -> memref<1x236x128xf32, #tpu.memory_space<vmem>>
    %16 = tpu.memref_squeeze %15 : memref<1x236x128xf32, #tpu.memory_space<vmem>> -> memref<236x128xf32, #tpu.memory_space<vmem>>
    %17 = tpu.memref_slice %arg10[%12] : memref<2x!tpu.dma_semaphore, #tpu.memory_space<semaphore_mem>> -> memref<1x!tpu.dma_semaphore, #tpu.memory_space<semaphore_mem>>
    %18 = tpu.memref_squeeze %17 : memref<1x!tpu.dma_semaphore, #tpu.memory_space<semaphore_mem>> -> memref<!tpu.dma_semaphore, #tpu.memory_space<semaphore_mem>>
    tpu.wait_dma2 semaphore(%18 : memref<!tpu.dma_semaphore, #tpu.memory_space<semaphore_mem>>) src(%14 : memref<236x128xf32, #tpu.memory_space<any>>) dst(%16 : memref<236x128xf32, #tpu.memory_space<vmem>>)
    %c1_i32_9 = arith.constant 1 : i32
    %19 = arith.addi %arg1, %c1_i32_9 : i32
    %c2_i32_10 = arith.constant 2 : i32
    %20 = arith.cmpi slt, %19, %c2_i32_10 : i32
    %21 = arith.extui %20 : i1 to i32
    %c0_i32_11 = arith.constant 0 : i32
    %22 = arith.cmpi ne, %21, %c0_i32_11 : i32
    scf.if %22 {
      %c1_i32_80 = arith.constant 1 : i32
      %129 = arith.addi %arg1, %c1_i32_80 : i32
      %c1_i32_81 = arith.constant 1 : i32
      %130 = arith.subi %c1_i32_81, %12 : i32
      %c152_i32 = arith.constant 152 : i32
      %131 = arith.muli %129, %c152_i32 : i32
      %c0_i32_82 = arith.constant 0 : i32
      %132 = tpu.memref_slice %arg2[%arg0, %131, %c0_i32_82] : memref<2x388x128xf32, #tpu.memory_space<any>> -> memref<1x236x128xf32, #tpu.memory_space<any>>
      %133 = tpu.memref_squeeze %132 : memref<1x236x128xf32, #tpu.memory_space<any>> -> memref<236x128xf32, #tpu.memory_space<any>>
      %c0_i32_83 = arith.constant 0 : i32
      %c0_i32_84 = arith.constant 0 : i32
      %134 = tpu.memref_slice %arg8[%130, %c0_i32_83, %c0_i32_84] : memref<2x236x128xf32, #tpu.memory_space<vmem>> -> memref<1x236x128xf32, #tpu.memory_space<vmem>>
      %135 = tpu.memref_squeeze %134 : memref<1x236x128xf32, #tpu.memory_space<vmem>> -> memref<236x128xf32, #tpu.memory_space<vmem>>
      %136 = tpu.memref_slice %arg10[%130] : memref<2x!tpu.dma_semaphore, #tpu.memory_space<semaphore_mem>> -> memref<1x!tpu.dma_semaphore, #tpu.memory_space<semaphore_mem>>
      %137 = tpu.memref_squeeze %136 : memref<1x!tpu.dma_semaphore, #tpu.memory_space<semaphore_mem>> -> memref<!tpu.dma_semaphore, #tpu.memory_space<semaphore_mem>>
      tpu.enqueue_dma source(%133 : memref<236x128xf32, #tpu.memory_space<any>>) target(%135 : memref<236x128xf32, #tpu.memory_space<vmem>>) target_semaphore(%137 : memref<!tpu.dma_semaphore, #tpu.memory_space<semaphore_mem>>)
    } else {
    }
    %cst = arith.constant 0.000000e+00 : f32
    %23 = vector.broadcast %cst : f32 to vector<190x128xf32>
    %24 = arith.index_cast %12 : i32 to index
    %c0 = arith.constant 0 : index
    %c0_12 = arith.constant 0 : index
    %25 = vector.load %arg8[%24, %c0, %c0_12] : memref<2x236x128xf32, #tpu.memory_space<vmem>>, vector<1x190x128xf32>
    %26 = vector.shape_cast %25 : vector<1x190x128xf32> to vector<190x128xf32>
    %27 = arith.index_cast %12 : i32 to index
    %c1 = arith.constant 1 : index
    %c0_13 = arith.constant 0 : index
    %28 = vector.load %arg8[%27, %c1, %c0_13] : memref<2x236x128xf32, #tpu.memory_space<vmem>>, vector<1x190x128xf32>
    %29 = vector.shape_cast %28 : vector<1x190x128xf32> to vector<190x128xf32>
    %30 = arith.index_cast %12 : i32 to index
    %c2 = arith.constant 2 : index
    %c0_14 = arith.constant 0 : index
    %31 = vector.load %arg8[%30, %c2, %c0_14] : memref<2x236x128xf32, #tpu.memory_space<vmem>>, vector<1x190x128xf32>
    %32 = vector.shape_cast %31 : vector<1x190x128xf32> to vector<190x128xf32>
    %33 = tpu.concatenate %26, %29, %32 in 1 : vector<190x128xf32>, vector<190x128xf32>, vector<190x128xf32> -> vector<190x384xf32>
    %c0_15 = arith.constant 0 : index
    %c0_16 = arith.constant 0 : index
    %c0_17 = arith.constant 0 : index
    %34 = vector.load %arg3[%c0_15, %c0_16, %c0_17] : memref<3x384x128xf32, #tpu.memory_space<vmem>>, vector<1x384x128xf32>
    %35 = vector.shape_cast %34 : vector<1x384x128xf32> to vector<384x128xf32>
    %cst_18 = arith.constant dense<0.000000e+00> : vector<190x128xf32>
    %36 = tpu.matmul %33, %35, %cst_18 {dimension_numbers = #tpu.dot_dimension_numbers<[1], [0], [0], [1], [0, 0, 1, 1], [], []>} : vector<190x384xf32>, vector<384x128xf32>, vector<190x128xf32> -> vector<190x128xf32>
    %37 = arith.addf %23, %36 : vector<190x128xf32>
    %38 = arith.index_cast %12 : i32 to index
    %c19 = arith.constant 19 : index
    %c0_19 = arith.constant 0 : index
    %39 = vector.load %arg8[%38, %c19, %c0_19] : memref<2x236x128xf32, #tpu.memory_space<vmem>>, vector<1x190x128xf32>
    %40 = vector.shape_cast %39 : vector<1x190x128xf32> to vector<190x128xf32>
    %41 = arith.index_cast %12 : i32 to index
    %c20 = arith.constant 20 : index
    %c0_20 = arith.constant 0 : index
    %42 = vector.load %arg8[%41, %c20, %c0_20] : memref<2x236x128xf32, #tpu.memory_space<vmem>>, vector<1x190x128xf32>
    %43 = vector.shape_cast %42 : vector<1x190x128xf32> to vector<190x128xf32>
    %44 = arith.index_cast %12 : i32 to index
    %c21 = arith.constant 21 : index
    %c0_21 = arith.constant 0 : index
    %45 = vector.load %arg8[%44, %c21, %c0_21] : memref<2x236x128xf32, #tpu.memory_space<vmem>>, vector<1x190x128xf32>
    %46 = vector.shape_cast %45 : vector<1x190x128xf32> to vector<190x128xf32>
    %47 = tpu.concatenate %40, %43, %46 in 1 : vector<190x128xf32>, vector<190x128xf32>, vector<190x128xf32> -> vector<190x384xf32>
    %c1_22 = arith.constant 1 : index
    %c0_23 = arith.constant 0 : index
    %c0_24 = arith.constant 0 : index
    %48 = vector.load %arg3[%c1_22, %c0_23, %c0_24] : memref<3x384x128xf32, #tpu.memory_space<vmem>>, vector<1x384x128xf32>
    %49 = vector.shape_cast %48 : vector<1x384x128xf32> to vector<384x128xf32>
    %cst_25 = arith.constant dense<0.000000e+00> : vector<190x128xf32>
    %50 = tpu.matmul %47, %49, %cst_25 {dimension_numbers = #tpu.dot_dimension_numbers<[1], [0], [0], [1], [0, 0, 1, 1], [], []>} : vector<190x384xf32>, vector<384x128xf32>, vector<190x128xf32> -> vector<190x128xf32>
    %51 = arith.addf %37, %50 : vector<190x128xf32>
    %52 = arith.index_cast %12 : i32 to index
    %c38 = arith.constant 38 : index
    %c0_26 = arith.constant 0 : index
    %53 = vector.load %arg8[%52, %c38, %c0_26] : memref<2x236x128xf32, #tpu.memory_space<vmem>>, vector<1x190x128xf32>
    %54 = vector.shape_cast %53 : vector<1x190x128xf32> to vector<190x128xf32>
    %55 = arith.index_cast %12 : i32 to index
    %c39 = arith.constant 39 : index
    %c0_27 = arith.constant 0 : index
    %56 = vector.load %arg8[%55, %c39, %c0_27] : memref<2x236x128xf32, #tpu.memory_space<vmem>>, vector<1x190x128xf32>
    %57 = vector.shape_cast %56 : vector<1x190x128xf32> to vector<190x128xf32>
    %58 = arith.index_cast %12 : i32 to index
    %c40 = arith.constant 40 : index
    %c0_28 = arith.constant 0 : index
    %59 = vector.load %arg8[%58, %c40, %c0_28] : memref<2x236x128xf32, #tpu.memory_space<vmem>>, vector<1x190x128xf32>
    %60 = vector.shape_cast %59 : vector<1x190x128xf32> to vector<190x128xf32>
    %61 = tpu.concatenate %54, %57, %60 in 1 : vector<190x128xf32>, vector<190x128xf32>, vector<190x128xf32> -> vector<190x384xf32>
    %c2_29 = arith.constant 2 : index
    %c0_30 = arith.constant 0 : index
    %c0_31 = arith.constant 0 : index
    %62 = vector.load %arg3[%c2_29, %c0_30, %c0_31] : memref<3x384x128xf32, #tpu.memory_space<vmem>>, vector<1x384x128xf32>
    %63 = vector.shape_cast %62 : vector<1x384x128xf32> to vector<384x128xf32>
    %cst_32 = arith.constant dense<0.000000e+00> : vector<190x128xf32>
    %64 = tpu.matmul %61, %63, %cst_32 {dimension_numbers = #tpu.dot_dimension_numbers<[1], [0], [0], [1], [0, 0, 1, 1], [], []>} : vector<190x384xf32>, vector<384x128xf32>, vector<190x128xf32> -> vector<190x128xf32>
    %65 = arith.addf %51, %64 : vector<190x128xf32>
    %c0_33 = arith.constant 0 : index
    %c0_34 = arith.constant 0 : index
    %66 = vector.load %arg4[%c0_33, %c0_34] : memref<1x128xf32, #tpu.memory_space<vmem>>, vector<1x128xf32>
    %67 = vector.broadcast %66 : vector<1x128xf32> to vector<190x128xf32>
    %68 = arith.addf %65, %67 : vector<190x128xf32>
    %cst_35 = arith.constant 0.000000e+00 : f32
    %69 = vector.broadcast %cst_35 : f32 to vector<190x128xf32>
    %70 = arith.maximumf %68, %69 : vector<190x128xf32>
    %71 = vector.shape_cast %70 : vector<190x128xf32> to vector<10x19x128xf32>
    %72 = tpu.iota {dimensions = array<i32: 0>} : vector<10x19x1xi32>
    %73 = tpu.iota {dimensions = array<i32: 1>} : vector<10x19x1xi32>
    %c0_i32_36 = arith.constant 0 : i32
    %74 = vector.broadcast %c0_i32_36 : i32 to vector<10x19x1xi32>
    %75 = arith.cmpi ne, %73, %74 : vector<10x19x1xi32>
    %c17_i32 = arith.constant 17 : i32
    %76 = vector.broadcast %c17_i32 : i32 to vector<10x19x1xi32>
    %77 = arith.cmpi ne, %73, %76 : vector<10x19x1xi32>
    %78 = arith.andi %75, %77 : vector<10x19x1xi1>
    %c0_i32_37 = arith.constant 0 : i32
    %79 = arith.cmpi sgt, %arg1, %c0_i32_37 : i32
    %c1_i32_38 = arith.constant 1 : i32
    %80 = vector.broadcast %c1_i32_38 : i32 to vector<10x19x1xi32>
    %81 = arith.cmpi sge, %72, %80 : vector<10x19x1xi32>
    %82 = vector.broadcast %79 : i1 to vector<10x19x1xi1>
    %83 = arith.ori %82, %81 : vector<10x19x1xi1>
    %84 = arith.andi %78, %83 : vector<10x19x1xi1>
    %c1_i32_39 = arith.constant 1 : i32
    %85 = arith.cmpi slt, %arg1, %c1_i32_39 : i32
    %c8_i32 = arith.constant 8 : i32
    %86 = vector.broadcast %c8_i32 : i32 to vector<10x19x1xi32>
    %87 = arith.cmpi sle, %72, %86 : vector<10x19x1xi32>
    %88 = vector.broadcast %85 : i1 to vector<10x19x1xi1>
    %89 = arith.ori %88, %87 : vector<10x19x1xi1>
    %90 = arith.andi %84, %89 : vector<10x19x1xi1>
    %cst_40 = arith.constant 0.000000e+00 : f32
    %91 = vector.shape_cast %90 : vector<10x19x1xi1> to vector<10x19x1xi1>
    %92 = vector.broadcast %91 : vector<10x19x1xi1> to vector<10x19x128xi1>
    %93 = vector.broadcast %cst_40 : f32 to vector<10x19x128xf32>
    %94 = arith.select %92, %71, %93 : vector<10x19x128xi1>, vector<10x19x128xf32>
    %95 = vector.shape_cast %94 : vector<10x19x128xf32> to vector<190x128xf32>
    %c0_41 = arith.constant 0 : index
    %c0_42 = arith.constant 0 : index
    %96 = vector.load %arg9[%c0_41, %c0_42] : memref<198x128xf32, #tpu.memory_space<vmem>>, vector<190x128xf32>
    tpu.vector_store %arg9[%c0_41, %c0_42], %95 {strides = array<i32>} : memref<198x128xf32, #tpu.memory_space<vmem>>, vector<190x128xf32>,
    %cst_43 = arith.constant 0.000000e+00 : f32
    %97 = vector.broadcast %cst_43 : f32 to vector<152x128xf32>
    %c0_44 = arith.constant 0 : index
    %c0_45 = arith.constant 0 : index
    %98 = vector.load %arg9[%c0_44, %c0_45] : memref<198x128xf32, #tpu.memory_space<vmem>>, vector<152x128xf32>
    %c1_46 = arith.constant 1 : index
    %c0_47 = arith.constant 0 : index
    %99 = vector.load %arg9[%c1_46, %c0_47] : memref<198x128xf32, #tpu.memory_space<vmem>>, vector<152x128xf32>
    %c2_48 = arith.constant 2 : index
    %c0_49 = arith.constant 0 : index
    %100 = vector.load %arg9[%c2_48, %c0_49] : memref<198x128xf32, #tpu.memory_space<vmem>>, vector<152x128xf32>
    %101 = tpu.concatenate %98, %99, %100 in 1 : vector<152x128xf32>, vector<152x128xf32>, vector<152x128xf32> -> vector<152x384xf32>
    %c0_50 = arith.constant 0 : index
    %c0_51 = arith.constant 0 : index
    %c0_52 = arith.constant 0 : index
    %102 = vector.load %arg5[%c0_50, %c0_51, %c0_52] : memref<3x384x128xf32, #tpu.memory_space<vmem>>, vector<1x384x128xf32>
    %103 = vector.shape_cast %102 : vector<1x384x128xf32> to vector<384x128xf32>
    %cst_53 = arith.constant dense<0.000000e+00> : vector<152x128xf32>
    %104 = tpu.matmul %101, %103, %cst_53 {dimension_numbers = #tpu.dot_dimension_numbers<[1], [0], [0], [1], [0, 0, 1, 1], [], []>} : vector<152x384xf32>, vector<384x128xf32>, vector<152x128xf32> -> vector<152x128xf32>
    %105 = arith.addf %97, %104 : vector<152x128xf32>
    %c19_54 = arith.constant 19 : index
    %c0_55 = arith.constant 0 : index
    %106 = vector.load %arg9[%c19_54, %c0_55] : memref<198x128xf32, #tpu.memory_space<vmem>>, vector<152x128xf32>
    %c20_56 = arith.constant 20 : index
    %c0_57 = arith.constant 0 : index
    %107 = vector.load %arg9[%c20_56, %c0_57] : memref<198x128xf32, #tpu.memory_space<vmem>>, vector<152x128xf32>
    %c21_58 = arith.constant 21 : index
    %c0_59 = arith.constant 0 : index
    %108 = vector.load %arg9[%c21_58, %c0_59] : memref<198x128xf32, #tpu.memory_space<vmem>>, vector<152x128xf32>
    %109 = tpu.concatenate %106, %107, %108 in 1 : vector<152x128xf32>, vector<152x128xf32>, vector<152x128xf32> -> vector<152x384xf32>
    %c1_60 = arith.constant 1 : index
    %c0_61 = arith.constant 0 : index
    %c0_62 = arith.constant 0 : index
    %110 = vector.load %arg5[%c1_60, %c0_61, %c0_62] : memref<3x384x128xf32, #tpu.memory_space<vmem>>, vector<1x384x128xf32>
    %111 = vector.shape_cast %110 : vector<1x384x128xf32> to vector<384x128xf32>
    %cst_63 = arith.constant dense<0.000000e+00> : vector<152x128xf32>
    %112 = tpu.matmul %109, %111, %cst_63 {dimension_numbers = #tpu.dot_dimension_numbers<[1], [0], [0], [1], [0, 0, 1, 1], [], []>} : vector<152x384xf32>, vector<384x128xf32>, vector<152x128xf32> -> vector<152x128xf32>
    %113 = arith.addf %105, %112 : vector<152x128xf32>
    %c38_64 = arith.constant 38 : index
    %c0_65 = arith.constant 0 : index
    %114 = vector.load %arg9[%c38_64, %c0_65] : memref<198x128xf32, #tpu.memory_space<vmem>>, vector<152x128xf32>
    %c39_66 = arith.constant 39 : index
    %c0_67 = arith.constant 0 : index
    %115 = vector.load %arg9[%c39_66, %c0_67] : memref<198x128xf32, #tpu.memory_space<vmem>>, vector<152x128xf32>
    %c40_68 = arith.constant 40 : index
    %c0_69 = arith.constant 0 : index
    %116 = vector.load %arg9[%c40_68, %c0_69] : memref<198x128xf32, #tpu.memory_space<vmem>>, vector<152x128xf32>
    %117 = tpu.concatenate %114, %115, %116 in 1 : vector<152x128xf32>, vector<152x128xf32>, vector<152x128xf32> -> vector<152x384xf32>
    %c2_70 = arith.constant 2 : index
    %c0_71 = arith.constant 0 : index
    %c0_72 = arith.constant 0 : index
    %118 = vector.load %arg5[%c2_70, %c0_71, %c0_72] : memref<3x384x128xf32, #tpu.memory_space<vmem>>, vector<1x384x128xf32>
    %119 = vector.shape_cast %118 : vector<1x384x128xf32> to vector<384x128xf32>
    %cst_73 = arith.constant dense<0.000000e+00> : vector<152x128xf32>
    %120 = tpu.matmul %117, %119, %cst_73 {dimension_numbers = #tpu.dot_dimension_numbers<[1], [0], [0], [1], [0, 0, 1, 1], [], []>} : vector<152x384xf32>, vector<384x128xf32>, vector<152x128xf32> -> vector<152x128xf32>
    %121 = arith.addf %113, %120 : vector<152x128xf32>
    %c0_74 = arith.constant 0 : index
    %c0_75 = arith.constant 0 : index
    %122 = vector.load %arg6[%c0_74, %c0_75] : memref<1x128xf32, #tpu.memory_space<vmem>>, vector<1x128xf32>
    %123 = vector.broadcast %122 : vector<1x128xf32> to vector<152x128xf32>
    %124 = arith.addf %121, %123 : vector<152x128xf32>
    %cst_76 = arith.constant 0.000000e+00 : f32
    %125 = vector.broadcast %cst_76 : f32 to vector<152x128xf32>
    %126 = arith.maximumf %124, %125 : vector<152x128xf32>
    %127 = vector.shape_cast %126 : vector<152x128xf32> to vector<1x152x128xf32>
    %c0_77 = arith.constant 0 : index
    %c0_78 = arith.constant 0 : index
    %c0_79 = arith.constant 0 : index
    %128 = vector.load %arg7[%c0_77, %c0_78, %c0_79] : memref<1x152x128xf32, #tpu.memory_space<vmem>>, vector<1x152x128xf32>
    tpu.vector_store %arg7[%c0_77, %c0_78, %c0_79], %127 {strides = array<i32>} : memref<1x152x128xf32, #tpu.memory_space<vmem>>, vector<1x152x128xf32>,
    return
  }
  func.func @transform_1(%arg0: i32, %arg1: i32) -> (i32, i32, i32) {
    %c0_i32 = arith.constant 0 : i32
    %c0_i32_0 = arith.constant 0 : i32
    %c0_i32_1 = arith.constant 0 : i32
    %c0_i32_2 = arith.constant 0 : i32
    return %c0_i32, %c0_i32_0, %c0_i32_1 : i32, i32, i32
  }
  func.func @transform_2(%arg0: i32, %arg1: i32) -> (i32, i32) {
    %c0_i32 = arith.constant 0 : i32
    %c0_i32_0 = arith.constant 0 : i32
    %c0_i32_1 = arith.constant 0 : i32
    return %c0_i32, %c0_i32_0 : i32, i32
  }
  func.func @transform_3(%arg0: i32, %arg1: i32) -> (i32, i32, i32) {
    %c0_i32 = arith.constant 0 : i32
    %c0_i32_0 = arith.constant 0 : i32
    %c0_i32_1 = arith.constant 0 : i32
    %c0_i32_2 = arith.constant 0 : i32
    return %c0_i32, %c0_i32_0, %c0_i32_1 : i32, i32, i32
  }
  func.func @transform_4(%arg0: i32, %arg1: i32) -> (i32, i32) {
    %c0_i32 = arith.constant 0 : i32
    %c0_i32_0 = arith.constant 0 : i32
    %c0_i32_1 = arith.constant 0 : i32
    return %c0_i32, %c0_i32_0 : i32, i32
  }
  func.func @transform_5(%arg0: i32, %arg1: i32) -> (i32, i32, i32) {
    %c0_i32 = arith.constant 0 : i32
    %c0_i32_0 = arith.constant 0 : i32
    return %arg0, %arg1, %c0_i32 : i32, i32, i32
  }
}

</mosaic_0001>

<bundles_post_ra>
// kernel: tpu_custom_call.1
= control target key start
LH: loop header
LB: loop body
LE: loop exit
PB: predicated region body
PF: predicated region fallthrough
CT: control target
= control target key end

     0   :  { %10 = vsyncpa [#allocation6], 0  ;;  %s12974_s0 = inlined_call_operand.vmem [shape: f32[2,388,128], index: 0, kind: input, shape index: {}]   ;;  %s12975_s1 = inlined_call_operand.vmem [shape: f32[3,384,128], index: 1, kind: input, shape index: {}]   ;;  %s12976_s2 = inlined_call_operand.vmem [shape: f32[1,128], index: 2, kind: input, shape index: {}]   ;;  %s12977_s3 = inlined_call_operand.hbm [shape: f32[3,384,128], index: 3, kind: input, shape index: {}]   ;;  %s12978_s4 = inlined_call_operand.vmem [shape: f32[1,128], index: 4, kind: input, shape index: {}]   ;;  %s12979_s5 = inlined_call_operand.hbm [shape: f32[2,304,128], index: 5, kind: output, shape index: {}]  }
   0x1   :  { %11 = vsyncpa [#allocation7], 0 }
   0x2   :  { %13 = vsyncpa [#allocation7 + $0x1], 0  ;;  %s10129_s18 = smov 0   ;;  %s10131_s19 = smov 0  }
   0x3   :  { %s10133_s20 = smov 0   ;;  %s10135_s21 = smov 0  }
   0x4   :  { %s10137_s22 = smov 0   ;;  %s10139_s23 = smov 0  }
   0x5   :  { %s10141_s24 = smov 0   ;;  %s10143_s25 = smov 0  }
   0x6 LB: > { %s8497_s26 = sadd.s32 4294967295, %s10086_s25   ;;  %s8498_s27 = sadd.s32 4294967294, %s10086_s25   ;;  %s10086_s25 = sphi %s10143_s25, %s19_s25   ;;  %s10082_s24 = sphi %s10141_s24, %s13047_s24   ;;  %s10078_s23 = sphi %s10139_s23, %s13046_s23   ;;  %s10074_s22 = sphi %s10137_s22, %s13045_s22   ;;  %s10070_s21 = sphi %s10135_s21, %s13044_s21   ;;  %s10066_s20 = sphi %s10133_s20, %s13043_s20   ;;  %s10062_s19 = sphi %s10131_s19, %s13042_s19   ;;  %s10058_s18 = sphi %s10129_s18, %s13041_s18  }
   0x7   : > { %s28_s28 = sadd.s32 1, %s10078_s23  ;;  %s31_s29 = sadd.s32 1, %s10082_s24 }
   0x8   : > { %p29_p0 = scmp.ge.s32.totalorder %s28_s28, 2  ;;  %s124_s30 = sadd.s32 1, %s10066_s20 }
   0x9   : > { %p134_p1 = scmp.ne.s32.totalorder %s10066_s20, %s10062_s19  ;;  %p135_p2 = scmp.eq.s32.totalorder %s8497_s26, 3 }
   0xa   : > { %s13049_s28 = smov (%p29_p0, %s28_s28), 0  ;;  %s13051_s29 = smov (!%p29_p0, %s31_s29), %s10082_s24 }
   0xb   : > { %s120_s6 = ssub.s32 %s10078_s23, %s13049_s28  ;;  %p10181_p3 = por %p135_p2, %p134_p1 }
   0xc   : > { %p33_p4 = scmp.ge.s32.totalorder %s13051_s29, 2  ;;  %p140_p5 = scmp.ne.s32.totalorder %s10062_s19, %s10058_s18 }
   0xd   : > { %s12987_s7 = scalar_select %p10181_p3, 1, 0 }
   0xe   : > { %p141_p6 = scmp.eq.s32.totalorder %s8498_s27, 3  ;;  %p8499_p7 = scmp.ge.s32.totalorder %s10086_s25, 1 }
   0xf   : > { %s13053_s29 = smov (%p33_p4, %s13051_s29), 0  ;;  %p148_p9 = scmp.lt.s32.totalorder %s10086_s25, 5 }
  0x10   : > { %p10190_p8 = por %p141_p6, %p140_p5  ;;  %s119_s9 = ssub.s32 %s10082_s24, %s13053_s29 }
  0x11   : > { %s121_s10 = sor.u32 %s120_s6, %s119_s9  ;;  %p10197_p10 = pnand %p8499_p7, %p148_p9 }
  0x12   : > { %s12988_s8 = scalar_select %p10190_p8, 1, 0 }
  0x13   : > { %s12989_s11 = scalar_select %p10197_p10, 1, 0 }
  0x14   : > { %p122_p11 = scmp.eq.s32.totalorder %s121_s10, 0  ;;  %p10201_p12 = scmp.eq.s32.totalorder %s8497_s26, 0 }
  0x15   : > { %p9871_p13 = pneg %p10197_p10  ;;  %s10088_s14 = smov [#allocation5]  }
  0x16   : > { %s12990_s12 = scalar_select %p10201_p12, 1, 0 }
  0x17   : > { %s10208_s13 = scalar_select %p122_p11, %s10066_s20, %s124_s30  }
  0x18   : > { %s166_s15 = sshll.u32 %s10088_s14, 4  ;;  %p10212_p0 = pnand %p10201_p12, %p9871_p13  ;;  %s167_s15 = int_to_ptr.vmem [resolvable:$true] %s166_s15 }
  0x19   : > { %s9958_s26 = scalar_lea.hbm %s12977_s3, 18432 }
  0x1a   : > { %p9959_p1 = scmp.ne.s32.totalorder %s12977_s3, %s9958_s26  ;;  %p9960_p2 = pneg %p10212_p0 }
  0x1b   : > { %p9965_p6 = scmp.lt.u32.totalorder %s9958_s26, %s12977_s3 }
  0x1c   : > { %p9961_p4 = pnand %p9960_p2, %p9959_p1 }
  0x1e   : > { %p9962_p5 = pneg %p9961_p4 }
  0x20   : > { %p9967_p7 = pnand %p9965_p6, %p9962_p5 }
  0x22   : > { %9970 = shalt.err (!%p9967_p7)
}
  0x23   : > { %s9971_s14 = scalar_lea.vmem %s167_s15, 18432  ;;  %p9979_p8 = scmp.lt.s32.totalorder %s167_s15, %s167_s15 }
  0x24   : > { %p9972_p9 = scmp.ne.s32.totalorder %s167_s15, %s9971_s14  ;;  %p9980_p3 = scmp.lt.s32.totalorder %s9971_s14, %s9971_s14 }
  0x26   : > { %p9974_p11 = pnand %p9972_p9, %p9960_p2  ;;  %p9981_p12 = por %p9980_p3, %p9979_p8 }
  0x28   : > { %p9975_p13 = pneg %p9974_p11 }
  0x2a   : > { %p9982_p10 = pnand %p9981_p12, %p9975_p13 }
  0x2c   : > { %9985 = shalt.err (!%p9982_p10)
}
  0x2d   : > { %s10089_s17 = smov 128   ;;  %s10090_s27 = smov 8  }
  0x2e   : > { %9874 = dma.hbm_to_vmem [thread:$0]  (!%p10212_p0), %s12977_s3, 18432, %s167_s15, [#allocation6], %s10089_s17, %s10089_s17, %s10090_s27  }
  0x2f   : > { %p12992_p1 = scmp.ne.s32.totalorder %s12989_s11, 0 }
  0x31   : > { %185 = sbr.rel (%p12992_p1) target bundleno = 1283 (0x503), region = 36 }
  0x38   : > { %p12993_p4 = scmp.ne.s32.totalorder %s12990_s12, 0 }
  0x3a   : > { %10047 = dma.done.wait (%p12993_p4), [#allocation6], 18432  }
  0x3b   : > { %10049 = vsyncadd (%p12993_p4), [#allocation6], 4294948864  ;;  %s12984_s26 = sand.u32 1, %s10062_s19   ;;  %p8503_p3 = scmp.ne.s32.totalorder %s10070_s21, 0 }
  0x3c   : > { %s9863_s30 = smul.u32 152, %s12984_s26  ;;  %v10091_v0 = vmov (!%p8503_p3), 0.0  }
  0x3d   : > { %210 = sbr.rel (%p8503_p3) target bundleno = 82 (0x52), region = 44  ;;  %211 = vst [vmem:[#allocation3 + $0xbe] sm:$0xff] (!%p8503_p3), %v10091_v0 }
  0x3e   : > { %s10241_s10 = scalar_lea.vmem [#allocation8], %s9863_s30  ;;  %s212_s15 = smul.u32 (!%p8503_p3), 392, %s10074_s22 }
  0x40   : > { %s10248_s14 = scalar_lea.vmem (!%p8503_p3), %s12974_s0, %s212_s15 }
  0x41   : > { %v251_v1 = vld [vmem:[%s10248_s14] sm:$0xff] (!%p8503_p3)  ;;  %v253_v2 = vld [vmem:[%s10248_s14 + $0x8] sm:$0xff] (!%p8503_p3)  ;;  %v255_v3 = vld [vmem:[%s10248_s14 + $0x10] sm:$0xff] (!%p8503_p3) }
  0x42   : > { %252 = vst [vmem:[#allocation2] sm:$0xff] (!%p8503_p3), %v251_v1  ;;  %254 = vst [vmem:[#allocation2 + $0x8] sm:$0xff] (!%p8503_p3), %v253_v2  ;;  %v257_v4 = vld [vmem:[%s10248_s14 + $0x18] sm:$0xff] (!%p8503_p3)  ;;  %v259_v5 = vld [vmem:[%s10248_s14 + $0x20] sm:$0xff] (!%p8503_p3) }
  0x43   : > { %256 = vst [vmem:[#allocation2 + $0x10] sm:$0xff] (!%p8503_p3), %v255_v3  ;;  %v261_v6 = vld [vmem:[%s10248_s14 + $0x28] sm:$0xff] (!%p8503_p3)  ;;  %258 = vst [vmem:[#allocation2 + $0x18] sm:$0xff] (!%p8503_p3), %v257_v4  ;;  %v263_v7 = vld [vmem:[%s10248_s14 + $0x30] sm:$0xff] (!%p8503_p3) }
  0x44   : > { %260 = vst [vmem:[#allocation2 + $0x20] sm:$0xff] %v259_v5  ;;  %262 = vst [vmem:[#allocation2 + $0x28] sm:$0xff] %v261_v6  ;;  %v265_v8 = vld [vmem:[%s10248_s14 + $0x38] sm:$0xff]  ;;  %v267_v9 = vld [vmem:[%s10248_s14 + $0x40] sm:$0xff] }
  0x45   : > { %264 = vst [vmem:[#allocation2 + $0x30] sm:$0xff] %v263_v7  ;;  %266 = vst [vmem:[#allocation2 + $0x38] sm:$0xff] %v265_v8  ;;  %v269_v10 = vld [vmem:[%s10248_s14 + $0x48] sm:$0xff]  ;;  %v271_v11 = vld [vmem:[%s10248_s14 + $0x50] sm:$0xff] }
  0x46   : > { %268 = vst [vmem:[#allocation2 + $0x40] sm:$0xff] %v267_v9  ;;  %v273_v12 = vld [vmem:[%s10248_s14 + $0x58] sm:$0xff]  ;;  %270 = vst [vmem:[#allocation2 + $0x48] sm:$0xff] %v269_v10  ;;  %v275_v13 = vld [vmem:[%s10248_s14 + $0x60] sm:$0xff] }
  0x47   : > { %272 = vst [vmem:[#allocation2 + $0x50] sm:$0xff] %v271_v11  ;;  %274 = vst [vmem:[#allocation2 + $0x58] sm:$0xff] %v273_v12  ;;  %v277_v14 = vld [vmem:[%s10248_s14 + $0x68] sm:$0xff]  ;;  %v279_v15 = vld [vmem:[%s10248_s14 + $0x70] sm:$0xff] }
  0x48   : > { %276 = vst [vmem:[#allocation2 + $0x60] sm:$0xff] %v275_v13  ;;  %278 = vst [vmem:[#allocation2 + $0x68] sm:$0xff] %v277_v14  ;;  %v281_v16 = vld [vmem:[%s10248_s14 + $0x78] sm:$0xff]  ;;  %v283_v17 = vld [vmem:[%s10248_s14 + $0x80] sm:$0xff] }
  0x49   : > { %280 = vst [vmem:[#allocation2 + $0x70] sm:$0xff] %v279_v15  ;;  %v285_v18 = vld [vmem:[%s10248_s14 + $0x88] sm:$0xff]  ;;  %282 = vst [vmem:[#allocation2 + $0x78] sm:$0xff] %v281_v16  ;;  %v287_v19 = vld [vmem:[%s10248_s14 + $0x90] sm:$0xff] }
  0x4a   : > { %284 = vst [vmem:[#allocation2 + $0x80] sm:$0xff] %v283_v17  ;;  %286 = vst [vmem:[#allocation2 + $0x88] sm:$0xff] %v285_v18  ;;  %v289_v20 = vld [vmem:[%s10248_s14 + $0x98] sm:$0xff]  ;;  %v291_v21 = vld [vmem:[%s10248_s14 + $0xa0] sm:$0xff] }
  0x4b   : > { %288 = vst [vmem:[#allocation2 + $0x90] sm:$0xff] %v287_v19  ;;  %290 = vst [vmem:[#allocation2 + $0x98] sm:$0xff] %v289_v20  ;;  %v293_v22 = vld [vmem:[%s10248_s14 + $0xa8] sm:$0xff]  ;;  %v295_v23 = vld [vmem:[%s10248_s14 + $0xb0] sm:$0xff] }
  0x4c   : > { %292 = vst [vmem:[#allocation2 + $0xa0] sm:$0xff] %v291_v21  ;;  %v297_v24 = vld [vmem:[%s10248_s14 + $0xb8] sm:$0xff]  ;;  %294 = vst [vmem:[#allocation2 + $0xa8] sm:$0xff] %v293_v22  ;;  %v299_v25 = vld [vmem:[%s10248_s14 + $0xc0] sm:$0xff] }
  0x4d   : > { %296 = vst [vmem:[#allocation2 + $0xb0] sm:$0xff] %v295_v23  ;;  %298 = vst [vmem:[#allocation2 + $0xb8] sm:$0xff] %v297_v24  ;;  %v301_v26 = vld [vmem:[%s10248_s14 + $0xc8] sm:$0xff]  ;;  %v303_v27 = vld [vmem:[%s10248_s14 + $0xd0] sm:$0xff] }
  0x4e   : > { %300 = vst [vmem:[#allocation2 + $0xc0] sm:$0xff] %v299_v25  ;;  %302 = vst [vmem:[#allocation2 + $0xc8] sm:$0xff] %v301_v26  ;;  %v305_v28 = vld [vmem:[%s10248_s14 + $0xd8] sm:$0xff]  ;;  %v307_v29 = vld [vmem:[%s10248_s14 + $0xe0] sm:$0xff] }
  0x4f   : > { %304 = vst [vmem:[#allocation2 + $0xd0] sm:$0xff] %v303_v27  ;;  %v8504_v30 = vld [vmem:[%s10248_s14 + $0xe8] sm:$0xf]  ;;  %306 = vst [vmem:[#allocation2 + $0xd8] sm:$0xff] %v305_v28 }
  0x50   : > { %308 = vst [vmem:[#allocation2 + $0xe0] sm:$0xff] %v307_v29  ;;  %319 = vst [vmem:[#allocation2 + $0xe8] sm:$0xf] %v8504_v30 }
  0x51   : > { %323 = vsyncadd [#allocation4], 3776 }
  0x52 PF: > { %p324_p8 = scmp.lt.s32.totalorder %s10070_s21, 0  ;;  %s325_s12 = ssub.s32 0, %s10070_s21 }
  0x53   : > { %s8505_s17 = smin.u32 %s10070_s21, %s325_s12 }
  0x54   : > { %s327_s27 = sand.u32 1, %s8505_s17  }
  0x55   : > { %s328_s6 = ssub.s32 0, %s327_s27 }
  0x56   : > { %s13055_s6 = smov (!%p324_p8, %s328_s6), %s327_s27 }
  0x57   : > { %p8507_p10 = scmp.lt.s32.totalorder %s13055_s6, 0  ;;  %s334_s9 = sadd.s32 2, %s13055_s6 }
  0x59   : > { %s13057_s9 = smov (!%p8507_p10, %s334_s9), %s13055_s6 }
  0x5a   : > { %s336_s30 = scalar_lea.sflag [#allocation4], %s13057_s9 }
  0x5b   : > { %10050 = dma.done.wait %s336_s30, 3776 }
  0x5c   : > { %10051 = vsyncadd %s336_s30, 4294963520  ;;  %s340_s15 = sadd.s32 1, %s10070_s21 }
  0x5d   : > { %p8508_p12 = scmp.ge.s32.totalorder %s340_s15, 2 }
  0x5e   : > { %s345_s11 = ssub.s32 (!%p8508_p12), 1, %s13057_s9  ;;  %s8414_s16 = smul.u32 (!%p8508_p12), 152, %s10070_s21 }
  0x5f   : > { %344 = sbr.rel (%p8508_p12) target bundleno = 117 (0x75), region = 85  ;;  %s352_s15 = scalar_lea.sflag (!%p8508_p12), [#allocation4], %s345_s11 }
  0x60   : > { %s8415_s14 = smul.u32 (!%p8508_p12), 392, %s10074_s22 }
  0x61   : > { %s350_s12 = smul.u32 (!%p8508_p12), 240, %s345_s11 }
  0x62   : > { %s8416_s17 = sadd.s32 (!%p8508_p12), %s8415_s14, %s8414_s16 }
  0x63   : > { %s10295_s26 = scalar_lea.vmem (!%p8508_p12), %s12974_s0, %s8416_s17  ;;  %s10300_s30 = scalar_lea.vmem (!%p8508_p12), [#allocation2], %s350_s12 }
  0x64   : > { %v8510_v31 = vld [vmem:[%s10295_s26 + $0x98] sm:$0xff] (!%p8508_p12)  ;;  %v8511_v32 = vld [vmem:[%s10295_s26 + $0xa0] sm:$0xff] (!%p8508_p12)  ;;  %v8512_v33 = vld [vmem:[%s10295_s26 + $0xa8] sm:$0xff] (!%p8508_p12) }
  0x65   : > { %391 = vst [vmem:[%s10300_s30] sm:$0xff] (!%p8508_p12), %v8510_v31  ;;  %393 = vst [vmem:[%s10300_s30 + $0x8] sm:$0xff] (!%p8508_p12), %v8511_v32  ;;  %v8513_v34 = vld [vmem:[%s10295_s26 + $0xb0] sm:$0xff] (!%p8508_p12)  ;;  %v8514_v35 = vld [vmem:[%s10295_s26 + $0xb8] sm:$0xff] (!%p8508_p12) }
  0x66   : > { %395 = vst [vmem:[%s10300_s30 + $0x10] sm:$0xff] %v8512_v33  ;;  %v8515_v36 = vld [vmem:[%s10295_s26 + $0xc0] sm:$0xff]  ;;  %397 = vst [vmem:[%s10300_s30 + $0x18] sm:$0xff] %v8513_v34  ;;  %v8516_v37 = vld [vmem:[%s10295_s26 + $0xc8] sm:$0xff] }
  0x67   : > { %399 = vst [vmem:[%s10300_s30 + $0x20] sm:$0xff] %v8514_v35  ;;  %401 = vst [vmem:[%s10300_s30 + $0x28] sm:$0xff] %v8515_v36  ;;  %v8517_v38 = vld [vmem:[%s10295_s26 + $0xd0] sm:$0xff]  ;;  %v8518_v39 = vld [vmem:[%s10295_s26 + $0xd8] sm:$0xff] }
  0x68   : > { %403 = vst [vmem:[%s10300_s30 + $0x30] sm:$0xff] %v8516_v37  ;;  %405 = vst [vmem:[%s10300_s30 + $0x38] sm:$0xff] %v8517_v38  ;;  %v8519_v40 = vld [vmem:[%s10295_s26 + $0xe0] sm:$0xff]  ;;  %v8520_v41 = vld [vmem:[%s10295_s26 + $0xe8] sm:$0xff] }
  0x69   : > { %407 = vst [vmem:[%s10300_s30 + $0x40] sm:$0xff] %v8518_v39  ;;  %v8521_v42 = vld [vmem:[%s10295_s26 + $0xf0] sm:$0xff]  ;;  %409 = vst [vmem:[%s10300_s30 + $0x48] sm:$0xff] %v8519_v40  ;;  %v8522_v43 = vld [vmem:[%s10295_s26 + $0xf8] sm:$0xff] }
  0x6a   : > { %411 = vst [vmem:[%s10300_s30 + $0x50] sm:$0xff] %v8520_v41  ;;  %413 = vst [vmem:[%s10300_s30 + $0x58] sm:$0xff] %v8521_v42  ;;  %v8523_v44 = vld [vmem:[%s10295_s26 + $0x100] sm:$0xff]  ;;  %v8524_v45 = vld [vmem:[%s10295_s26 + $0x108] sm:$0xff] }
  0x6b   : > { %415 = vst [vmem:[%s10300_s30 + $0x60] sm:$0xff] %v8522_v43  ;;  %417 = vst [vmem:[%s10300_s30 + $0x68] sm:$0xff] %v8523_v44  ;;  %v8525_v46 = vld [vmem:[%s10295_s26 + $0x110] sm:$0xff]  ;;  %v8526_v47 = vld [vmem:[%s10295_s26 + $0x118] sm:$0xff] }
  0x6c   : > { %419 = vst [vmem:[%s10300_s30 + $0x70] sm:$0xff] %v8524_v45  ;;  %v8527_v48 = vld [vmem:[%s10295_s26 + $0x120] sm:$0xff]  ;;  %421 = vst [vmem:[%s10300_s30 + $0x78] sm:$0xff] %v8525_v46  ;;  %v8528_v49 = vld [vmem:[%s10295_s26 + $0x128] sm:$0xff] }
  0x6d   : > { %423 = vst [vmem:[%s10300_s30 + $0x80] sm:$0xff] %v8526_v47  ;;  %425 = vst [vmem:[%s10300_s30 + $0x88] sm:$0xff] %v8527_v48  ;;  %v8529_v50 = vld [vmem:[%s10295_s26 + $0x130] sm:$0xff]  ;;  %v8530_v51 = vld [vmem:[%s10295_s26 + $0x138] sm:$0xff] }
  0x6e   : > { %427 = vst [vmem:[%s10300_s30 + $0x90] sm:$0xff] %v8528_v49  ;;  %429 = vst [vmem:[%s10300_s30 + $0x98] sm:$0xff] %v8529_v50  ;;  %v8531_v52 = vld [vmem:[%s10295_s26 + $0x140] sm:$0xff]  ;;  %v8532_v53 = vld [vmem:[%s10295_s26 + $0x148] sm:$0xff] }
  0x6f   : > { %431 = vst [vmem:[%s10300_s30 + $0xa0] sm:$0xff] %v8530_v51  ;;  %v8533_v54 = vld [vmem:[%s10295_s26 + $0x150] sm:$0xff]  ;;  %433 = vst [vmem:[%s10300_s30 + $0xa8] sm:$0xff] %v8531_v52  ;;  %v8534_v55 = vld [vmem:[%s10295_s26 + $0x158] sm:$0xff] }
  0x70   : > { %435 = vst [vmem:[%s10300_s30 + $0xb0] sm:$0xff] %v8532_v53  ;;  %437 = vst [vmem:[%s10300_s30 + $0xb8] sm:$0xff] %v8533_v54  ;;  %v8535_v56 = vld [vmem:[%s10295_s26 + $0x160] sm:$0xff]  ;;  %v8536_v57 = vld [vmem:[%s10295_s26 + $0x168] sm:$0xff] }
  0x71   : > { %439 = vst [vmem:[%s10300_s30 + $0xc0] sm:$0xff] %v8534_v55  ;;  %441 = vst [vmem:[%s10300_s30 + $0xc8] sm:$0xff] %v8535_v56  ;;  %v8537_v58 = vld [vmem:[%s10295_s26 + $0x170] sm:$0xff]  ;;  %v8538_v59 = vld [vmem:[%s10295_s26 + $0x178] sm:$0xff] }
  0x72   : > { %443 = vst [vmem:[%s10300_s30 + $0xd0] sm:$0xff] %v8536_v57  ;;  %v8539_v60 = vld [vmem:[%s10295_s26 + $0x180] sm:$0xf]  ;;  %445 = vst [vmem:[%s10300_s30 + $0xd8] sm:$0xff] %v8537_v58 }
  0x73   : > { %447 = vst [vmem:[%s10300_s30 + $0xe0] sm:$0xff] %v8538_v59  ;;  %8540 = vst [vmem:[%s10300_s30 + $0xe8] sm:$0xf] %v8539_v60 }
  0x74   : > { %462 = vsyncadd %s352_s15, 3776 }
  0x75 PF: > { %v8542_v61 = vld [vmem:[%s12975_s1 + $0x180] sm:$0xff]  ;;  %v8543_v62 = vld [vmem:[%s12975_s1 + $0x188] sm:$0xff]  ;;  %v12985_v0 = vmov 0.0|0.0   ;;  %v8544_v3 = vld [vmem:[%s12975_s1 + $0x190] sm:$0xff]  ;;  %s463_s27 = smul.u32 240, %s13057_s9  ;;  %p3227_p0 = scmp.gt.s32.totalorder %s10070_s21, 0 }
  0x76   : > { %v8574_v63 = vld [vmem:[%s12975_s1 + $0x280] sm:$0xff]  ;;  %9391 = vmatprep.subr.bf16.mxu0 %v12985_v0  ;;  %v9392_v1 = vpack.c.bf16 %v8543_v62, %v8542_v61  ;;  %v8575_v2 = vld [vmem:[%s12975_s1 + $0x288] sm:$0xff]  ;;  %v8545_v4 = vld [vmem:[%s12975_s1 + $0x198] sm:$0xff]  ;;  %vm10094_vm5 = vmmov 0   ;;  %p3237_p2 = scmp.lt.s32.totalorder %s10070_s21, 1  ;;  %s8358_s15 = smul.u32 19, %s10070_s21 }
  0x77   : > { %v9439_v5 = vpack.c.bf16 %v8575_v2, %v8574_v63  ;;  %v8576_v6 = vld [vmem:[%s12975_s1 + $0x290] sm:$0xff]  ;;  %v8577_v7 = vld [vmem:[%s12975_s1 + $0x298] sm:$0xff]  ;;  %v9395_v8 = vpack.c.bf16 %v8545_v4, %v8544_v3  ;;  %v8578_v10 = vld [vmem:[%s12975_s1 + $0x2a0] sm:$0xff]  ;;  %s10419_s11 = scalar_lea.vmem [#allocation2], %s463_s27  ;;  %s8366_s16 = sshll.u32 %s10241_s10, 4  ;;  %s12912_s16 = int_to_ptr.vmem [resolvable:$true] %s8366_s16 }
  0x78   : > { %9393 = vmatpush1.bf16.msra.mxu0 %v9392_v1  ;;  %v9443_v9 = vpack.c.bf16 %v8577_v7, %v8576_v6  ;;  %v8579_v11 = vld [vmem:[%s12975_s1 + $0x2a8] sm:$0xff]  ;;  %v8546_v12 = vld [vmem:[%s12975_s1 + $0x1a0] sm:$0xff]  ;;  %v8580_v16 = vld [vmem:[%s12975_s1 + $0x2b0] sm:$0xff]  ;;  %s11334_s9 = scalar_select %p3227_p0, 1, 0 }
  0x79   : > { %9440 = vmatprep.subr.bf16.mxu1 %v9439_v5  ;;  %9394 = vmatprep.subr.bf16.mxu0 %v12985_v0  ;;  %v8547_v13 = vld [vmem:[%s12975_s1 + $0x1a8] sm:$0xff]  ;;  %v9447_v14 = vpack.c.bf16 %v8579_v11, %v8578_v10  ;;  %v8581_v17 = vld [vmem:[%s12975_s1 + $0x2b8] sm:$0xff]  ;;  %v8548_v18 = vld [vmem:[%s12975_s1 + $0x1b0] sm:$0xff]  ;;  %s12368_s6 = scalar_select %p3237_p2, 1, 0 }
  0x7a   : > { %9442 = vmatpush3.bf16.msra.mxu1 %v9439_v5  ;;  %v9398_v15 = vpack.c.bf16 %v8547_v13, %v8546_v12  ;;  %v8549_v19 = vld [vmem:[%s12975_s1 + $0x1b8] sm:$0xff]  ;;  %v9451_v20 = vpack.c.bf16 %v8581_v17, %v8580_v16  ;;  %v8582_v22 = vld [vmem:[%s12975_s1 + $0x2c0] sm:$0xff]  ;;  %v8583_v23 = vld [vmem:[%s12975_s1 + $0x2c8] sm:$0xff]  ;;  %s13038_s12 = sand.u32 1, %s10062_s19   ;;  %p13039_p6 = scmp.ne.s32.totalorder %s12987_s7, 0 }
  0x7b   : > { %9444 = vmatprep.subr.bf16.mxu1 %v9443_v9  ;;  %v9401_v21 = vpack.c.bf16 %v8549_v19, %v8548_v18  ;;  %v633_v24 = vld [vmem:[%s10419_s11 + $0x15] sm:$0xff]  ;;  %v9455_v27 = vpack.c.bf16 %v8583_v23, %v8582_v22  ;;  %v634_v55 = vld [vmem:[%s10419_s11 + $0x1d] sm:$0xff]  ;;  %v635_v59 = vld [vmem:[%s10419_s11 + $0x25] sm:$0xff]  ;;  %s12922_s17 = scalar_lea.sflag [#allocation7], %s13038_s12  ;;  %s10096_s26 = smov [#allocation8]  }
  0x7c   : > { %9396 = vmatpush1.bf16.msra.mxu0 %v9395_v8  ;;  %v8550_v25 = vld [vmem:[%s12975_s1 + $0x1c0] sm:$0xff]  ;;  %v8551_v26 = vld [vmem:[%s12975_s1 + $0x1c8] sm:$0xff]  ;;  %8952 = vmatprep.mubr.f32.mxu1 %v633_v24  ;;  %v8584_v29 = vld [vmem:[%s12975_s1 + $0x2d0] sm:$0xff]  ;;  %s9990_s30 = sshll.u32 %s10096_s26, 4  ;;  %s9991_s30 = int_to_ptr.vmem [resolvable:$false] %s9990_s30 }
  0x7d   : > { %9397 = vmatprep.subr.bf16.mxu0 %v12985_v0  ;;  %v9404_v28 = vpack.c.bf16 %v8551_v26, %v8550_v25  ;;  %v8585_v30 = vld [vmem:[%s12975_s1 + $0x2d8] sm:$0xff]  ;;  %v8552_v31 = vld [vmem:[%s12975_s1 + $0x1d0] sm:$0xff]  ;;  %v8586_v35 = vld [vmem:[%s12975_s1 + $0x2e0] sm:$0xff]  ;;  %p9993_p11 = scmp.lt.s32.totalorder %s12912_s16, %s9991_s30 }
  0x7e   : > { %9446 = vmatpush3.bf16.msra.mxu1 %v9443_v9  ;;  %v8553_v32 = vld [vmem:[%s12975_s1 + $0x1d8] sm:$0xff]  ;;  %v9459_v33 = vpack.c.bf16 %v8585_v30, %v8584_v29  ;;  %v8587_v36 = vld [vmem:[%s12975_s1 + $0x2e8] sm:$0xff]  ;;  %v8554_v37 = vld [vmem:[%s12975_s1 + $0x1e0] sm:$0xff] }
  0x7f   : > { %9448 = vmatprep.subr.bf16.mxu1 %v9447_v14  ;;  %v9407_v34 = vpack.c.bf16 %v8553_v32, %v8552_v31  ;;  %v8555_v38 = vld [vmem:[%s12975_s1 + $0x1e8] sm:$0xff]  ;;  %v9463_v39 = vpack.c.bf16 %v8587_v36, %v8586_v35  ;;  %v8588_v41 = vld [vmem:[%s12975_s1 + $0x2f0] sm:$0xff]  ;;  %v8589_v42 = vld [vmem:[%s12975_s1 + $0x2f8] sm:$0xff] }
  0x80   : > { %9399 = vmatpush1.bf16.msra.mxu0 %v9398_v15  ;;  %v9410_v40 = vpack.c.bf16 %v8555_v38, %v8554_v37  ;;  %v8556_v43 = vld [vmem:[%s12975_s1 + $0x1f0] sm:$0xff]  ;;  %v8557_v44 = vld [vmem:[%s12975_s1 + $0x1f8] sm:$0xff]  ;;  %v9467_v46 = vpack.c.bf16 %v8589_v42, %v8588_v41  ;;  %v8558_v48 = vld [vmem:[%s12975_s1 + $0x200] sm:$0xff] }
  0x81   : > { %9400 = vmatprep.subr.bf16.mxu0 %v12985_v0  ;;  %v609_v45 = vld [vmem:[%s10419_s11 + $0x14] sm:$0xff]  ;;  %v9413_v47 = vpack.c.bf16 %v8557_v44, %v8556_v43  ;;  %v638_v9 = vld [vmem:[%s10419_s11 + $0x3d] sm:$0xff]  ;;  %v639_v12 = vld [vmem:[%s10419_s11 + $0x45] sm:$0xff] }
  0x82   : > { %9450 = vmatpush3.bf16.msra.mxu1 %v9447_v14  ;;  %770 = vmatprep.mubr.f32.mxu0 %v609_v45  ;;  %v8559_v49 = vld [vmem:[%s12975_s1 + $0x208] sm:$0xff]  ;;  %v537_v50 = vld [vmem:[%s12975_s1] sm:$0xff]  ;;  %v8560_v53 = vld [vmem:[%s12975_s1 + $0x210] sm:$0xff] }
  0x83   : > { %9452 = vmatprep.subr.bf16.mxu1 %v9451_v20  ;;  %v538_v51 = vld [vmem:[%s12975_s1 + $0x8] sm:$0xff]  ;;  %v9416_v52 = vpack.c.bf16 %v8559_v49, %v8558_v48  ;;  %v8561_v54 = vld [vmem:[%s12975_s1 + $0x218] sm:$0xff]  ;;  %v539_v57 = vld [vmem:[%s12975_s1 + $0x10] sm:$0xff] }
  0x84   : > { %9402 = vmatpush1.bf16.msra.mxu0 %v9401_v21  ;;  %v9472_v56 = vpack.c.bf16 %v538_v51, %v537_v50  ;;  %v540_v58 = vld [vmem:[%s12975_s1 + $0x18] sm:$0xff]  ;;  %v9419_v60 = vpack.c.bf16 %v8561_v54, %v8560_v53  ;;  %v8562_v61 = vld [vmem:[%s12975_s1 + $0x220] sm:$0xff]  ;;  %v8563_v62 = vld [vmem:[%s12975_s1 + $0x228] sm:$0xff] }
  0x85   : > { %9403 = vmatprep.subr.bf16.mxu0 %v12985_v0  ;;  %v9475_v63 = vpack.c.bf16 %v540_v58, %v539_v57  ;;  %v636_v1 = vld [vmem:[%s10419_s11 + $0x2d] sm:$0xff]  ;;  %v637_v4 = vld [vmem:[%s10419_s11 + $0x35] sm:$0xff]  ;;  %v9422_v5 = vpack.c.bf16 %v8563_v62, %v8562_v61  ;;  %v642_v25 = vld [vmem:[%s10419_s11 + $0x5d] sm:$0xff] }
  0x86   : > { %9454 = vmatpush3.bf16.msra.mxu1 %v9451_v20  ;;  %v541_v2 = vld [vmem:[%s12975_s1 + $0x20] sm:$0xff]  ;;  %v542_v3 = vld [vmem:[%s12975_s1 + $0x28] sm:$0xff]  ;;  %v8564_v6 = vld [vmem:[%s12975_s1 + $0x230] sm:$0xff] }
  0x87   : > { %9456 = vmatprep.subr.bf16.mxu1 %v9455_v27  ;;  %v8565_v7 = vld [vmem:[%s12975_s1 + $0x238] sm:$0xff]  ;;  %v9478_v8 = vpack.c.bf16 %v542_v3, %v541_v2  ;;  %v543_v10 = vld [vmem:[%s12975_s1 + $0x30] sm:$0xff]  ;;  %v8566_v14 = vld [vmem:[%s12975_s1 + $0x240] sm:$0xff] }
  0x88   : > { %9405 = vmatpush1.bf16.msra.mxu0 %v9404_v28  ;;  %v544_v11 = vld [vmem:[%s12975_s1 + $0x38] sm:$0xff]  ;;  %v9425_v13 = vpack.c.bf16 %v8565_v7, %v8564_v6  ;;  %v8567_v15 = vld [vmem:[%s12975_s1 + $0x248] sm:$0xff]  ;;  %v545_v18 = vld [vmem:[%s12975_s1 + $0x40] sm:$0xff] }
  0x89   : > { %9406 = vmatprep.subr.bf16.mxu0 %v12985_v0  ;;  %v9481_v16 = vpack.c.bf16 %v544_v11, %v543_v10  ;;  %v640_v17 = vld [vmem:[%s10419_s11 + $0x4d] sm:$0xff]  ;;  %v641_v20 = vld [vmem:[%s10419_s11 + $0x55] sm:$0xff]  ;;  %v9428_v21 = vpack.c.bf16 %v8567_v15, %v8566_v14  ;;  %v643_v28 = vld [vmem:[%s10419_s11 + $0x65] sm:$0xff] }
  0x8a   : > { %9458 = vmatpush3.bf16.msra.mxu1 %v9455_v27  ;;  %v546_v19 = vld [vmem:[%s12975_s1 + $0x48] sm:$0xff]  ;;  %v8568_v22 = vld [vmem:[%s12975_s1 + $0x250] sm:$0xff]  ;;  %v8569_v23 = vld [vmem:[%s12975_s1 + $0x258] sm:$0xff] }
  0x8b   : > { %9460 = vmatprep.subr.bf16.mxu1 %v9459_v33  ;;  %v9484_v24 = vpack.c.bf16 %v546_v19, %v545_v18  ;;  %v547_v26 = vld [vmem:[%s12975_s1 + $0x50] sm:$0xff]  ;;  %v548_v27 = vld [vmem:[%s12975_s1 + $0x58] sm:$0xff]  ;;  %v9431_v29 = vpack.c.bf16 %v8569_v23, %v8568_v22  ;;  %v8570_v30 = vld [vmem:[%s12975_s1 + $0x260] sm:$0xff] }
  0x8c   : > { %9408 = vmatpush1.bf16.msra.mxu0 %v9407_v34  ;;  %v8571_v31 = vld [vmem:[%s12975_s1 + $0x268] sm:$0xff]  ;;  %v9487_v32 = vpack.c.bf16 %v548_v27, %v547_v26  ;;  %v549_v34 = vld [vmem:[%s12975_s1 + $0x60] sm:$0xff]  ;;  %v8572_v38 = vld [vmem:[%s12975_s1 + $0x270] sm:$0xff] }
  0x8d   : > { %9409 = vmatprep.subr.bf16.mxu0 %v12985_v0  ;;  %v550_v35 = vld [vmem:[%s12975_s1 + $0x68] sm:$0xff]  ;;  %v9434_v37 = vpack.c.bf16 %v8571_v31, %v8570_v30  ;;  %v569_v41 = vld [vmem:[%s12975_s1 + $0x100] sm:$0xff]  ;;  %v551_v44 = vld [vmem:[%s12975_s1 + $0x70] sm:$0xff] }
  0x8e   : > { %9462 = vmatpush3.bf16.msra.mxu1 %v9459_v33  ;;  %v644_v33 = vld [vmem:[%s10419_s11 + $0x6d] sm:$0xff]  ;;  %v645_v36 = vld [vmem:[%s10419_s11 + $0x75] sm:$0xff]  ;;  %v646_v43 = vld [vmem:[%s10419_s11 + $0x7d] sm:$0xff] }
  0x8f   : > { %9464 = vmatprep.subr.bf16.mxu1 %v9463_v39  ;;  %v570_v42 = vld [vmem:[%s12975_s1 + $0x108] sm:$0xff]  ;;  %v552_v45 = vld [vmem:[%s12975_s1 + $0x78] sm:$0xff]  ;;  %v571_v50 = vld [vmem:[%s12975_s1 + $0x110] sm:$0xff] }
  0x90   : > { %9411 = vmatpush1.bf16.msra.mxu0 %v9410_v40  ;;  %v9490_v40 = vpack.c.bf16 %v550_v35, %v549_v34  ;;  %v9519_v48 = vpack.c.bf16 %v570_v42, %v569_v41  ;;  %v9493_v49 = vpack.c.bf16 %v552_v45, %v551_v44  ;;  %v572_v51 = vld [vmem:[%s12975_s1 + $0x118] sm:$0xff]  ;;  %v553_v53 = vld [vmem:[%s12975_s1 + $0x80] sm:$0xff]  ;;  %v554_v54 = vld [vmem:[%s12975_s1 + $0x88] sm:$0xff] }
  0x91   : > { %9412 = vmatprep.subr.bf16.mxu0 %v12985_v0  ;;  %v610_v57 = vld [vmem:[%s10419_s11 + $0x1c] sm:$0xff]  ;;  %v9523_v58 = vpack.c.bf16 %v572_v51, %v571_v50  ;;  %v651_v2 = vld [vmem:[%s10419_s11 + $0xa5] sm:$0xff]  ;;  %v652_v7 = vld [vmem:[%s10419_s11 + $0xad] sm:$0xff] }
  0x92   : > { %9466 = vmatpush3.bf16.msra.mxu1 %v9463_v39  ;;  %v8573_v39 = vld [vmem:[%s12975_s1 + $0x278] sm:$0xff]  ;;  %v573_v61 = vld [vmem:[%s12975_s1 + $0x120] sm:$0xff]  ;;  %v574_v62 = vld [vmem:[%s12975_s1 + $0x128] sm:$0xff] }
  0x93   : > { %9468 = vmatprep.subr.bf16.mxu1 %v9467_v46  ;;  %v586_v3 = vld [vmem:[%s10419_s11 + $0x1b] sm:$0xff]  ;;  %v612_v14 = vld [vmem:[%s10419_s11 + $0x2c] sm:$0xff]  ;;  %v615_v42 = vld [vmem:[%s10419_s11 + $0x44] sm:$0xff] }
  0x94   : > { %9414 = vmatpush1.bf16.msra.mxu0 %v9413_v47  ;;  %v9437_v47 = vpack.c.bf16 %v8573_v39, %v8572_v38  ;;  %v557_v10 = vld [vmem:[%s12975_s1 + $0xa0] sm:$0xff]  ;;  %v558_v11 = vld [vmem:[%s12975_s1 + $0xa8] sm:$0xff]  ;;  %v563_v39 = vld [vmem:[%s12975_s1 + $0xd0] sm:$0xff] }
  0x95   : > { %9415 = vmatprep.subr.bf16.mxu0 %v12985_v0  ;;  %v577_v18 = vld [vmem:[%s12975_s1 + $0x140] sm:$0xff]  ;;  %v578_v19 = vld [vmem:[%s12975_s1 + $0x148] sm:$0xff]  ;;  %v583_v45 = vld [vmem:[%s12975_s1 + $0x170] sm:$0xff] }
  0x96   : > { %9470 = vmatpush3.bf16.msra.mxu1 %v9467_v46  ;;  %v647_v46 = vld [vmem:[%s10419_s11 + $0x85] sm:$0xff]  ;;  %v656_v27 = vld [vmem:[%s10419_s11 + $0xcd] sm:$0x3f]  ;;  %v614_v34 = vld [vmem:[%s10419_s11 + $0x3c] sm:$0xff] }
  0x97   : > { %9471 = vmatprep.subr.bf16.mxu1 %v12985_v0  ;;  %v655_v22 = vld [vmem:[%s10419_s11 + $0xc5] sm:$0xff]  ;;  %v590_v41 = vld [vmem:[%s10419_s11 + $0x3b] sm:$0xff] }
  0x98   : > { %9417 = vmatpush1.bf16.msra.mxu0 %v9416_v52  ;;  %v648_v52 = vld [vmem:[%s10419_s11 + $0x8d] sm:$0xff] }
  0x99   : > { %8953 = vmatmul.mubr.f32.vlgmr.msra.gmra.mrb[0].mxu1 %v634_v55  ;;  %9418 = vmatprep.subr.bf16.mxu0 %v12985_v0  ;;  %v649_v55 = vld [vmem:[%s10419_s11 + $0x95] sm:$0xff]  ;;  %v588_v23 = vld [vmem:[%s10419_s11 + $0x2b] sm:$0xff] }
  0x9a   : > { %9473 = vmatpush1.bf16.msra.mxu1 %v9472_v56  ;;  %8955 = vmatprep.mubr.f32.mxu1 %v635_v59  ;;  %v585_v56 = vld [vmem:[%s10419_s11 + $0x13] sm:$0xff]  ;;  %v9496_v59 = vpack.c.bf16 %v554_v54, %v553_v53 }
  0x9b   : > { %9474 = vmatprep.subr.bf16.mxu1 %v12985_v0  ;;  %v561_v30 = vld [vmem:[%s12975_s1 + $0xc0] sm:$0xff]  ;;  %v562_v31 = vld [vmem:[%s12975_s1 + $0xc8] sm:$0xff] }
  0x9c   : > { %9420 = vmatpush1.bf16.msra.mxu0 %v9419_v60  ;;  %v650_v60 = vld [vmem:[%s10419_s11 + $0x9d] sm:$0xff]  ;;  %v616_v50 = vld [vmem:[%s10419_s11 + $0x4c] sm:$0xff] }
  0x9d   : > { %9421 = vmatprep.subr.bf16.mxu0 %v12985_v0  ;;  %8956 = vmatmul.mubr.f32.gmra.mrb[2].mxu1 %v636_v1  ;;  %v556_v1 = vld [vmem:[%s12975_s1 + $0x98] sm:$0xff]  ;;  %v582_v38 = vld [vmem:[%s12975_s1 + $0x168] sm:$0xff]  ;;  %v8622_v53 = vld [vmem:[%s12975_s1 + $0x400] sm:$0xff] }
  0x9e   : > { %9476 = vmatpush1.bf16.msra.mxu1 %v9475_v63  ;;  %8958 = vmatprep.mubr.f32.mxu1 %v637_v4  ;;  %v555_v63 = vld [vmem:[%s12975_s1 + $0x90] sm:$0xff]  ;;  %v8623_v54 = vld [vmem:[%s12975_s1 + $0x408] sm:$0xff] }
  0x9f   : > { %9477 = vmatprep.subr.bf16.mxu1 %v12985_v0  ;;  %v611_v4 = vld [vmem:[%s10419_s11 + $0x24] sm:$0xff]  ;;  %v9499_v6 = vpack.c.bf16 %v556_v1, %v555_v63  ;;  %v593_v63 = vld [vmem:[%s10419_s11 + $0x53] sm:$0xff]  ;;  %v618_v1 = vld [vmem:[%s10419_s11 + $0x5c] sm:$0xff] }
  0xa0   : > { %9423 = vmatpush1.bf16.msra.mxu0 %v9422_v5  ;;  %v9527_v5 = vpack.c.bf16 %v574_v62, %v573_v61  ;;  %v8590_v61 = vld [vmem:[%s12975_s1 + $0x300] sm:$0xff]  ;;  %v8591_v62 = vld [vmem:[%s12975_s1 + $0x308] sm:$0xff] }
  0xa1   : > { %9424 = vmatprep.subr.bf16.mxu0 %v12985_v0  ;;  %8959 = vmatmul.mubr.f32.gmra.mrb[4].mxu1 %v638_v9  ;;  %v576_v9 = vld [vmem:[%s12975_s1 + $0x138] sm:$0xff] }
  0xa2   : > { %9479 = vmatpush1.bf16.msra.mxu1 %v9478_v8  ;;  %8961 = vmatprep.mubr.f32.mxu1 %v639_v12  ;;  %v575_v8 = vld [vmem:[%s12975_s1 + $0x130] sm:$0xff] }
  0xa3   : > { %9480 = vmatprep.subr.bf16.mxu1 %v12985_v0  ;;  %v653_v12 = vld [vmem:[%s10419_s11 + $0xb5] sm:$0xff]  ;;  %v9531_v15 = vpack.c.bf16 %v576_v9, %v575_v8  ;;  %v619_v8 = vld [vmem:[%s10419_s11 + $0x64] sm:$0xff] }
  0xa4   : > { %9426 = vmatpush1.bf16.msra.mxu0 %v9425_v13  ;;  %v587_v13 = vld [vmem:[%s10419_s11 + $0x23] sm:$0xff] }
  0xa5   : > { %9427 = vmatprep.subr.bf16.mxu0 %v12985_v0  ;;  %8962 = vmatmul.mubr.f32.gmra.mrb[6].mxu1 %v640_v17  ;;  %v654_v17 = vld [vmem:[%s10419_s11 + $0xbd] sm:$0xff]  ;;  %v466_v9 = vld [vmem:[%s10419_s11 + $0x8] sm:$0xff] }
  0xa6   : > { %9482 = vmatpush1.bf16.msra.mxu1 %v9481_v16  ;;  %8964 = vmatprep.mubr.f32.mxu1 %v641_v20  ;;  %v9502_v16 = vpack.c.bf16 %v558_v11, %v557_v10  ;;  %v559_v20 = vld [vmem:[%s12975_s1 + $0xb0] sm:$0xff] }
  0xa7   : > { %9483 = vmatprep.subr.bf16.mxu1 %v12985_v0  ;;  %v491_v11 = vld [vmem:[%s10419_s11 + $0x11] sm:$0xff] }
  0xa8   : > { %9429 = vmatpush1.bf16.msra.mxu0 %v9428_v21  ;;  %v560_v21 = vld [vmem:[%s12975_s1 + $0xb8] sm:$0xff] }
  0xa9   : > { %9430 = vmatprep.subr.bf16.mxu0 %v12985_v0  ;;  %8965 = vmatmul.mubr.f32.gmra.mrb[8].mxu1 %v642_v25  ;;  %v9535_v25 = vpack.c.bf16 %v578_v19, %v577_v18  ;;  %v9505_v26 = vpack.c.bf16 %v560_v21, %v559_v20  ;;  %v492_v18 = vld [vmem:[%s10419_s11 + $0x19] sm:$0xff]  ;;  %v596_v21 = vld [vmem:[%s10419_s11 + $0x6b] sm:$0xff] }
  0xaa   : > { %9485 = vmatpush1.bf16.msra.mxu1 %v9484_v24  ;;  %8967 = vmatprep.mubr.f32.mxu1 %v643_v28  ;;  %v613_v24 = vld [vmem:[%s10419_s11 + $0x34] sm:$0xff] }
  0xab   : > { %9486 = vmatprep.subr.bf16.mxu1 %v12985_v0  ;;  %v579_v28 = vld [vmem:[%s12975_s1 + $0x150] sm:$0xff]  ;;  %v8597_v20 = vld [vmem:[%s12975_s1 + $0x338] sm:$0xff] }
  0xac   : > { %9432 = vmatpush1.bf16.msra.mxu0 %v9431_v29  ;;  %v580_v29 = vld [vmem:[%s12975_s1 + $0x158] sm:$0xff]  ;;  %v8596_v19 = vld [vmem:[%s12975_s1 + $0x330] sm:$0xff] }
  0xad   : > { %9433 = vmatprep.subr.bf16.mxu0 %v12985_v0  ;;  %8968 = vmatmul.mubr.f32.gmra.mrb[10].mxu1 %v644_v33  ;;  %v589_v33 = vld [vmem:[%s10419_s11 + $0x33] sm:$0xff]  ;;  %v9539_v35 = vpack.c.bf16 %v580_v29, %v579_v28  ;;  %v622_v29 = vld [vmem:[%s10419_s11 + $0x7c] sm:$0xff] }
  0xae   : > { %9488 = vmatpush1.bf16.msra.mxu1 %v9487_v32  ;;  %8970 = vmatprep.mubr.f32.mxu1 %v645_v36  ;;  %v489_v32 = vld [vmem:[%s10419_s11 + $0x1] sm:$0xff]  ;;  %v9508_v36 = vpack.c.bf16 %v562_v31, %v561_v30  ;;  %v597_v28 = vld [vmem:[%s10419_s11 + $0x73] sm:$0xff] }
  0xaf   : > { %9489 = vmatprep.subr.bf16.mxu1 %v12985_v0  ;;  %v469_v30 = vld [vmem:[%s10419_s11 + $0x20] sm:$0xff] }
  0xb0   : > { %9435 = vmatpush1.bf16.msra.mxu0 %v9434_v37  ;;  %v581_v37 = vld [vmem:[%s12975_s1 + $0x160] sm:$0xff] }
  0xb1   : > { %9436 = vmatprep.subr.bf16.mxu0 %v12985_v0  ;;  %8971 = vmatmul.mubr.f32.gmra.mrb[12].mxu1 %v646_v43  ;;  %v9543_v43 = vpack.c.bf16 %v582_v38, %v581_v37  ;;  %v10799_v37 = vld [vmem:[%s10419_s11 + $0x28] sm:$0xff] }
  0xb2   : > { %9491 = vmatpush1.bf16.msra.mxu1 %v9490_v40  ;;  %8973 = vmatprep.mubr.f32.mxu1 %v647_v46  ;;  %v564_v40 = vld [vmem:[%s12975_s1 + $0xd8] sm:$0xff] }
  0xb3   : > { %9492 = vmatprep.subr.bf16.mxu1 %v12985_v0  ;;  %v9511_v44 = vpack.c.bf16 %v564_v40, %v563_v39  ;;  %v584_v46 = vld [vmem:[%s12975_s1 + $0x178] sm:$0xff]  ;;  %v8602_v40 = vld [vmem:[%s12975_s1 + $0x360] sm:$0xff] }
  0xb4   : > { %9438 = vmatpush1.bf16.msra.mxu0 %v9437_v47  ;;  %v565_v47 = vld [vmem:[%s12975_s1 + $0xe0] sm:$0xff]  ;;  %v9547_v51 = vpack.c.bf16 %v584_v46, %v583_v45 }
  0xb5   : > { %9520 = vmatprep.subr.bf16.mxu0 %v9519_v48  ;;  %8974 = vmatmul.mubr.f32.gmra.mrb[14].mxu1 %v648_v52  ;;  %v495_v39 = vld [vmem:[%s10419_s11 + $0x31] sm:$0xff]  ;;  %v496_v46 = vld [vmem:[%s10419_s11 + $0x39] sm:$0xff] }
  0xb6   : > { %9494 = vmatpush1.bf16.msra.mxu1 %v9493_v49  ;;  %8976 = vmatprep.mubr.f32.mxu1 %v649_v55  ;;  %v591_v49 = vld [vmem:[%s10419_s11 + $0x43] sm:$0xff] }
  0xb7   : > { %771 = vmatmul.mubr.f32.vlgmr.msra.gmra.mrb[0].mxu0 %v585_v56  ;;  %9495 = vmatprep.subr.bf16.mxu1 %v12985_v0  ;;  %v567_v55 = vld [vmem:[%s12975_s1 + $0xf0] sm:$0xff]  ;;  %v568_v56 = vld [vmem:[%s12975_s1 + $0xf8] sm:$0xff] }
  0xb8   : > { %9522 = vmatpush3.bf16.msra.mxu0 %v9519_v48  ;;  %775 = vmatprep.mubr.f32.mxu0 %v610_v57  ;;  %v566_v48 = vld [vmem:[%s12975_s1 + $0xe8] sm:$0xff] }
  0xb9   : > { %9524 = vmatprep.subr.bf16.mxu0 %v9523_v58  ;;  %8977 = vmatmul.mubr.f32.gmra.mrb[16].mxu1 %v650_v60  ;;  %v9514_v52 = vpack.c.bf16 %v566_v48, %v565_v47  ;;  %v592_v57 = vld [vmem:[%s10419_s11 + $0x4b] sm:$0xff]  ;;  %v9517_v60 = vpack.c.bf16 %v568_v56, %v567_v55  ;;  %v601_v56 = vld [vmem:[%s10419_s11 + $0x93] sm:$0xff] }
  0xba   : > { %9497 = vmatpush1.bf16.msra.mxu1 %v9496_v59  ;;  %8979 = vmatprep.mubr.f32.mxu1 %v651_v2  ;;  %v10731_v59 = vpack.c.bf16 %v8623_v54, %v8622_v53  ;;  %v465_v2 = vld [vmem:[%s10419_s11] sm:$0xff]  ;;  %v8605_v48 = vld [vmem:[%s12975_s1 + $0x378] sm:$0xff]  ;;  %v8607_v55 = vld [vmem:[%s12975_s1 + $0x388] sm:$0xff] }
  0xbb   : > { %776 = vmatmul.mubr.f32.gmra.mrb[2].mxu0 %v586_v3  ;;  %9498 = vmatprep.subr.bf16.mxu1 %v12985_v0  ;;  %v9552_v3 = vpack.c.bf16 %v8591_v62, %v8590_v61  ;;  %v8604_v47 = vld [vmem:[%s12975_s1 + $0x370] sm:$0xff]  ;;  %v8606_v54 = vld [vmem:[%s12975_s1 + $0x380] sm:$0xff] }
  0xbc   : > { %780 = vmatprep.mubr.f32.mxu0 %v611_v4  ;;  %9526 = vmatpush3.bf16.msra.mxu0 %v9523_v58  ;;  %v617_v58 = vld [vmem:[%s10419_s11 + $0x54] sm:$0xff]  ;;  %v490_v4 = vld [vmem:[%s10419_s11 + $0x9] sm:$0xff]  ;;  %v497_v53 = vld [vmem:[%s10419_s11 + $0x41] sm:$0xff] }
  0xbd   : > { %8980 = vmatmul.mubr.f32.gmra.mrb[18].mxu1 %v652_v7  ;;  %9528 = vmatprep.subr.bf16.mxu0 %v9527_v5  ;;  %v594_v7 = vld [vmem:[%s10419_s11 + $0x5b] sm:$0xff]  ;;  %v498_v61 = vld [vmem:[%s10419_s11 + $0x49] sm:$0xff] }
  0xbe   : > { %9500 = vmatpush1.bf16.msra.mxu1 %v9499_v6  ;;  %8982 = vmatprep.mubr.f32.mxu1 %v653_v12  ;;  %v8593_v6 = vld [vmem:[%s12975_s1 + $0x318] sm:$0xff]  ;;  %v8594_v12 = vld [vmem:[%s12975_s1 + $0x320] sm:$0xff]  ;;  %v8608_v62 = vld [vmem:[%s12975_s1 + $0x390] sm:$0xff] }
  0xbf   : > { %781 = vmatmul.mubr.f32.gmra.mrb[4].mxu0 %v587_v13  ;;  %9501 = vmatprep.subr.bf16.mxu1 %v12985_v0  ;;  %v8595_v13 = vld [vmem:[%s12975_s1 + $0x328] sm:$0xff] }
  0xc0   : > { %785 = vmatprep.mubr.f32.mxu0 %v612_v14  ;;  %9530 = vmatpush3.bf16.msra.mxu0 %v9527_v5  ;;  %v8592_v5 = vld [vmem:[%s12975_s1 + $0x310] sm:$0xff] }
  0xc1   : > { %8983 = vmatmul.mubr.f32.gmra.mrb[20].mxu1 %v654_v17  ;;  %9532 = vmatprep.subr.bf16.mxu0 %v9531_v15  ;;  %v9555_v10 = vpack.c.bf16 %v8593_v6, %v8592_v5  ;;  %v595_v14 = vld [vmem:[%s10419_s11 + $0x63] sm:$0xff]  ;;  %v9558_v17 = vpack.c.bf16 %v8595_v13, %v8594_v12  ;;  %v499_v5 = vld [vmem:[%s10419_s11 + $0x51] sm:$0xff]  ;;  %v500_v12 = vld [vmem:[%s10419_s11 + $0x59] sm:$0xff] }
  0xc2   : > { %9503 = vmatpush1.bf16.msra.mxu1 %v9502_v16  ;;  %8985 = vmatprep.mubr.f32.mxu1 %v655_v22  ;;  %v467_v16 = vld [vmem:[%s10419_s11 + $0x10] sm:$0xff] }
  0xc3   : > { %786 = vmatmul.mubr.f32.gmra.mrb[6].mxu0 %v588_v23  ;;  %9504 = vmatprep.subr.bf16.mxu1 %v12985_v0  ;;  %v621_v22 = vld [vmem:[%s10419_s11 + $0x74] sm:$0xff] }
  0xc4   : > { %790 = vmatprep.mubr.f32.mxu0 %v613_v24  ;;  %9534 = vmatpush3.bf16.msra.mxu0 %v9531_v15  ;;  %v620_v15 = vld [vmem:[%s10419_s11 + $0x6c] sm:$0xff]  ;;  %v468_v23 = vld [vmem:[%s10419_s11 + $0x18] sm:$0xff]  ;;  %v9561_v24 = vpack.c.bf16 %v8597_v20, %v8596_v19  ;;  %v501_v19 = vld [vmem:[%s10419_s11 + $0x61] sm:$0xff] }
  0xc5   : > { %8986 = vmatmul.mubr.f32.gmra.mrb[22].mxu1 %v656_v27  ;;  %9536 = vmatprep.subr.bf16.mxu0 %v9535_v25  ;;  %v8599_v27 = vld [vmem:[%s12975_s1 + $0x348] sm:$0xff]  ;;  %v8610_v6 = vld [vmem:[%s12975_s1 + $0x3a0] sm:$0xff]  ;;  %v8612_v13 = vld [vmem:[%s12975_s1 + $0x3b0] sm:$0xff] }
  0xc6   : > { %9506 = vmatpush1.bf16.msra.mxu1 %v9505_v26  ;;  %1140 = vmatprep.mubr.f32.mxu1 %v489_v32  ;;  %v8598_v26 = vld [vmem:[%s12975_s1 + $0x340] sm:$0xff] }
  0xc7   : > { %791 = vmatmul.mubr.f32.gmra.mrb[8].mxu0 %v589_v33  ;;  %9507 = vmatprep.subr.bf16.mxu1 %v12985_v0  ;;  %v9564_v31 = vpack.c.bf16 %v8599_v27, %v8598_v26  ;;  %v494_v32 = vld [vmem:[%s10419_s11 + $0x29] sm:$0xff] }
  0xc8   : > { %795 = vmatprep.mubr.f32.mxu0 %v614_v34  ;;  %9538 = vmatpush3.bf16.msra.mxu0 %v9535_v25  ;;  %v493_v25 = vld [vmem:[%s10419_s11 + $0x21] sm:$0xff]  ;;  %v502_v26 = vld [vmem:[%s10419_s11 + $0x69] sm:$0xff] }
  0xc9   : > { %9540 = vmatprep.subr.bf16.mxu0 %v9539_v35  ;;  %v8600_v33 = vld [vmem:[%s12975_s1 + $0x350] sm:$0xff]  ;;  %v8601_v34 = vld [vmem:[%s12975_s1 + $0x358] sm:$0xff]  ;;  %v8614_v20 = vld [vmem:[%s12975_s1 + $0x3c0] sm:$0xff] }
  0xca   : > { %9509 = vmatpush1.bf16.msra.mxu1 %v9508_v36  ;;  %v623_v36 = vld [vmem:[%s10419_s11 + $0x84] sm:$0xff]  ;;  %v9567_v38 = vpack.c.bf16 %v8601_v34, %v8600_v33  ;;  %v503_v33 = vld [vmem:[%s10419_s11 + $0x71] sm:$0xff] }
  0xcb   : > { %796 = vmatmul.mubr.f32.gmra.mrb[10].mxu0 %v590_v41  ;;  %9510 = vmatprep.subr.bf16.mxu1 %v12985_v0  ;;  %v8603_v41 = vld [vmem:[%s12975_s1 + $0x368] sm:$0xff]  ;;  %v8616_v27 = vld [vmem:[%s12975_s1 + $0x3d0] sm:$0xff]  ;;  %v8618_v34 = vld [vmem:[%s12975_s1 + $0x3e0] sm:$0xff] }
  0xcc   : > { %800 = vmatprep.mubr.f32.mxu0 %v615_v42  ;;  %9542 = vmatpush3.bf16.msra.mxu0 %v9539_v35  ;;  %v598_v35 = vld [vmem:[%s10419_s11 + $0x7b] sm:$0xff]  ;;  %v599_v42 = vld [vmem:[%s10419_s11 + $0x83] sm:$0xff]  ;;  %v9570_v45 = vpack.c.bf16 %v8603_v41, %v8602_v40 }
  0xcd   : > { %9544 = vmatprep.subr.bf16.mxu0 %v9543_v43  ;;  %v504_v41 = vld [vmem:[%s10419_s11 + $0x79] sm:$0xff] }
  0xce   : > { %9512 = vmatpush1.bf16.msra.mxu1 %v9511_v44  ;;  %v10813_v44 = vld [vmem:[%s10419_s11 + $0x30] sm:$0xff] }
  0xcf   : > { %801 = vmatmul.mubr.f32.gmra.mrb[12].mxu0 %v591_v49  ;;  %9513 = vmatprep.subr.bf16.mxu1 %v12985_v0  ;;  %v600_v49 = vld [vmem:[%s10419_s11 + $0x8b] sm:$0xff] }
  0xd0   : > { %805 = vmatprep.mubr.f32.mxu0 %v616_v50  ;;  %9546 = vmatpush3.bf16.msra.mxu0 %v9543_v43  ;;  %v624_v43 = vld [vmem:[%s10419_s11 + $0x8c] sm:$0xff]  ;;  %v625_v50 = vld [vmem:[%s10419_s11 + $0x94] sm:$0xff] }
  0xd1   : > { %9548 = vmatprep.subr.bf16.mxu0 %v9547_v51 }
  0xd2   : > { %9515 = vmatpush1.bf16.msra.mxu1 %v9514_v52  ;;  %v9573_v52 = vpack.c.bf16 %v8605_v48, %v8604_v47  ;;  %v10939_v47 = vld [vmem:[%s10419_s11 + $0x78] sm:$0xff]  ;;  %v8624_v48 = vld [vmem:[%s12975_s1 + $0x410] sm:$0xff] }
  0xd3   : > { %806 = vmatmul.mubr.f32.gmra.mrb[14].mxu0 %v592_v57  ;;  %9516 = vmatprep.subr.bf16.mxu1 %v12985_v0  ;;  %v626_v57 = vld [vmem:[%s10419_s11 + $0x9c] sm:$0xff] }
  0xd4   : > { %810 = vmatprep.mubr.f32.mxu0 %v617_v58  ;;  %9550 = vmatpush3.bf16.msra.mxu0 %v9547_v51  ;;  %v10827_v51 = vld [vmem:[%s10419_s11 + $0x38] sm:$0xff]  ;;  %v10841_v58 = vld [vmem:[%s10419_s11 + $0x40] sm:$0xff] }
  0xd5   : > { %9600 = vmatprep.subr.bf16.mxu0 %v10731_v59 }
  0xd6   : > { %9518 = vmatpush1.bf16.msra.mxu1 %v9517_v60  ;;  %v9576_v60 = vpack.c.bf16 %v8607_v55, %v8606_v54  ;;  %v515_v54 = vld [vmem:[%s10419_s11 + $0x12] sm:$0xff] }
  0xd7   : > { %811 = vmatmul.mubr.f32.gmra.mrb[16].mxu0 %v593_v63  ;;  %9551 = vmatprep.subr.bf16.mxu1 %v12985_v0  ;;  %v8609_v63 = vld [vmem:[%s12975_s1 + $0x398] sm:$0xff] }
  0xd8   : > { %815 = vmatprep.mubr.f32.mxu0 %v618_v1  ;;  %v602_v1 = vld [vmem:[%s10419_s11 + $0x9b] sm:$0xff] }
  0xd9   : > { %1141 = vmatmul.mubr.f32.vlgmr.msra.gmra.mrb[24].mxu1 %v465_v2  ;;  %v627_v2 = vld [vmem:[%s10419_s11 + $0xa4] sm:$0xff] }
  0xda   : > { %1145 = vmatprep.mubr.f32.mxu1 %v490_v4  ;;  %9553 = vmatpush1.bf16.msra.mxu1 %v9552_v3  ;;  %v10855_v3 = vld [vmem:[%s10419_s11 + $0x48] sm:$0xff]  ;;  %v9579_v4 = vpack.c.bf16 %v8609_v63, %v8608_v62  ;;  %v516_v62 = vld [vmem:[%s10419_s11 + $0x1a] sm:$0xff] }
  0xdb   : > { %816 = vmatmul.mubr.f32.gmra.mrb[18].mxu0 %v594_v7  ;;  %9554 = vmatprep.subr.bf16.mxu1 %v12985_v0  ;;  %v8611_v7 = vld [vmem:[%s12975_s1 + $0x3a8] sm:$0xff] }
  0xdc   : > { %820 = vmatprep.mubr.f32.mxu0 %v619_v8  ;;  %v603_v8 = vld [vmem:[%s10419_s11 + $0xa3] sm:$0xff] }
  0xdd   : > { %1146 = vmatmul.mubr.f32.gmra.mrb[26].mxu1 %v466_v9  ;;  %v628_v9 = vld [vmem:[%s10419_s11 + $0xac] sm:$0xff]  ;;  %v517_v63 = vld [vmem:[%s10419_s11 + $0x22] sm:$0xff] }
  0xde   : > { %1150 = vmatprep.mubr.f32.mxu1 %v491_v11  ;;  %9556 = vmatpush1.bf16.msra.mxu1 %v9555_v10  ;;  %v10869_v10 = vld [vmem:[%s10419_s11 + $0x50] sm:$0xff]  ;;  %v9582_v11 = vpack.c.bf16 %v8611_v7, %v8610_v6 }
  0xdf   : > { %821 = vmatmul.mubr.f32.gmra.mrb[20].mxu0 %v595_v14  ;;  %9557 = vmatprep.subr.bf16.mxu1 %v12985_v0  ;;  %v8613_v14 = vld [vmem:[%s12975_s1 + $0x3b8] sm:$0xff] }
  0xe0   : > { %825 = vmatprep.mubr.f32.mxu0 %v620_v15  ;;  %v604_v15 = vld [vmem:[%s10419_s11 + $0xab] sm:$0xff] }
  0xe1   : > { %1151 = vmatmul.mubr.f32.gmra.mrb[28].mxu1 %v467_v16  ;;  %v629_v16 = vld [vmem:[%s10419_s11 + $0xb4] sm:$0xff]  ;;  %v518_v6 = vld [vmem:[%s10419_s11 + $0x2a] sm:$0xff] }
  0xe2   : > { %1155 = vmatprep.mubr.f32.mxu1 %v492_v18  ;;  %9559 = vmatpush1.bf16.msra.mxu1 %v9558_v17  ;;  %v10883_v17 = vld [vmem:[%s10419_s11 + $0x58] sm:$0xff]  ;;  %v9585_v18 = vpack.c.bf16 %v8613_v14, %v8612_v13 }
  0xe3   : > { %826 = vmatmul.mubr.f32.gmra.mrb[22].mxu0 %v596_v21  ;;  %9560 = vmatprep.subr.bf16.mxu1 %v12985_v0  ;;  %v8615_v21 = vld [vmem:[%s12975_s1 + $0x3c8] sm:$0xff] }
  0xe4   : > { %830 = vmatprep.mubr.f32.mxu0 %v621_v22  ;;  %v605_v22 = vld [vmem:[%s10419_s11 + $0xb3] sm:$0xff] }
  0xe5   : > { %1156 = vmatmul.mubr.f32.gmra.mrb[30].mxu1 %v468_v23  ;;  %v630_v23 = vld [vmem:[%s10419_s11 + $0xbc] sm:$0xff]  ;;  %v519_v7 = vld [vmem:[%s10419_s11 + $0x32] sm:$0xff] }
  0xe6   : > { %1160 = vmatprep.mubr.f32.mxu1 %v493_v25  ;;  %9562 = vmatpush1.bf16.msra.mxu1 %v9561_v24  ;;  %v10897_v24 = vld [vmem:[%s10419_s11 + $0x60] sm:$0xff]  ;;  %v9588_v25 = vpack.c.bf16 %v8615_v21, %v8614_v20  ;;  %v8633_v20 = vld [vmem:[%s12975_s1 + $0x458] sm:$0xff] }
  0xe7   : > { %831 = vmatmul.mubr.f32.gmra.mrb[24].mxu0 %v597_v28  ;;  %9563 = vmatprep.subr.bf16.mxu1 %v12985_v0  ;;  %v8617_v28 = vld [vmem:[%s12975_s1 + $0x3d8] sm:$0xff] }
  0xe8   : > { %835 = vmatprep.mubr.f32.mxu0 %v622_v29  ;;  %v606_v29 = vld [vmem:[%s10419_s11 + $0xbb] sm:$0xff] }
  0xe9   : > { %1161 = vmatmul.mubr.f32.gmra.mrb[32].mxu1 %v469_v30  ;;  %v631_v30 = vld [vmem:[%s10419_s11 + $0xc4] sm:$0xff]  ;;  %v508_v13 = vld [vmem:[%s10419_s11 + $0x99] sm:$0xff] }
  0xea   : > { %1165 = vmatprep.mubr.f32.mxu1 %v494_v32  ;;  %9565 = vmatpush1.bf16.msra.mxu1 %v9564_v31  ;;  %v10911_v31 = vld [vmem:[%s10419_s11 + $0x68] sm:$0xff]  ;;  %v9591_v32 = vpack.c.bf16 %v8617_v28, %v8616_v27  ;;  %v520_v14 = vld [vmem:[%s10419_s11 + $0x3a] sm:$0xff] }
  0xeb   : > { %836 = vmatmul.mubr.f32.gmra.mrb[26].mxu0 %v598_v35  ;;  %9566 = vmatprep.subr.bf16.mxu1 %v12985_v0  ;;  %v8619_v35 = vld [vmem:[%s12975_s1 + $0x3e8] sm:$0xff]  ;;  %v8634_v27 = vld [vmem:[%s12975_s1 + $0x460] sm:$0xff] }
  0xec   : > { %840 = vmatprep.mubr.f32.mxu0 %v623_v36  ;;  %v607_v36 = vld [vmem:[%s10419_s11 + $0xc3] sm:$0xff]  ;;  %v9594_v40 = vpack.c.bf16 %v8619_v35, %v8618_v34 }
  0xed   : > { %1166 = vmatmul.mubr.f32.gmra.mrb[34].mxu1 %v10799_v37  ;;  %v509_v21 = vld [vmem:[%s10419_s11 + $0xa1] sm:$0xff] }
  0xee   : > { %1170 = vmatprep.mubr.f32.mxu1 %v495_v39  ;;  %9568 = vmatpush1.bf16.msra.mxu1 %v9567_v38  ;;  %v632_v38 = vld [vmem:[%s10419_s11 + $0xcc] sm:$0x3f] }
  0xef   : > { %841 = vmatmul.mubr.f32.gmra.mrb[28].mxu0 %v599_v42  ;;  %9569 = vmatprep.subr.bf16.mxu1 %v12985_v0  ;;  %v10925_v39 = vld [vmem:[%s10419_s11 + $0x70] sm:$0xff]  ;;  %v8635_v28 = vld [vmem:[%s12975_s1 + $0x468] sm:$0xff] }
  0xf0   : > { %845 = vmatprep.mubr.f32.mxu0 %v624_v43  ;;  %v8620_v42 = vld [vmem:[%s12975_s1 + $0x3f0] sm:$0xff]  ;;  %v8621_v43 = vld [vmem:[%s12975_s1 + $0x3f8] sm:$0xff] }
  0xf1   : > { %1171 = vmatmul.mubr.f32.gmra.mrb[36].mxu1 %v10813_v44  ;;  %v11020_v34 = vld [vmem:[%s10419_s11 + $0xa8] sm:$0xff]  ;;  %v8636_v35 = vld [vmem:[%s12975_s1 + $0x470] sm:$0xff] }
  0xf2   : > { %1175 = vmatprep.mubr.f32.mxu1 %v496_v46  ;;  %9571 = vmatpush1.bf16.msra.mxu1 %v9570_v45  ;;  %v608_v45 = vld [vmem:[%s10419_s11 + $0xcb] sm:$0x3f]  ;;  %v513_v46 = vld [vmem:[%s10419_s11 + $0x2] sm:$0xff] }
  0xf3   : > { %846 = vmatmul.mubr.f32.gmra.mrb[30].mxu0 %v600_v49  ;;  %9572 = vmatprep.subr.bf16.mxu1 %v12985_v0  ;;  %v8625_v49 = vld [vmem:[%s12975_s1 + $0x418] sm:$0xff] }
  0xf4   : > { %850 = vmatprep.mubr.f32.mxu0 %v625_v50  ;;  %v9597_v50 = vpack.c.bf16 %v8621_v43, %v8620_v42  ;;  %v9603_v55 = vpack.c.bf16 %v8625_v49, %v8624_v48  ;;  %v11033_v43 = vld [vmem:[%s10419_s11 + $0xb0] sm:$0xff]  ;;  %v529_v48 = vld [vmem:[%s10419_s11 + $0x82] sm:$0xff]  ;;  %v488_v49 = vld [vmem:[%s10419_s11 + $0xb8] sm:$0x3f] }
  0xf5   : > { %1176 = vmatmul.mubr.f32.gmra.mrb[38].mxu1 %v10827_v51 }
  0xf6   : > { %1180 = vmatprep.mubr.f32.mxu1 %v497_v53  ;;  %9574 = vmatpush1.bf16.msra.mxu1 %v9573_v52  ;;  %v505_v52 = vld [vmem:[%s10419_s11 + $0x81] sm:$0xff]  ;;  %v514_v53 = vld [vmem:[%s10419_s11 + $0xa] sm:$0xff] }
  0xf7   : > { %851 = vmatmul.mubr.f32.gmra.mrb[32].mxu0 %v601_v56  ;;  %9575 = vmatprep.subr.bf16.mxu1 %v12985_v0  ;;  %v10953_v56 = vld [vmem:[%s10419_s11 + $0x80] sm:$0xff] }
  0xf8   : > { %855 = vmatprep.mubr.f32.mxu0 %v626_v57  ;;  %v8626_v57 = vld [vmem:[%s12975_s1 + $0x420] sm:$0xff] }
  0xf9   : > { %1181 = vmatmul.mubr.f32.gmra.mrb[40].mxu1 %v10841_v58 }
  0xfa   : > { %1185 = vmatprep.mubr.f32.mxu1 %v498_v61  ;;  %9577 = vmatpush1.bf16.msra.mxu1 %v9576_v60  ;;  %v8627_v60 = vld [vmem:[%s12975_s1 + $0x428] sm:$0xff] }
  0xfb   : > { %856 = vmatmul.mubr.f32.gmra.mrb[34].mxu0 %v602_v1  ;;  %9578 = vmatprep.subr.bf16.mxu1 %v12985_v0  ;;  %v506_v61 = vld [vmem:[%s10419_s11 + $0x89] sm:$0xff]  ;;  %v9607_v1 = vpack.c.bf16 %v8627_v60, %v8626_v57  ;;  %v532_v57 = vld [vmem:[%s10419_s11 + $0x9a] sm:$0xff] }
  0xfc   : > { %860 = vmatprep.mubr.f32.mxu0 %v627_v2  ;;  %v10968_v2 = vld [vmem:[%s10419_s11 + $0x88] sm:$0xff] }
  0xfd   : > { %1186 = vmatmul.mubr.f32.gmra.mrb[42].mxu1 %v10855_v3  ;;  %v533_v60 = vld [vmem:[%s10419_s11 + $0xa2] sm:$0xff] }
  0xfe   : > { %1190 = vmatprep.mubr.f32.mxu1 %v499_v5  ;;  %9580 = vmatpush1.bf16.msra.mxu1 %v9579_v4  ;;  %v8628_v4 = vld [vmem:[%s12975_s1 + $0x430] sm:$0xff] }
  0xff   : > { %861 = vmatmul.mubr.f32.gmra.mrb[36].mxu0 %v603_v8  ;;  %9581 = vmatprep.subr.bf16.mxu1 %v12985_v0  ;;  %v507_v5 = vld [vmem:[%s10419_s11 + $0x91] sm:$0xff] }
 0x100   : > { %865 = vmatprep.mubr.f32.mxu0 %v628_v9  ;;  %v10981_v9 = vld [vmem:[%s10419_s11 + $0x90] sm:$0xff] }
 0x101   : > { %1191 = vmatmul.mubr.f32.gmra.mrb[44].mxu1 %v10869_v10 }
 0x102   : > { %1195 = vmatprep.mubr.f32.mxu1 %v500_v12  ;;  %9583 = vmatpush1.bf16.msra.mxu1 %v9582_v11  ;;  %v8630_v11 = vld [vmem:[%s12975_s1 + $0x440] sm:$0xff]  ;;  %v8631_v12 = vld [vmem:[%s12975_s1 + $0x448] sm:$0xff] }
 0x103   : > { %866 = vmatmul.mubr.f32.gmra.mrb[38].mxu0 %v604_v15  ;;  %9584 = vmatprep.subr.bf16.mxu1 %v12985_v0  ;;  %v521_v15 = vld [vmem:[%s10419_s11 + $0x42] sm:$0xff] }
 0x104   : > { %870 = vmatprep.mubr.f32.mxu0 %v629_v16  ;;  %v9615_v16 = vpack.c.bf16 %v8631_v12, %v8630_v11  ;;  %v1475_v11 = vld [vmem:[%s10419_s11 + $0x4f] sm:$0xff] }
 0x105   : > { %1196 = vmatmul.mubr.f32.gmra.mrb[46].mxu1 %v10883_v17  ;;  %v1451_v12 = vld [vmem:[%s10419_s11 + $0x4e] sm:$0xff] }
 0x106   : > { %1200 = vmatprep.mubr.f32.mxu1 %v501_v19  ;;  %9586 = vmatpush1.bf16.msra.mxu1 %v9585_v18  ;;  %v10994_v18 = vld [vmem:[%s10419_s11 + $0x98] sm:$0xff]  ;;  %v8632_v19 = vld [vmem:[%s12975_s1 + $0x450] sm:$0xff] }
 0x107   : > { %871 = vmatmul.mubr.f32.gmra.mrb[40].mxu0 %v605_v22  ;;  %9587 = vmatprep.subr.bf16.mxu1 %v12985_v0  ;;  %v522_v22 = vld [vmem:[%s10419_s11 + $0x4a] sm:$0xff] }
 0x108   : > { %875 = vmatprep.mubr.f32.mxu0 %v630_v23  ;;  %v523_v23 = vld [vmem:[%s10419_s11 + $0x52] sm:$0xff] }
 0x109   : > { %1201 = vmatmul.mubr.f32.gmra.mrb[48].mxu1 %v10897_v24 }
 0x10a   : > { %1205 = vmatprep.mubr.f32.mxu1 %v502_v26  ;;  %9589 = vmatpush1.bf16.msra.mxu1 %v9588_v25  ;;  %v9619_v25 = vpack.c.bf16 %v8633_v20, %v8632_v19  ;;  %v11007_v26 = vld [vmem:[%s10419_s11 + $0xa0] sm:$0xff]  ;;  %v1484_v19 = vld [vmem:[%s10419_s11 + $0x97] sm:$0xff] }
 0x10b   : > { %876 = vmatmul.mubr.f32.gmra.mrb[42].mxu0 %v606_v29  ;;  %9590 = vmatprep.subr.bf16.mxu1 %v12985_v0  ;;  %v510_v29 = vld [vmem:[%s10419_s11 + $0xa9] sm:$0xff] }
 0x10c   : > { %880 = vmatprep.mubr.f32.mxu0 %v631_v30  ;;  %v524_v30 = vld [vmem:[%s10419_s11 + $0x5a] sm:$0xff] }
 0x10d   : > { %1206 = vmatmul.mubr.f32.gmra.mrb[50].mxu1 %v10911_v31 }
 0x10e   : > { %1210 = vmatprep.mubr.f32.mxu1 %v503_v33  ;;  %9592 = vmatpush1.bf16.msra.mxu1 %v9591_v32  ;;  %v525_v32 = vld [vmem:[%s10419_s11 + $0x62] sm:$0xff]  ;;  %v9623_v33 = vpack.c.bf16 %v8635_v28, %v8634_v27 }
 0x10f   : > { %881 = vmatmul.mubr.f32.gmra.mrb[44].mxu0 %v607_v36  ;;  %9593 = vmatprep.subr.bf16.mxu1 %v12985_v0  ;;  %v8637_v36 = vld [vmem:[%s12975_s1 + $0x478] sm:$0xff]  ;;  %v1517_v28 = vld [vmem:[%s10419_s11 + $0xe0] sm:$0x3f] }
 0x110   : > { %885 = vmatprep.mubr.f32.mxu0 %v632_v38  ;;  %v511_v38 = vld [vmem:[%s10419_s11 + $0xb1] sm:$0xff]  ;;  %v9627_v42 = vpack.c.bf16 %v8637_v36, %v8636_v35  ;;  %v1462_v35 = vld [vmem:[%s10419_s11 + $0xa6] sm:$0xff] }
 0x111   : > { %1211 = vmatmul.mubr.f32.gmra.mrb[52].mxu1 %v10925_v39  ;;  %v1487_v36 = vld [vmem:[%s10419_s11 + $0xaf] sm:$0xff] }
 0x112   : > { %1215 = vmatprep.mubr.f32.mxu1 %v504_v41  ;;  %9595 = vmatpush1.bf16.msra.mxu1 %v9594_v40  ;;  %v526_v40 = vld [vmem:[%s10419_s11 + $0x6a] sm:$0xff]  ;;  %v527_v41 = vld [vmem:[%s10419_s11 + $0x72] sm:$0xff] }
 0x113   : > { %886 = vmatmul.mubr.f32.gmra.mrb[46].mxu0 %v608_v45  ;;  %9596 = vmatprep.subr.bf16.mxu1 %v12985_v0  ;;  %v512_v45 = vld [vmem:[%s10419_s11 + $0xb9] sm:$0x3f] }
 0x114   : > { %9020 = vmatprep.mubr.f32.mxu0 %v513_v46  ;;  %v528_v46 = vld [vmem:[%s10419_s11 + $0x7a] sm:$0xff] }
 0x115   : > { %1216 = vmatmul.mubr.f32.gmra.mrb[54].mxu1 %v10939_v47 }
 0x116   : > { %1220 = vmatprep.mubr.f32.mxu1 %v505_v52  ;;  %9598 = vmatpush1.bf16.msra.mxu1 %v9597_v50  ;;  %v1470_v50 = vld [vmem:[%s10419_s11 + $0x27] sm:$0xff] }
 0x117   : > { %9021 = vmatmul.mubr.f32.vlgmr.msra.gmra.mrb[48].mxu0 %v514_v53  ;;  %9679 = vmatprep.subr.bf16.mxu1 %v12985_v0  ;;  %v530_v52 = vld [vmem:[%s10419_s11 + $0x8a] sm:$0xff]  ;;  %v531_v53 = vld [vmem:[%s10419_s11 + $0x92] sm:$0xff] }
 0x118   : > { %9602 = vmatpush3.bf16.msra.mxu0 %v10731_v59  ;;  %9023 = vmatprep.mubr.f32.mxu0 %v515_v54  ;;  %v8629_v59 = vld [vmem:[%s12975_s1 + $0x438] sm:$0xff] }
 0x119   : > { %1221 = vmatmul.mubr.f32.gmra.mrb[56].mxu1 %v10953_v56  ;;  %9604 = vmatprep.subr.bf16.mxu0 %v9603_v55  ;;  %v9611_v8 = vpack.c.bf16 %v8629_v59, %v8628_v4  ;;  %v1446_v54 = vld [vmem:[%s10419_s11 + $0x26] sm:$0xff]  ;;  %v1448_v4 = vld [vmem:[%s10419_s11 + $0x36] sm:$0xff] }
 0x11a   : > { %1225 = vmatprep.mubr.f32.mxu1 %v506_v61  ;;  %v1447_v61 = vld [vmem:[%s10419_s11 + $0x2e] sm:$0xff]  ;;  %v1473_v59 = vld [vmem:[%s10419_s11 + $0x3f] sm:$0xff] }
 0x11b   : > { %9024 = vmatmul.mubr.f32.gmra.mrb[50].mxu0 %v516_v62  ;;  %v1472_v62 = vld [vmem:[%s10419_s11 + $0x37] sm:$0xff] }
 0x11c   : > { %9026 = vmatprep.mubr.f32.mxu0 %v517_v63  ;;  %9606 = vmatpush3.bf16.msra.mxu0 %v9603_v55  ;;  %v1471_v55 = vld [vmem:[%s10419_s11 + $0x2f] sm:$0xff] }
 0x11d   : > { %1226 = vmatmul.mubr.f32.gmra.mrb[58].mxu1 %v10968_v2  ;;  %9608 = vmatprep.subr.bf16.mxu0 %v9607_v1  ;;  %v534_v63 = vld [vmem:[%s10419_s11 + $0xaa] sm:$0xff] }
 0x11e   : > { %1230 = vmatprep.mubr.f32.mxu1 %v507_v5  ;;  %v536_v5 = vld [vmem:[%s10419_s11 + $0xba] sm:$0x3f] }
 0x11f   : > { %9027 = vmatmul.mubr.f32.gmra.mrb[52].mxu0 %v518_v6  ;;  %v1449_v6 = vld [vmem:[%s10419_s11 + $0x3e] sm:$0xff] }
 0x120   : > { %9029 = vmatprep.mubr.f32.mxu0 %v519_v7  ;;  %9610 = vmatpush3.bf16.msra.mxu0 %v9607_v1  ;;  %v535_v1 = vld [vmem:[%s10419_s11 + $0xb2] sm:$0xff]  ;;  %v1474_v7 = vld [vmem:[%s10419_s11 + $0x47] sm:$0xff] }
 0x121   : > { %1231 = vmatmul.mubr.f32.gmra.mrb[60].mxu1 %v10981_v9  ;;  %9612 = vmatprep.subr.bf16.mxu0 %v9611_v8 }
 0x122   : > { %1235 = vmatprep.mubr.f32.mxu1 %v508_v13  ;;  %v1476_v13 = vld [vmem:[%s10419_s11 + $0x57] sm:$0xff] }
 0x123   : > { %9030 = vmatmul.mubr.f32.gmra.mrb[54].mxu0 %v520_v14  ;;  %v1480_v14 = vld [vmem:[%s10419_s11 + $0x77] sm:$0xff] }
 0x124   : > { %9032 = vmatprep.mubr.f32.mxu0 %v521_v15  ;;  %9614 = vmatpush3.bf16.msra.mxu0 %v9611_v8  ;;  %v1450_v8 = vld [vmem:[%s10419_s11 + $0x46] sm:$0xff] }
 0x125   : > { %1236 = vmatmul.mubr.f32.gmra.mrb[62].mxu1 %v10994_v18  ;;  %9616 = vmatprep.subr.bf16.mxu0 %v9615_v16  ;;  %v1513_v15 = vld [vmem:[%s10419_s11 + $0xc0] sm:$0xff] }
 0x126   : > { %1240 = vmatprep.mubr.f32.mxu1 %v509_v21  ;;  %v1515_v21 = vld [vmem:[%s10419_s11 + $0xd0] sm:$0xff] }
 0x127   : > { %9033 = vmatmul.mubr.f32.gmra.mrb[56].mxu0 %v522_v22 }
 0x128   : > { %9035 = vmatprep.mubr.f32.mxu0 %v523_v23  ;;  %9618 = vmatpush3.bf16.msra.mxu0 %v9615_v16  ;;  %v1514_v16 = vld [vmem:[%s10419_s11 + $0xc8] sm:$0xff]  ;;  %v1516_v23 = vld [vmem:[%s10419_s11 + $0xd8] sm:$0xff] }
 0x129   : > { %1241 = vmatmul.mubr.f32.gmra.mrb[64].mxu1 %v11007_v26  ;;  %9620 = vmatprep.subr.bf16.mxu0 %v9619_v25 }
 0x12a   : > { %1245 = vmatprep.mubr.f32.mxu1 %v510_v29 }
 0x12b   : > { %9036 = vmatmul.mubr.f32.gmra.mrb[58].mxu0 %v524_v30  ;;  %v1461_v30 = vld [vmem:[%s10419_s11 + $0x9e] sm:$0xff] }
 0x12c   : > { %9038 = vmatprep.mubr.f32.mxu0 %v525_v32  ;;  %9622 = vmatpush3.bf16.msra.mxu0 %v9619_v25  ;;  %v1460_v25 = vld [vmem:[%s10419_s11 + $0x96] sm:$0xff]  ;;  %v1486_v32 = vld [vmem:[%s10419_s11 + $0xa7] sm:$0xff] }
 0x12d   : > { %1246 = vmatmul.mubr.f32.gmra.mrb[66].mxu1 %v11020_v34  ;;  %9624 = vmatprep.subr.bf16.mxu0 %v9623_v33 }
 0x12e   : > { %1250 = vmatprep.mubr.f32.mxu1 %v511_v38 }
 0x12f   : > { %9039 = vmatmul.mubr.f32.gmra.mrb[60].mxu0 %v526_v40 }
 0x130   : > { %9041 = vmatprep.mubr.f32.mxu0 %v527_v41  ;;  %9626 = vmatpush3.bf16.msra.mxu0 %v9623_v33  ;;  %v1463_v41 = vld [vmem:[%s10419_s11 + $0xae] sm:$0xff] }
 0x131   : > { %1251 = vmatmul.mubr.f32.gmra.mrb[68].mxu1 %v11033_v43  ;;  %9628 = vmatprep.subr.bf16.mxu0 %v9627_v42 }
 0x132   : > { %1255 = vmatprep.mubr.f32.mxu1 %v512_v45 }
 0x133   : > { %9042 = vmatmul.mubr.f32.gmra.mrb[62].mxu0 %v528_v46  ;;  %v1464_v46 = vld [vmem:[%s10419_s11 + $0xb6] sm:$0xff] }
 0x134   : > { %9044 = vmatprep.mubr.f32.mxu0 %v529_v48  ;;  %9630 = vmatpush3.bf16.msra.mxu0 %v9627_v42  ;;  %v1488_v42 = vld [vmem:[%s10419_s11 + $0xb7] sm:$0xff]  ;;  %v1489_v48 = vld [vmem:[%s10419_s11 + $0xbf] sm:$0xff] }
 0x135   : > { %1256 = vmatmul.mubr.f32.gmra.mrb[70].mxu1 %v488_v49  ;;  %9631 = vmatprep.subr.bf16.mxu0 %v12985_v0 }
 0x136   : > { %1631 = vmatprep.mubr.f32.mxu1 %v1470_v50 }
 0x137   : > { %9045 = vmatmul.mubr.f32.gmra.mrb[64].mxu0 %v530_v52  ;;  %v1465_v52 = vld [vmem:[%s10419_s11 + $0xbe] sm:$0xff] }
 0x138   : > { %9047 = vmatprep.mubr.f32.mxu0 %v531_v53  ;;  %v1490_v53 = vld [vmem:[%s10419_s11 + $0xc7] sm:$0xff] }
 0x139   : > { %1632 = vmatmul.mubr.f32.vlgmr.msra.gmra.mrb[72].mxu1 %v1446_v54 }
 0x13a   : > { %1636 = vmatprep.mubr.f32.mxu1 %v1471_v55 }
 0x13b   : > { %9048 = vmatmul.mubr.f32.gmra.mrb[66].mxu0 %v532_v57  ;;  %v1466_v57 = vld [vmem:[%s10419_s11 + $0xc6] sm:$0xff] }
 0x13c   : > { %9050 = vmatprep.mubr.f32.mxu0 %v533_v60  ;;  %v1491_v60 = vld [vmem:[%s10419_s11 + $0xcf] sm:$0xff] }
 0x13d   : > { %1637 = vmatmul.mubr.f32.gmra.mrb[74].mxu1 %v1447_v61 }
 0x13e   : > { %1641 = vmatprep.mubr.f32.mxu1 %v1472_v62 }
 0x13f   : > { %9051 = vmatmul.mubr.f32.gmra.mrb[68].mxu0 %v534_v63 }
 0x140   : > { %9053 = vmatprep.mubr.f32.mxu0 %v535_v1  ;;  %v1467_v1 = vld [vmem:[%s10419_s11 + $0xce] sm:$0xff] }
 0x141   : > { %1642 = vmatmul.mubr.f32.gmra.mrb[76].mxu1 %v1448_v4 }
 0x142   : > { %1646 = vmatprep.mubr.f32.mxu1 %v1473_v59 }
 0x143   : > { %9054 = vmatmul.mubr.f32.gmra.mrb[70].mxu0 %v536_v5  ;;  %v1492_v5 = vld [vmem:[%s10419_s11 + $0xd7] sm:$0xff] }
 0x144   : > { %9088 = vmatprep.mubr.f32.mxu0 %v10799_v37  ;;  %v1452_v37 = vld [vmem:[%s10419_s11 + $0x56] sm:$0xff] }
 0x145   : > { %1647 = vmatmul.mubr.f32.gmra.mrb[78].mxu1 %v1449_v6 }
 0x146   : > { %1651 = vmatprep.mubr.f32.mxu1 %v1474_v7  ;;  %v7185_v7 = vld [vmem:[#allocation5 + $0x280] sm:$0xff] }
 0x147   : > { %9089 = vmatmul.mubr.f32.vlgmr.msra.gmra.mrb[72].mxu0 %v10813_v44  ;;  %v1477_v44 = vld [vmem:[%s10419_s11 + $0x5f] sm:$0xff] }
 0x148   : > { %9091 = vmatprep.mubr.f32.mxu0 %v10827_v51  ;;  %v1453_v51 = vld [vmem:[%s10419_s11 + $0x5e] sm:$0xff] }
 0x149   : > { %1652 = vmatmul.mubr.f32.gmra.mrb[80].mxu1 %v1450_v8  ;;  %v7186_v8 = vld [vmem:[#allocation5 + $0x288] sm:$0xff] }
 0x14a   : > { %1656 = vmatprep.mubr.f32.mxu1 %v1475_v11 }
 0x14b   : > { %9092 = vmatmul.mubr.f32.gmra.mrb[74].mxu0 %v10841_v58  ;;  %v1478_v58 = vld [vmem:[%s10419_s11 + $0x67] sm:$0xff] }
 0x14c   : > { %9094 = vmatprep.mubr.f32.mxu0 %v10855_v3  ;;  %v1454_v3 = vld [vmem:[%s10419_s11 + $0x66] sm:$0xff] }
 0x14d   : > { %1657 = vmatmul.mubr.f32.gmra.mrb[82].mxu1 %v1451_v12  ;;  %v9680_v12 = vpack.c.bf16 %v7186_v8, %v7185_v7 }
 0x14e   : > { %1661 = vmatprep.mubr.f32.mxu1 %v1476_v13 }
 0x14f   : > { %9095 = vmatmul.mubr.f32.gmra.mrb[76].mxu0 %v10869_v10  ;;  %v1479_v10 = vld [vmem:[%s10419_s11 + $0x6f] sm:$0xff]  ;;  %9681 = vmatpush3.bf16.msra.mxu1 %v9680_v12 }
 0x150   : > { %9097 = vmatprep.mubr.f32.mxu0 %v10883_v17  ;;  %v1455_v17 = vld [vmem:[%s10419_s11 + $0x6e] sm:$0xff]  ;;  %9682 = vmatprep.subr.bf16.mxu1 %v12985_v0 }
 0x151   : > { %1662 = vmatmul.mubr.f32.gmra.mrb[84].mxu1 %v1452_v37  ;;  %v1468_v37 = vld [vmem:[%s10419_s11 + $0xd6] sm:$0xff] }
 0x152   : > { %1666 = vmatprep.mubr.f32.mxu1 %v1477_v44 }
 0x153   : > { %9098 = vmatmul.mubr.f32.gmra.mrb[78].mxu0 %v10897_v24  ;;  %v1456_v24 = vld [vmem:[%s10419_s11 + $0x76] sm:$0xff] }
 0x154   : > { %9100 = vmatprep.mubr.f32.mxu0 %v10911_v31  ;;  %v1481_v31 = vld [vmem:[%s10419_s11 + $0x7f] sm:$0xff] }
 0x155   : > { %1667 = vmatmul.mubr.f32.gmra.mrb[86].mxu1 %v1453_v51 }
 0x156   : > { %1671 = vmatprep.mubr.f32.mxu1 %v1478_v58  ;;  %v1493_v58 = vld [vmem:[%s10419_s11 + $0xdf] sm:$0x3f] }
 0x157   : > { %9101 = vmatmul.mubr.f32.gmra.mrb[80].mxu0 %v10925_v39  ;;  %v1457_v39 = vld [vmem:[%s10419_s11 + $0x7e] sm:$0xff] }
 0x158   : > { %9103 = vmatprep.mubr.f32.mxu0 %v10939_v47  ;;  %v1482_v47 = vld [vmem:[%s10419_s11 + $0x87] sm:$0xff] }
 0x159   : > { %1672 = vmatmul.mubr.f32.gmra.mrb[88].mxu1 %v1454_v3 }
 0x15a   : > { %1676 = vmatprep.mubr.f32.mxu1 %v1479_v10 }
 0x15b   : > { %9104 = vmatmul.mubr.f32.gmra.mrb[82].mxu0 %v10953_v56  ;;  %v1512_v56 = vld [vmem:[%s10419_s11 + $0xb8] sm:$0xff] }
 0x15c   : > { %9106 = vmatprep.mubr.f32.mxu0 %v10968_v2  ;;  %v1458_v2 = vld [vmem:[%s10419_s11 + $0x86] sm:$0xff] }
 0x15d   : > { %1677 = vmatmul.mubr.f32.gmra.mrb[90].mxu1 %v1455_v17 }
 0x15e   : > { %1681 = vmatprep.mubr.f32.mxu1 %v1480_v14  ;;  %v1469_v14 = vld [vmem:[%s10419_s11 + $0xde] sm:$0x3f] }
 0x15f   : > { %9107 = vmatmul.mubr.f32.gmra.mrb[84].mxu0 %v10981_v9  ;;  %v1483_v9 = vld [vmem:[%s10419_s11 + $0x8f] sm:$0xff] }
 0x160   : > { %9109 = vmatprep.mubr.f32.mxu0 %v10994_v18  ;;  %v1459_v18 = vld [vmem:[%s10419_s11 + $0x8e] sm:$0xff] }
 0x161   : > { %1682 = vmatmul.mubr.f32.gmra.mrb[92].mxu1 %v1456_v24 }
 0x162   : > { %1686 = vmatprep.mubr.f32.mxu1 %v1481_v31 }
 0x163   : > { %9110 = vmatmul.mubr.f32.gmra.mrb[86].mxu0 %v11007_v26  ;;  %v1485_v26 = vld [vmem:[%s10419_s11 + $0x9f] sm:$0xff]  ;;  %s9864_s11 = smul.u32 38, %s10074_s22 }
 0x164   : > { %9112 = vmatprep.mubr.f32.mxu0 %v11020_v34 }
 0x165   : > { %1687 = vmatmul.mubr.f32.gmra.mrb[94].mxu1 %v1457_v39  ;;  %s8363_s21 = sadd.s32 %s9864_s11, %s8358_s15  ;;  %s9992_s15 = scalar_lea.vmem %s9991_s30, 4864 }
 0x166   : > { %1691 = vmatprep.mubr.f32.mxu1 %v1482_v47 }
 0x167   : > { %9113 = vmatmul.mubr.f32.gmra.mrb[88].mxu0 %v11033_v43 }
 0x168   : > { %9115 = vmatprep.mubr.f32.mxu0 %v1512_v56 }
 0x169   : > { %1692 = vmatmul.mubr.f32.gmra.mrb[96].mxu1 %v1458_v2 }
 0x16a   : > { %1696 = vmatprep.mubr.f32.mxu1 %v1483_v9 }
 0x16b   : > { %9116 = vmatmul.mubr.f32.gmra.mrb[90].mxu0 %v1513_v15 }
 0x16c   : > { %v11098_v20 = vpop.f32.mrb[0].mxu1  ;;  %9118 = vmatprep.mubr.f32.mxu0 %v1514_v16  ;;  %v7187_v16 = vld [vmem:[#allocation5 + $0x290] sm:$0xff] }
 0x16d   : > { %1697 = vmatmul.mubr.f32.gmra.mrb[98].mxu1 %v1459_v18  ;;  %v957_v22 = vpop.f32.mrb[1].mxu1  ;;  %v7188_v18 = vld [vmem:[#allocation5 + $0x298] sm:$0xff] }
 0x16e   : > { %1701 = vmatprep.mubr.f32.mxu1 %v1484_v19 }
 0x16f   : > { %9119 = vmatmul.mubr.f32.gmra.mrb[92].mxu0 %v1515_v21  ;;  %v7153_v21 = vld [vmem:[#allocation5 + $0x180] sm:$0xff] }
 0x170   : > { %v11104_v27 = vpop.f32.mrb[2].mxu1  ;;  %9121 = vmatprep.mubr.f32.mxu0 %v1516_v23 }
 0x171   : > { %1702 = vmatmul.mubr.f32.gmra.mrb[100].mxu1 %v1460_v25  ;;  %v11107_v29 = vpop.f32.mrb[3].mxu1 }
 0x172   : > { %1706 = vmatprep.mubr.f32.mxu1 %v1485_v26 }
 0x173   : > { %9122 = vmatmul.mubr.f32.gmra.mrb[94].mxu0 %v1517_v28 }
 0x174   : > { %v11111_v33 = vpop.f32.mrb[4].mxu1 }
 0x175   : > { %1707 = vmatmul.mubr.f32.gmra.mrb[102].mxu1 %v1461_v30  ;;  %v11113_v34 = vpop.f32.mrb[5].mxu1 }
 0x176   : > { %1711 = vmatprep.mubr.f32.mxu1 %v1486_v32 }
 0x178   : > { %v11117_v38 = vpop.f32.mrb[6].mxu1 }
 0x179   : > { %1712 = vmatmul.mubr.f32.gmra.mrb[104].mxu1 %v1462_v35  ;;  %v11119_v40 = vpop.f32.mrb[7].mxu1 }
 0x17a   : > { %1716 = vmatprep.mubr.f32.mxu1 %v1487_v36 }
 0x17c   : > { %v11123_v43 = vpop.f32.mrb[8].mxu1 }
 0x17d   : > { %1717 = vmatmul.mubr.f32.gmra.mrb[106].mxu1 %v1463_v41  ;;  %v11125_v45 = vpop.f32.mrb[9].mxu1 }
 0x17e   : > { %1721 = vmatprep.mubr.f32.mxu1 %v1488_v42 }
 0x180   : > { %v11129_v49 = vpop.f32.mrb[10].mxu1 }
 0x181   : > { %1722 = vmatmul.mubr.f32.gmra.mrb[108].mxu1 %v1464_v46  ;;  %v11131_v50 = vpop.f32.mrb[11].mxu1 }
 0x182   : > { %1726 = vmatprep.mubr.f32.mxu1 %v1489_v48 }
 0x184   : > { %v11135_v54 = vpop.f32.mrb[12].mxu1 }
 0x185   : > { %1727 = vmatmul.mubr.f32.gmra.mrb[110].mxu1 %v1465_v52  ;;  %v11137_v55 = vpop.f32.mrb[13].mxu1 }
 0x186   : > { %1731 = vmatprep.mubr.f32.mxu1 %v1490_v53 }
 0x188   : > { %v11141_v61 = vpop.f32.mrb[14].mxu1 }
 0x189   : > { %1732 = vmatmul.mubr.f32.gmra.mrb[112].mxu1 %v1466_v57  ;;  %v11143_v62 = vpop.f32.mrb[15].mxu1 }
 0x18a   : > { %v772_v63 = vpop.f32.mrb[0].mxu0  ;;  %1736 = vmatprep.mubr.f32.mxu1 %v1491_v60 }
 0x18b   : > { %v958_v4 = vadd.f32 %v957_v22, %v772_v63  ;;  %v774_v59 = vpop.f32.mrb[1].mxu0  ;;  %v7154_v22 = vld [vmem:[#allocation5 + $0x188] sm:$0xff] }
 0x18c   : > { %v11147_v6 = vpop.f32.mrb[16].mxu1  ;;  %v9632_v25 = vpack.c.bf16 %v7154_v22, %v7153_v21  ;;  %v7155_v59 = vld [vmem:[#allocation5 + $0x190] sm:$0xff] }
 0x18d   : > { %1737 = vmatmul.mubr.f32.gmra.mrb[114].mxu1 %v1467_v1  ;;  %v11149_v11 = vpop.f32.mrb[17].mxu1 }
 0x18e   : > { %v777_v13 = vpop.f32.mrb[2].mxu0  ;;  %1741 = vmatprep.mubr.f32.mxu1 %v1492_v5  ;;  %9633 = vmatpush1.bf16.msra.mxu0 %v9632_v25  ;;  %v7156_v5 = vld [vmem:[#allocation5 + $0x198] sm:$0xff] }
 0x18f   : > { %v963_v44 = vadd.f32 %v11098_v20, %v777_v13  ;;  %v779_v51 = vpop.f32.mrb[3].mxu0  ;;  %v9683_v20 = vpack.c.bf16 %v7188_v18, %v7187_v16  ;;  %9634 = vmatprep.subr.bf16.mxu0 %v12985_v0  ;;  %v9635_v7 = vpack.c.bf16 %v7156_v5, %v7155_v59 }
 0x190   : > { %v11154_v3 = vpop.f32.mrb[18].mxu1 }
 0x191   : > { %1742 = vmatmul.mubr.f32.gmra.mrb[116].mxu1 %v1468_v37  ;;  %v11157_v10 = vpop.f32.mrb[19].mxu1 }
 0x192   : > { %v782_v17 = vpop.f32.mrb[4].mxu0  ;;  %1746 = vmatprep.mubr.f32.mxu1 %v1493_v58  ;;  %9684 = vmatpush3.bf16.msra.mxu1 %v9683_v20 }
 0x193   : > { %v968_v24 = vadd.f32 %v11107_v29, %v782_v17  ;;  %v784_v31 = vpop.f32.mrb[5].mxu0  ;;  %9685 = vmatprep.subr.bf16.mxu1 %v12985_v0  ;;  %9636 = vmatpush1.bf16.msra.mxu0 %v9635_v7 }
 0x194   : > { %v11161_v39 = vpop.f32.mrb[20].mxu1  ;;  %9637 = vmatprep.subr.bf16.mxu0 %v12985_v0 }
 0x195   : > { %1747 = vmatmul.mubr.f32.gmra.mrb[118].mxu1 %v1469_v14  ;;  %v11163_v47 = vpop.f32.mrb[21].mxu1 }
 0x196   : > { %v787_v56 = vpop.f32.mrb[6].mxu0 }
 0x197   : > { %v973_v2 = vadd.f32 %v11104_v27, %v787_v56  ;;  %v789_v9 = vpop.f32.mrb[7].mxu0 }
 0x198   : > { %v11166_v15 = vpop.f32.mrb[22].mxu1 }
 0x199   : > { %v11168_v19 = vpop.f32.mrb[23].mxu1 }
 0x19a   : > { %v792_v23 = vpop.f32.mrb[8].mxu0 }
 0x19b   : > { %v978_v26 = vadd.f32 %v11113_v34, %v792_v23  ;;  %v794_v28 = vpop.f32.mrb[9].mxu0 }
 0x19e   : > { %v797_v27 = vpop.f32.mrb[10].mxu0 }
 0x19f   : > { %v983_v29 = vadd.f32 %v11111_v33, %v797_v27  ;;  %v799_v30 = vpop.f32.mrb[11].mxu0 }
 0x1a2   : > { %v802_v32 = vpop.f32.mrb[12].mxu0 }
 0x1a3   : > { %v988_v35 = vadd.f32 %v11119_v40, %v802_v32  ;;  %v804_v36 = vpop.f32.mrb[13].mxu0 }
 0x1a6   : > { %v807_v41 = vpop.f32.mrb[14].mxu0 }
 0x1a7   : > { %v993_v42 = vadd.f32 %v11117_v38, %v807_v41  ;;  %v809_v46 = vpop.f32.mrb[15].mxu0 }
 0x1a8   : > { %v7157_v46 = vld [vmem:[#allocation5 + $0x1a0] sm:$0xff] }
 0x1aa   : > { %v812_v34 = vpop.f32.mrb[16].mxu0 }
 0x1ab   : > { %v998_v48 = vadd.f32 %v11125_v45, %v812_v34  ;;  %v814_v52 = vpop.f32.mrb[17].mxu0  ;;  %v7158_v34 = vld [vmem:[#allocation5 + $0x1a8] sm:$0xff] }
 0x1ac   : > { %v1142_v53 = vpop.f32.mrb[24].mxu1  ;;  %v9638_v52 = vpack.c.bf16 %v7158_v34, %v7157_v46  ;;  %v7190_v46 = vld [vmem:[#allocation5 + $0x2a8] sm:$0xff]  ;;  %v7159_v34 = vld [vmem:[#allocation5 + $0x1b0] sm:$0xff] }
 0x1ad   : > { %v11177_v57 = vadd.f32 %v1142_v53, %v958_v4  ;;  %v1144_v60 = vpop.f32.mrb[25].mxu1 }
 0x1ae   : > { %v817_v63 = vpop.f32.mrb[18].mxu0  ;;  %9639 = vmatpush1.bf16.msra.mxu0 %v9638_v52  ;;  %v7160_v52 = vld [vmem:[#allocation5 + $0x1b8] sm:$0xff] }
 0x1af   : > { %v1003_v33 = vadd.f32 %v11123_v43, %v817_v63  ;;  %v819_v1 = vpop.f32.mrb[19].mxu0  ;;  %9640 = vmatprep.subr.bf16.mxu0 %v12985_v0 }
 0x1b0   : > { %v1147_v40 = vpop.f32.mrb[26].mxu1 }
 0x1b1   : > { %v11180_v8 = vadd.f32 %v1147_v40, %v963_v44  ;;  %v1149_v38 = vpop.f32.mrb[27].mxu1 }
 0x1b2   : > { %v822_v12 = vpop.f32.mrb[20].mxu0 }
 0x1b3   : > { %v1008_v45 = vadd.f32 %v11131_v50, %v822_v12  ;;  %v824_v13 = vpop.f32.mrb[21].mxu0 }
 0x1b4   : > { %v1152_v4 = vpop.f32.mrb[28].mxu1 }
 0x1b5   : > { %v11184_v37 = vadd.f32 %v1152_v4, %v968_v24  ;;  %v1154_v51 = vpop.f32.mrb[29].mxu1 }
 0x1b6   : > { %v827_v43 = vpop.f32.mrb[22].mxu0 }
 0x1b7   : > { %v1013_v58 = vadd.f32 %v11129_v49, %v827_v43  ;;  %v829_v17 = vpop.f32.mrb[23].mxu0 }
 0x1b8   : > { %v1157_v14 = vpop.f32.mrb[30].mxu1 }
 0x1b9   : > { %v11187_v31 = vadd.f32 %v1157_v14, %v973_v2  ;;  %v1159_v44 = vpop.f32.mrb[31].mxu1 }
 0x1ba   : > { %v832_v56 = vpop.f32.mrb[24].mxu0 }
 0x1bb   : > { %v1018_v9 = vadd.f32 %v11137_v55, %v832_v56  ;;  %v834_v16 = vpop.f32.mrb[25].mxu0 }
 0x1bc   : > { %v1162_v50 = vpop.f32.mrb[32].mxu1 }
 0x1bd   : > { %v11190_v18 = vadd.f32 %v1162_v50, %v978_v26  ;;  %v1164_v20 = vpop.f32.mrb[33].mxu1 }
 0x1be   : > { %v837_v21 = vpop.f32.mrb[26].mxu0 }
 0x1bf   : > { %v1023_v24 = vadd.f32 %v11135_v54, %v837_v21  ;;  %v839_v22 = vpop.f32.mrb[27].mxu0 }
 0x1c0   : > { %v1167_v23 = vpop.f32.mrb[34].mxu1 }
 0x1c1   : > { %v11193_v25 = vadd.f32 %v1167_v23, %v983_v29  ;;  %v1169_v49 = vpop.f32.mrb[35].mxu1 }
 0x1c2   : > { %v842_v28 = vpop.f32.mrb[28].mxu0 }
 0x1c3   : > { %v1028_v2 = vadd.f32 %v11143_v62, %v842_v28  ;;  %v844_v27 = vpop.f32.mrb[29].mxu0 }
 0x1c4   : > { %v1172_v30 = vpop.f32.mrb[36].mxu1 }
 0x1c5   : > { %v11196_v32 = vadd.f32 %v1172_v30, %v988_v35  ;;  %v1174_v55 = vpop.f32.mrb[37].mxu1 }
 0x1c6   : > { %v847_v36 = vpop.f32.mrb[30].mxu0 }
 0x1c7   : > { %v1033_v26 = vadd.f32 %v11141_v61, %v847_v36  ;;  %v849_v41 = vpop.f32.mrb[31].mxu0 }
 0x1c8   : > { %v1177_v54 = vpop.f32.mrb[38].mxu1  ;;  %v7189_v41 = vld [vmem:[#allocation5 + $0x2a0] sm:$0xff] }
 0x1c9   : > { %v11199_v53 = vadd.f32 %v1177_v54, %v993_v42  ;;  %v1179_v29 = vpop.f32.mrb[39].mxu1 }
 0x1ca   : > { %v852_v60 = vpop.f32.mrb[32].mxu0 }
 0x1cb   : > { %v11202_v62 = vadd.f32 %v11149_v11, %v852_v60  ;;  %v854_v63 = vpop.f32.mrb[33].mxu0  ;;  %v9641_v60 = vpack.c.bf16 %v7160_v52, %v7159_v34 }
 0x1cc   : > { %v1182_v35 = vpop.f32.mrb[40].mxu1 }
 0x1cd   : > { %v11205_v1 = vadd.f32 %v1182_v35, %v998_v48  ;;  %v1184_v61 = vpop.f32.mrb[41].mxu1  ;;  %9642 = vmatpush1.bf16.msra.mxu0 %v9641_v60 }
 0x1ce   : > { %v857_v59 = vpop.f32.mrb[34].mxu0  ;;  %9643 = vmatprep.subr.bf16.mxu0 %v12985_v0 }
 0x1cf   : > { %v11208_v5 = vadd.f32 %v11147_v6, %v857_v59  ;;  %v859_v40 = vpop.f32.mrb[35].mxu0 }
 0x1d0   : > { %v1187_v42 = vpop.f32.mrb[42].mxu1 }
 0x1d1   : > { %v11210_v7 = vadd.f32 %v1187_v42, %v1003_v33  ;;  %v1189_v38 = vpop.f32.mrb[43].mxu1 }
 0x1d2   : > { %v862_v12 = vpop.f32.mrb[36].mxu0 }
 0x1d3   : > { %v11213_v11 = vadd.f32 %v11157_v10, %v862_v12  ;;  %v864_v13 = vpop.f32.mrb[37].mxu0 }
 0x1d4   : > { %v1192_v4 = vpop.f32.mrb[44].mxu1 }
 0x1d5   : > { %v11215_v51 = vadd.f32 %v1192_v4, %v1008_v45  ;;  %v1194_v48 = vpop.f32.mrb[45].mxu1 }
 0x1d6   : > { %v867_v43 = vpop.f32.mrb[38].mxu0 }
 0x1d7   : > { %v11218_v17 = vadd.f32 %v11154_v3, %v867_v43  ;;  %v869_v6 = vpop.f32.mrb[39].mxu0 }
 0x1d8   : > { %v1197_v14 = vpop.f32.mrb[46].mxu1  ;;  %v7161_v6 = vld [vmem:[#allocation5 + $0x1c0] sm:$0xff] }
 0x1d9   : > { %v11220_v44 = vadd.f32 %v1197_v14, %v1013_v58  ;;  %v1199_v33 = vpop.f32.mrb[47].mxu1 }
 0x1da   : > { %v872_v56 = vpop.f32.mrb[40].mxu0 }
 0x1db   : > { %v11223_v16 = vadd.f32 %v11163_v47, %v872_v56  ;;  %v874_v10 = vpop.f32.mrb[41].mxu0 }
 0x1dc   : > { %v1202_v50 = vpop.f32.mrb[48].mxu1 }
 0x1dd   : > { %v11225_v20 = vadd.f32 %v1202_v50, %v1018_v9  ;;  %v1204_v45 = vpop.f32.mrb[49].mxu1 }
 0x1de   : > { %v877_v21 = vpop.f32.mrb[42].mxu0 }
 0x1df   : > { %v11228_v22 = vadd.f32 %v11161_v39, %v877_v21  ;;  %v879_v3 = vpop.f32.mrb[43].mxu0 }
 0x1e0   : > { %v1207_v23 = vpop.f32.mrb[50].mxu1 }
 0x1e1   : > { %v11230_v49 = vadd.f32 %v1207_v23, %v1023_v24  ;;  %v1209_v58 = vpop.f32.mrb[51].mxu1  ;;  %v9686_v24 = vpack.c.bf16 %v7190_v46, %v7189_v41 }
 0x1e2   : > { %v882_v28 = vpop.f32.mrb[44].mxu0 }
 0x1e3   : > { %v11233_v27 = vadd.f32 %v11168_v19, %v882_v28  ;;  %v884_v47 = vpop.f32.mrb[45].mxu0  ;;  %9687 = vmatpush3.bf16.msra.mxu1 %v9686_v24  ;;  %v7164_v24 = vld [vmem:[#allocation5 + $0x1d8] sm:$0xff] }
 0x1e4   : > { %v1212_v30 = vpop.f32.mrb[52].mxu1  ;;  %9688 = vmatprep.subr.bf16.mxu1 %v12985_v0 }
 0x1e5   : > { %v11235_v55 = vadd.f32 %v1212_v30, %v1028_v2  ;;  %v1214_v9 = vpop.f32.mrb[53].mxu1 }
 0x1e6   : > { %v887_v36 = vpop.f32.mrb[46].mxu0 }
 0x1e7   : > { %v11238_v39 = vadd.f32 %v11166_v15, %v887_v36  ;;  %v889_v54 = vpop.f32.mrb[47].mxu0 }
 0x1e8   : > { %v1217_v29 = vpop.f32.mrb[54].mxu1  ;;  %v7163_v54 = vld [vmem:[#allocation5 + $0x1d0] sm:$0xff] }
 0x1e9   : > { %v11240_v63 = vadd.f32 %v1217_v29, %v1033_v26  ;;  %v1219_v19 = vpop.f32.mrb[55].mxu1  ;;  %v9647_v52 = vpack.c.bf16 %v7164_v24, %v7163_v54 }
 0x1ea   : > { %v9022_v35 = vpop.f32.mrb[48].mxu0 }
 0x1eb   : > { %v11244_v2 = vadd.f32 %v9022_v35, %v11180_v8  ;;  %v1327_v61 = vpop.f32.mrb[49].mxu0 }
 0x1ec   : > { %v1222_v15 = vpop.f32.mrb[56].mxu1  ;;  %v11248_v59 = vadd.f32 %v1327_v61, %v11177_v57  ;;  %v7162_v57 = vld [vmem:[#allocation5 + $0x1c8] sm:$0xff] }
 0x1ed   : > { %v11251_v40 = vadd.f32 %v1222_v15, %v11202_v62  ;;  %v1224_v26 = vpop.f32.mrb[57].mxu1  ;;  %v9644_v33 = vpack.c.bf16 %v7162_v57, %v7161_v6 }
 0x1ee   : > { %v9025_v42 = vpop.f32.mrb[50].mxu0 }
 0x1ef   : > { %v11254_v38 = vadd.f32 %v9025_v42, %v11187_v31  ;;  %v1337_v12 = vpop.f32.mrb[51].mxu0  ;;  %9645 = vmatpush1.bf16.msra.mxu0 %v9644_v33 }
 0x1f0   : > { %v1227_v13 = vpop.f32.mrb[58].mxu1  ;;  %v11257_v8 = vadd.f32 %v1337_v12, %v11184_v37  ;;  %9646 = vmatprep.subr.bf16.mxu0 %v12985_v0 }
 0x1f1   : > { %v1228_v4 = vadd.f32 %v1227_v13, %v11208_v5  ;;  %v1229_v48 = vpop.f32.mrb[59].mxu1 }
 0x1f2   : > { %v9028_v43 = vpop.f32.mrb[52].mxu0 }
 0x1f3   : > { %v11261_v14 = vadd.f32 %v9028_v43, %v11193_v25  ;;  %v1347_v62 = vpop.f32.mrb[53].mxu0  ;;  %9648 = vmatpush1.bf16.msra.mxu0 %v9647_v52  ;;  %v11328_v52 = vld [vmem:[%s12976_s2] ss:$0 sm:$0xff] }
 0x1f4   : > { %v1232_v56 = vpop.f32.mrb[60].mxu1  ;;  %v11264_v31 = vadd.f32 %v1347_v62, %v11190_v18  ;;  %9649 = vmatprep.subr.bf16.mxu0 %v12985_v0 }
 0x1f5   : > { %v1233_v10 = vadd.f32 %v1232_v56, %v11213_v11  ;;  %v1234_v50 = vpop.f32.mrb[61].mxu1  ;;  %v7166_v56 = vld [vmem:[#allocation5 + $0x1e8] sm:$0xff] }
 0x1f6   : > { %v9031_v37 = vpop.f32.mrb[54].mxu0 }
 0x1f7   : > { %v11269_v5 = vadd.f32 %v9031_v37, %v11199_v53  ;;  %v1357_v45 = vpop.f32.mrb[55].mxu0 }
 0x1f8   : > { %v1237_v21 = vpop.f32.mrb[62].mxu1  ;;  %v11272_v25 = vadd.f32 %v1357_v45, %v11196_v32 }
 0x1f9   : > { %v1238_v3 = vadd.f32 %v1237_v21, %v11218_v17  ;;  %v1239_v23 = vpop.f32.mrb[63].mxu1 }
 0x1fa   : > { %v9034_v18 = vpop.f32.mrb[56].mxu0 }
 0x1fb   : > { %v11276_v58 = vadd.f32 %v9034_v18, %v11210_v7  ;;  %v1367_v11 = vpop.f32.mrb[57].mxu0  ;;  %v10093_v18 = vmov 1966171168  }
 0x1fc   : > { %v1242_v28 = vpop.f32.mrb[64].mxu1  ;;  %v11279_v47 = vadd.f32 %v1367_v11, %v11205_v1  ;;  %v2042_v11 = vunpack.c.l.s4 %v10093_v18 }
 0x1fd   : > { %v1243_v53 = vadd.f32 %v1242_v28, %v11223_v16  ;;  %v1244_v30 = vpop.f32.mrb[65].mxu1  ;;  %v2044_v28 = vlaneseq }
 0x1fe   : > { %v9037_v9 = vpop.f32.mrb[58].mxu0  ;;  %v2043_v54 = vunpack.c.0.s8 %v2042_v11 }
 0x1ff   : > { %v11283_v36 = vadd.f32 %v9037_v9, %v11220_v44  ;;  %v1377_v32 = vpop.f32.mrb[59].mxu0  ;;  %v11323_v24 = vshrl.u32 %v2044_v28, 7 }
 0x200   : > { %v1247_v41 = vpop.f32.mrb[66].mxu1  ;;  %v11286_v17 = vadd.f32 %v1377_v32, %v11215_v51 }
 0x201   : > { %v1248_v7 = vadd.f32 %v1247_v41, %v11228_v22  ;;  %v1249_v46 = vpop.f32.mrb[67].mxu1  ;;  %v7191_v41 = vld [vmem:[#allocation5 + $0x2b0] sm:$0xff]  ;;  %vm3218_vm1 = vcmp.ne.s32.totalorder %v11323_v24, 0 }
 0x202   : > { %v9040_v34 = vpop.f32.mrb[60].mxu0 }
 0x203   : > { %v11290_v1 = vadd.f32 %v9040_v34, %v11230_v49  ;;  %v1387_v16 = vpop.f32.mrb[61].mxu0 }
 0x204   : > { %v1252_v29 = vpop.f32.mrb[68].mxu1  ;;  %v11293_v44 = vadd.f32 %v1387_v16, %v11225_v20 }
 0x205   : > { %12994 = vst [vmem:[#allocation14_spill] sm:$0xff] %v11290_v1  ;;  %v1253_v60 = vadd.f32 %v1252_v29, %v11233_v27  ;;  %v1254_v19 = vpop.f32.mrb[69].mxu1 }
 0x206   : > { %v9043_v51 = vpop.f32.mrb[62].mxu0  ;;  %v7167_v19 = vld [vmem:[#allocation5 + $0x1f0] sm:$0xff] }
 0x207   : > { %v11298_v22 = vadd.f32 %v9043_v51, %v11240_v63  ;;  %v1397_v35 = vpop.f32.mrb[63].mxu0  ;;  %v7168_v51 = vld [vmem:[#allocation5 + $0x1f8] sm:$0xff] }
 0x208   : > { %v1257_v61 = vpop.f32.mrb[70].mxu1  ;;  %v11301_v49 = vadd.f32 %v1397_v35, %v11235_v55 }
 0x209   : > { %12995 = vst [vmem:[#allocation15_spill] sm:$0xff] %v11298_v22  ;;  %v1258_v15 = vadd.f32 %v1257_v61, %v11238_v39  ;;  %v1259_v26 = vpop.f32.mrb[71].mxu1  ;;  %v7165_v39 = vld [vmem:[#allocation5 + $0x1e0] sm:$0xff] }
 0x20a   : > { %12996 = vst [vmem:[#allocation16_spill] sm:$0xff] %v11301_v49  ;;  %v9046_v20 = vpop.f32.mrb[64].mxu0  ;;  %v9650_v37 = vpack.c.bf16 %v7166_v56, %v7165_v39 }
 0x20b   : > { %v11304_v42 = vadd.f32 %v9046_v20, %v1228_v4  ;;  %v1407_v27 = vpop.f32.mrb[65].mxu0 }
 0x20c   : > { %v11307_v12 = vadd.f32 %v1407_v27, %v11251_v40  ;;  %v1633_v13 = vpop.f32.mrb[72].mxu1  ;;  %9651 = vmatpush1.bf16.msra.mxu0 %v9650_v37 }
 0x20d   : > { %12997 = vst [vmem:[#allocation17_spill] sm:$0xff] %v11304_v42  ;;  %v1635_v48 = vpop.f32.mrb[73].mxu1  ;;  %9652 = vmatprep.subr.bf16.mxu0 %v12985_v0 }
 0x20e   : > { %12998 = vst [vmem:[#allocation18_spill] sm:$0xff] %v11307_v12  ;;  %v9049_v43 = vpop.f32.mrb[66].mxu0 }
 0x20f   : > { %v11309_v63 = vadd.f32 %v9049_v43, %v1238_v3  ;;  %v1417_v6 = vpop.f32.mrb[67].mxu0 }
 0x210   : > { %v11311_v57 = vadd.f32 %v1417_v6, %v1233_v10  ;;  %v1638_v55 = vpop.f32.mrb[74].mxu1 }
 0x211   : > { %12999 = vst [vmem:[#allocation19_spill] sm:$0xff] %v11309_v63  ;;  %v1640_v62 = vpop.f32.mrb[75].mxu1 }
 0x212   : > { %13000 = vst [vmem:[#allocation20_spill] sm:$0xff] %v11311_v57  ;;  %v9052_v33 = vpop.f32.mrb[68].mxu0 }
 0x213   : > { %v11313_v50 = vadd.f32 %v9052_v33, %v1248_v7  ;;  %v1427_v4 = vpop.f32.mrb[69].mxu0 }
 0x214   : > { %v11315_v45 = vadd.f32 %v1427_v4, %v1243_v53  ;;  %v1643_v40 = vpop.f32.mrb[76].mxu1  ;;  %v7192_v53 = vld [vmem:[#allocation5 + $0x2b8] sm:$0xff] }
 0x215   : > { %13001 = vst [vmem:[#allocation21_spill] sm:$0xff] %v11313_v50  ;;  %v1645_v21 = vpop.f32.mrb[77].mxu1  ;;  %v9689_v46 = vpack.c.bf16 %v7192_v53, %v7191_v41 }
 0x216   : > { %13002 = vst [vmem:[#allocation22_spill] sm:$0xff] %v11315_v45  ;;  %v9055_v3 = vpop.f32.mrb[70].mxu0 }
 0x217   : > { %v11318_v10 = vadd.f32 %v9055_v3, %v1258_v15  ;;  %v1437_v23 = vpop.f32.mrb[71].mxu0  ;;  %9690 = vmatpush3.bf16.msra.mxu1 %v9689_v46  ;;  %v9653_v15 = vpack.c.bf16 %v7168_v51, %v7167_v19 }
 0x218   : > { %v11320_v30 = vadd.f32 %v1437_v23, %v1253_v60  ;;  %v1648_v9 = vpop.f32.mrb[78].mxu1  ;;  %9691 = vmatprep.subr.bf16.mxu1 %v12985_v0 }
 0x219   : > { %13003 = vst [vmem:[#allocation23_spill] sm:$0xff] %v11318_v10  ;;  %v1650_v32 = vpop.f32.mrb[79].mxu1  ;;  %9654 = vmatpush1.bf16.msra.mxu0 %v9653_v15 }
 0x21a   : > { %13004 = vst [vmem:[#allocation24_spill] sm:$0xff] %v11320_v30  ;;  %v9090_v7 = vpop.f32.mrb[72].mxu0  ;;  %9655 = vmatprep.subr.bf16.mxu0 %v12985_v0 }
 0x21b   : > { %v1824_v34 = vadd.f32 %v9090_v7, %v1638_v55  ;;  %v1818_v16 = vpop.f32.mrb[73].mxu0 }
 0x21c   : > { %v1819_v29 = vadd.f32 %v1818_v16, %v1633_v13  ;;  %v1653_v60 = vpop.f32.mrb[80].mxu1  ;;  %v11339_v13 = vsub.s32 %v2043_v54, %v11323_v24 }
 0x21d   : > { %v1938_v35 = vadd.f32 %v1824_v34, %v11244_v2  ;;  %v1655_v61 = vpop.f32.mrb[81].mxu1 }
 0x21e   : > { %v1937_v26 = vadd.f32 %v1819_v29, %v11248_v59  ;;  %v9093_v20 = vpop.f32.mrb[74].mxu0  ;;  %v3229_v59 = vstv %s11334_s9  ;;  %s8690_s9 = sshll.u32 %s8363_s21, 7 }
 0x21f   : > { %v1969_v27 = vadd.f32 %v11328_v52, %v1938_v35  ;;  %v1834_v48 = vadd.f32 %v9093_v20, %v1648_v9  ;;  %v1828_v43 = vpop.f32.mrb[75].mxu0  ;;  %vm11368_vm0 = vcmp.eq.s32.totalorder %v3229_v59, 1  ;;  %s12917_s14 = scalar_lea.hbm %s12979_s5, %s8690_s9 }
 0x220   : > { %v1968_v2 = vadd.f32 %v11328_v52, %v1937_v26  ;;  %v1829_v6 = vadd.f32 %v1828_v43, %v1643_v40  ;;  %v1658_v55 = vpop.f32.mrb[82].mxu1  ;;  %vm11431_vm2 = vmand %vm3218_vm1, %vm11368_vm0 }
 0x221   : > { %v1993_v62 = vmax.f32 %v1969_v27, 0.0  ;;  %v1940_v33 = vadd.f32 %v1834_v48, %v11254_v38  ;;  %v1660_v39 = vpop.f32.mrb[83].mxu1 }
 0x222   : > { %v1992_v56 = vmax.f32 %v1968_v2, 0.0  ;;  %v1939_v4 = vadd.f32 %v1829_v6, %v11257_v8  ;;  %v9096_v37 = vpop.f32.mrb[76].mxu0 }
 0x223   : > { %v2089_v21 = vcombine.high %v1993_v62, %v1993_v62  ;;  %v2096_v3 = vrot.slane %v1993_v62, %v11339_v13  ;;  %v1971_v23 = vadd.f32 %v11328_v52, %v1940_v33  ;;  %v11348_v18 = vadd.f32 %v9096_v37, %v1658_v55  ;;  %v1838_v40 = vpop.f32.mrb[77].mxu0 }
 0x224   : > { %v2040_v11 = vcombine.high %v1992_v56, %v1992_v56  ;;  %v2047_v28 = vrot.slane %v1992_v56, %v11339_v13  ;;  %v1970_v9 = vadd.f32 %v11328_v52, %v1939_v4  ;;  %v11352_v38 = vadd.f32 %v1838_v40, %v1653_v60  ;;  %v11354_v32 = vpop.f32.mrb[84].mxu1 }
 0x225   : > { %v2103_v8 = vrot.slane %v2089_v21, %v11339_v13  ;;  %v2104_v41 = vcombine.high %v2096_v3, %v2096_v3  ;;  %v2112_v53 = vrot.slane %v2096_v3, %v11339_v13  ;;  %v1995_v7 = vmax.f32 %v1971_v23, 0.0  ;;  %v1665_v46 = vpop.f32.mrb[85].mxu1 }
 0x226   : > { %v2054_v34 = vrot.slane %v2040_v11, %v11339_v13  ;;  %v2055_v54 = vcombine.high %v2047_v28, %v2047_v28  ;;  %v2063_v16 = vrot.slane %v2047_v28, %v11339_v13  ;;  %v11360_v29 = vmax.f32 %v1970_v9, 0.0  ;;  %v11362_v19 = vpop.f32.mrb[78].mxu0 }
 0x227   : > { %v2105_v60 = vcombine.high %v2103_v8, %v2103_v8  ;;  %v2119_v51 = vrot.slane %v2103_v8, %v11339_v13  ;;  %v2126_v35 = vrot.slane %v2104_v41, %v11339_v13  ;;  %v2187_v61 = vcombine.high %v1995_v7, %v1995_v7  ;;  %v11366_v15 = vpop.f32.mrb[79].mxu0 }
 0x228   : > { %v2056_v20 = vcombine.high %v2054_v34, %v2054_v34  ;;  %v2070_v27 = vrot.slane %v2054_v34, %v11339_v13  ;;  %v2077_v48 = vrot.slane %v2055_v54, %v11339_v13  ;;  %v2194_v43 = vrot.slane %v1995_v7, %v11339_v13  ;;  %v11376_v2 = vpop.f32.mrb[86].mxu1 }
 0x229   : > { %v2133_v6 = vrot.slane %v2105_v60, %v11339_v13  ;;  %v3314_v55 = vcombine.low %v2112_v53, %v2126_v35  ;;  %v8641_v62 = vcombine.high %v2112_v53, %v2126_v35  ;;  %v2201_v33 = vrot.slane %v2187_v61, %v11339_v13  ;;  %v1670_v39 = vpop.f32.mrb[87].mxu1 }
 0x22a   : > { %v2084_v59 = vrot.slane %v2056_v20, %v11339_v13  ;;  %v3265_v56 = vcombine.low %v2063_v16, %v2077_v48  ;;  %v8639_v4 = vcombine.high %v2063_v16, %v2077_v48  ;;  %v2202_v37 = vcombine.high %v2194_v43, %v2194_v43  ;;  %v11381_v21 = vpop.f32.mrb[80].mxu0 }
 0x22b   : > { %v3316_v3 = vcombine.low %v2119_v51, %v2133_v6  ;;  %v8642_v23 = vcombine.high %v2119_v51, %v2133_v6  ;;  %v3324_v40 = vrot.slane %v3314_v55, %v11339_v13  ;;  %v3331_v11 = vrot.slane %v8641_v62, %v11339_v13  ;;  %v11385_v28 = vpop.f32.mrb[81].mxu0 }
 0x22c   : > { %v3267_v9 = vcombine.low %v2070_v27, %v2084_v59  ;;  %v8640_v8 = vcombine.high %v2070_v27, %v2084_v59  ;;  %v3275_v41 = vrot.slane %v3265_v56, %v11339_v13  ;;  %v3282_v53 = vrot.slane %v8639_v4, %v11339_v13  ;;  %v11389_v7 = vpop.f32.mrb[88].mxu1 }
 0x22d   : > { %v3338_v46 = vrot.slane %v3316_v3, %v11339_v13  ;;  %v3345_v34 = vrot.slane %v8642_v23, %v11339_v13  ;;  %v3346_v54 = vcombine.low %v3324_v40, %v3331_v11  ;;  %v2203_v16 = vcombine.high %v2201_v33, %v2201_v33  ;;  %v1675_v60 = vpop.f32.mrb[89].mxu1 }
 0x22e   : > { %v3289_v51 = vrot.slane %v3267_v9, %v11339_v13  ;;  %v3296_v35 = vrot.slane %v8640_v8, %v11339_v13  ;;  %v3297_v61 = vcombine.low %v3275_v41, %v3282_v53  ;;  %v11396_v20 = vrot.slane %v2194_v43, %v11339_v13  ;;  %v11398_v27 = vpop.f32.mrb[82].mxu0 }
 0x22f   : > { %v3347_v48 = vcombine.low %v3338_v46, %v3345_v34  ;;  %v3354_v6 = vrot.slane %v3346_v54, %v11339_v13  ;;  %v2217_v55 = vrot.slane %v2201_v33, %v11339_v13  ;;  %v2224_v62 = vrot.slane %v2202_v37, %v11339_v13  ;;  %v11403_v39 = vpop.f32.mrb[83].mxu0 }
 0x230   : > { %v3298_v59 = vcombine.low %v3289_v51, %v3296_v35  ;;  %v3305_v56 = vrot.slane %v3297_v61, %v11339_v13  ;;  %v11407_v4 = vrot.slane %v2203_v16, %v11339_v13  ;;  %v2232_v43 = vcombine.high %v11396_v20, %v11396_v20  ;;  %v11411_v3 = vpop.f32.mrb[90].mxu1 }
 0x231   : > { %v3361_v23 = vrot.slane %v3347_v48, %v11339_v13  ;;  %v2233_v40 = vcombine.high %v2217_v55, %v2217_v55  ;;  %v2234_v11 = vcombine.high %v2224_v62, %v2224_v62  ;;  %v2138_v33 = vcombine.high %v11360_v29, %v11360_v29  ;;  %v1680_v37 = vpop.f32.mrb[91].mxu1 }
 0x232   : > { %v3312_v9 = vrot.slane %v3298_v59, %v11339_v13  ;;  %v11417_v8 = vcombine.low %v2224_v62, %v2232_v43  ;;  %v2145_v41 = vrot.slane %v11360_v29, %v11339_v13  ;;  %v11423_v53 = vadd.f32 %v11348_v18, %v11261_v14  ;;  %v11425_v46 = vpop.f32.mrb[84].mxu0 }
 0x233   : > { %v3362_v34 = vcombine.low %v3354_v6, %v3361_v23  ;;  %v3435_v16 = vcombine.low %v2234_v11, %v2217_v55  ;;  %v3436_v60 = vcombine.low %v11407_v4, %v2233_v40  ;;  %v2152_v29 = vrot.slane %v2138_v33, %v11339_v13  ;;  %v11437_v51 = vpop.f32.mrb[85].mxu0 }
 0x234   : > { %v3313_v14 = vcombine.low %v3305_v56, %v3312_v9  ;;  %v2153_v35 = vcombine.high %v2145_v41, %v2145_v41  ;;  %v11442_v61 = vadd.s32 16, %v11323_v24  ;;  %v11444_v48 = vpop.f32.mrb[92].mxu1  ;;  %v2161_v11 = vrot.slane %v2145_v41, %v11339_v13 }
 0x235   : > { %v4506_v6 = vsel %vm11368_vm0, %v3362_v34, 0.0  ;;  %v3445_v55 = vrot.slane %v3435_v16, %v11339_v13  ;;  %v3452_v62 = vrot.slane %v3436_v60, %v11339_v13  ;;  %v2154_v59 = vcombine.high %v2152_v29, %v2152_v29  ;;  %v1685_v43 = vpop.f32.mrb[93].mxu1 }
 0x236   : > { %v4614_v23 = vcombine.high %v4506_v6, %v4506_v6  ;;  %v4621_v56 = vrot.slane %v4506_v6, %v11339_v13  ;;  %v4505_v40 = vsel %vm11431_vm2, %v3313_v14, 0.0  ;;  %v2168_v34 = vrot.slane %v2152_v29, %v11339_v13 }
 0x237   : > { %v4565_v33 = vcombine.high %v4505_v40, %v4505_v40  ;;  %v4572_v37 = vrot.slane %v4505_v40, %v11339_v13  ;;  %v11455_v9 = vcombine.low %v3445_v55, %v3452_v62  ;;  %v2175_v0 = vrot.slane %v2153_v35, %v11339_v13 }
 0x238   : > { %v4628_v16 = vrot.slane %v4614_v23, %v11339_v13  ;;  %v4629_v60 = vcombine.high %v4621_v56, %v4621_v56  ;;  %v4637_v43 = vrot.slane %v4621_v56, %v11339_v13  ;;  %v11461_v6 = vpop.f32.mrb[94].mxu1  ;;  %v2182_v40 = vrot.slane %v2154_v59, %v11339_v13 }
 0x239   : > { %v4579_v54 = vrot.slane %v4565_v33, %v11339_v13  ;;  %v4580_v14 = vcombine.high %v4572_v37, %v4572_v37  ;;  %v4588_v41 = vrot.slane %v4572_v37, %v11339_v13  ;;  %v1690_v55 = vpop.f32.mrb[95].mxu1  ;;  %v2183_v18 = vcombine.high %v2161_v11, %v2161_v11 }
 0x23a   : > { %v4630_v62 = vcombine.high %v4628_v16, %v4628_v16  ;;  %v4644_v29 = vrot.slane %v4628_v16, %v11339_v13  ;;  %v4651_v23 = vrot.slane %v4629_v60, %v11339_v13  ;;  %vm3223_vm3 = vcmp.ne.s32.totalorder %v11442_v61, 17 }
 0x23b   : > { %v4581_v56 = vcombine.high %v4579_v54, %v4579_v54  ;;  %v4595_v35 = vrot.slane %v4579_v54, %v11339_v13  ;;  %v4602_v10 = vrot.slane %v4580_v14, %v11339_v13  ;;  %v2184_v33 = vcombine.high %v2168_v34, %v2168_v34  ;;  %vm11505_vm4 = vmand %vm3223_vm3, %vm11368_vm0 }
 0x23c   : > { %v4658_v30 = vrot.slane %v4630_v62, %v11339_v13  ;;  %v5824_v37 = vcombine.low %v4637_v43, %v4651_v23  ;;  %v8671_v50 = vcombine.high %v4637_v43, %v4651_v23  ;;  %v2185_v59 = vcombine.high %v2175_v0, %v2175_v0  ;;  %v11472_v55 = vpop.f32.mrb[96].mxu1 }
 0x23d   : > { %v4609_v16 = vrot.slane %v4581_v56, %v11339_v13  ;;  %v5775_v45 = vcombine.low %v4588_v41, %v4602_v10  ;;  %v8669_v60 = vcombine.high %v4588_v41, %v4602_v10  ;;  %v2186_v63 = vcombine.high %v2182_v40, %v2182_v40  ;;  %v1695_v57 = vpop.f32.mrb[97].mxu1 }
 0x23e   : > { %v5826_v42 = vcombine.low %v4644_v29, %v4658_v30  ;;  %v8672_v12 = vcombine.high %v4644_v29, %v4658_v30  ;;  %v5834_v54 = vrot.slane %v5824_v37, %v11339_v13  ;;  %v5841_v14 = vrot.slane %v8671_v50, %v11339_v13  ;;  %v11486_v37 = vpop.f32.mrb[86].mxu0 }
 0x23f   : > { %v5777_v22 = vcombine.low %v4595_v35, %v4609_v16  ;;  %v8670_v49 = vcombine.high %v4595_v35, %v4609_v16  ;;  %v5785_v62 = vrot.slane %v5775_v45, %v11339_v13  ;;  %v5792_v43 = vrot.slane %v8669_v60, %v11339_v13  ;;  %v11490_v60 = vpop.f32.mrb[87].mxu0 }
 0x240   : > { %v5848_v23 = vrot.slane %v5826_v42, %v11339_v13  ;;  %v5855_v56 = vrot.slane %v8672_v12, %v11339_v13  ;;  %v5856_v1 = vcombine.low %v5834_v54, %v5841_v14  ;;  %v3363_v10 = vcombine.low %v2161_v11, %v2175_v0  ;;  %v11481_v41 = vpop.f32.mrb[98].mxu1 }
 0x241   : > { %v5799_v57 = vrot.slane %v5777_v22, %v11339_v13  ;;  %v5806_v30 = vrot.slane %v8670_v49, %v11339_v13  ;;  %v5807_v29 = vcombine.low %v5785_v62, %v5792_v43  ;;  %v3377_v50 = vrot.slane %v2183_v18, %v11339_v13  ;;  %v1700_v35 = vpop.f32.mrb[99].mxu1 }
 0x242   : > { %v5857_v45 = vcombine.low %v5848_v23, %v5855_v56  ;;  %v5864_v16 = vrot.slane %v5856_v1, %v11339_v13  ;;  %v3370_v42 = vrot.slane %v3363_v10, %v11339_v13  ;;  %v3386_v12 = vcombine.low %v2185_v59, %v2168_v34 }
 0x243   : > { %v5808_v0 = vcombine.low %v5799_v57, %v5806_v30  ;;  %v5815_v11 = vrot.slane %v5807_v29, %v11339_v13  ;;  %v3387_v22 = vcombine.low %v2182_v40, %v2184_v33  ;;  %v3388_v49 = vcombine.low %v2186_v63, %v11396_v20 }
 0x244   : > { %v5871_v54 = vrot.slane %v5857_v45, %v11339_v13  ;;  %v3378_v18 = vcombine.low %v3370_v42, %v3377_v50  ;;  %v3396_v14 = vrot.slane %v3386_v12, %v11339_v13  ;;  %v1973_v62 = vadd.f32 %v11328_v52, %v11423_v53  ;;  %v11498_v1 = vpop.f32.mrb[100].mxu1 }
 0x245   : > { %v5822_v34 = vrot.slane %v5808_v0, %v11339_v13  ;;  %v3403_v63 = vrot.slane %v3387_v22, %v11339_v13  ;;  %v3410_v20 = vrot.slane %v3388_v49, %v11339_v13  ;;  %v1941_v33 = vadd.f32 %v11352_v38, %v11264_v31  ;;  %v1705_v53 = vpop.f32.mrb[101].mxu1 }
 0x246   : > { %v5872_v59 = vcombine.low %v5864_v16, %v5871_v54  ;;  %v3475_v43 = vrot.slane %v11455_v9, %v11339_v13  ;;  %v3385_v26 = vrot.slane %v3378_v18, %v11339_v13  ;;  %v1997_v23 = vmax.f32 %v1973_v62, 0.0 }
 0x247   : > { %v5823_v56 = vcombine.low %v5815_v11, %v5822_v34  ;;  %v3418_v10 = vcombine.low %v3396_v14, %v3403_v63  ;;  %v13011_v57 = vrot.slane %v11417_v8, %v11339_v13  ;;  %v1972_v29 = vadd.f32 %v11328_v52, %v1941_v33 }
 0x248   : > { %6967 = vst [vmem:[#allocation3 + $0x8] sm:$0xff] %v5872_v59  ;;  %v4507_v31 = vsel %vm11505_vm4, %v3385_v26, 0.0  ;;  %v2285_v38 = vcombine.high %v1997_v23, %v1997_v23  ;;  %v2292_v50 = vrot.slane %v1997_v23, %v11339_v13  ;;  %v1854_v35 = vadd.f32 %v11362_v19, %v11376_v2  ;;  %v11543_v26 = vpop.f32.mrb[102].mxu1 }
 0x249   : > { %v3419_v30 = vcombine.low %v3410_v20, %v13011_v57  ;;  %6966 = vst [vmem:[#allocation3] sm:$0xff] %v5823_v56  ;;  %v3426_v45 = vrot.slane %v3418_v10, %v11339_v13  ;;  %v4669_v8 = vrot.slane %v4507_v31, %v11339_v13  ;;  %v1996_v42 = vmax.f32 %v1972_v29, 0.0 }
 0x24a   : > { %v2299_v12 = vrot.slane %v2285_v38, %v11339_v13  ;;  %v2300_v0 = vcombine.high %v2292_v50, %v2292_v50  ;;  %v2235_v11 = vcombine.high %v11407_v4, %v11407_v4  ;;  %v1944_v22 = vadd.f32 %v1854_v35, %v11269_v5 }
 0x24b   : > { %v3433_v16 = vrot.slane %v3419_v30, %v11339_v13  ;;  %v4670_v54 = vcombine.high %v4669_v8, %v4669_v8  ;;  %v4677_v19 = vrot.slane %v4669_v8, %v11339_v13  ;;  %v2236_v2 = vcombine.high %v1996_v42, %v1996_v42  ;;  %v1710_v30 = vpop.f32.mrb[103].mxu1 }
 0x24c   : > { %v2301_v18 = vcombine.high %v2299_v12, %v2299_v12  ;;  %v2308_v14 = vrot.slane %v2292_v50, %v11339_v13  ;;  %v2322_v62 = vrot.slane %v2300_v0, %v11339_v13  ;;  %v2243_v34 = vrot.slane %v1996_v42, %v11339_v13 }
 0x24d   : > { %v3434_v49 = vcombine.low %v3426_v45, %v3433_v16  ;;  %v4684_v63 = vrot.slane %v4670_v54, %v11339_v13  ;;  %v2315_v4 = vrot.slane %v2299_v12, %v11339_v13  ;;  %v2250_v5 = vrot.slane %v2236_v2, %v11339_v13 }
 0x24e   : > { %v2329_v53 = vrot.slane %v2301_v18, %v11339_v13  ;;  %v3508_v59 = vcombine.low %v2308_v14, %v2322_v62  ;;  %v4685_v23 = vcombine.high %v4677_v19, %v4677_v19  ;;  %v8644_v10 = vcombine.high %v2308_v14, %v2322_v62 }
 0x24f   : > { %v4508_v40 = vsel %vm3218_vm1, %v3434_v49, 0.0  ;;  %v5873_v56 = vcombine.low %v4677_v19, %v4684_v63  ;;  %v2251_v57 = vcombine.high %v2243_v34, %v2243_v34  ;;  %v2252_v8 = vcombine.high %v2250_v5, %v2250_v5 }
 0x250   : > { %v4686_v20 = vcombine.high %v4508_v40, %v4508_v40  ;;  %v4693_v33 = vrot.slane %v4508_v40, %v11339_v13  ;;  %v3510_v50 = vcombine.low %v2315_v4, %v2329_v53  ;;  %v3524_v45 = vrot.slane %v3508_v59, %v11339_v13 }
 0x251   : > { %v5883_v35 = vrot.slane %v5873_v56, %v11339_v13  ;;  %v8645_v16 = vcombine.high %v2315_v4, %v2329_v53  ;;  %v3531_v49 = vrot.slane %v8644_v10, %v11339_v13  ;;  %v2259_v18 = vrot.slane %v2243_v34, %v11339_v13 }
 0x252   : > { %v4700_v29 = vrot.slane %v4686_v20, %v11339_v13  ;;  %v4701_v31 = vcombine.high %v4693_v33, %v4693_v33  ;;  %v4709_v38 = vrot.slane %v4693_v33, %v11339_v13  ;;  %v3538_v2 = vrot.slane %v3510_v50, %v11339_v13 }
 0x253   : > { %v11555_v63 = vrot.slane %v8645_v16, %v11339_v13  ;;  %v2273_v33 = vrot.slane %v2251_v57, %v11339_v13  ;;  %v2280_v53 = vrot.slane %v2252_v8, %v11339_v13  ;;  %v2281_v56 = vcombine.high %v2259_v18, %v2259_v18 }
 0x254   : > { %v4716_v42 = vrot.slane %v4700_v29, %v11339_v13  ;;  %v4723_v12 = vrot.slane %v4701_v31, %v11339_v13  ;;  %v4731_v0 = vcombine.high %v4709_v38, %v4709_v38  ;;  %v4702_v54 = vcombine.high %v4700_v29, %v4700_v29 }
 0x255   : > { %v5874_v19 = vcombine.low %v4685_v23, %v4709_v38  ;;  %v3540_v20 = vcombine.low %v3531_v49, %v3538_v2  ;;  %v2266_v23 = vrot.slane %v2250_v5, %v11339_v13  ;;  %v3437_v10 = vcombine.low %v2235_v11, %v2259_v18 }
 0x256   : > { %v4732_v14 = vcombine.high %v4716_v42, %v4716_v42  ;;  %v4733_v62 = vcombine.high %v4723_v12, %v4723_v12  ;;  %v5875_v40 = vcombine.low %v4723_v12, %v4731_v0  ;;  %v2283_v31 = vcombine.high %v2273_v33, %v2273_v33 }
 0x257   : > { %v5890_v4 = vrot.slane %v5874_v19, %v11339_v13  ;;  %v3554_v29 = vrot.slane %v3540_v20, %v11339_v13  ;;  %v3438_v50 = vcombine.low %v2273_v33, %v2281_v56  ;;  %v3459_v16 = vrot.slane %v3437_v10, %v11339_v13  ;;  %v11574_v19 = vpop.f32.mrb[88].mxu0 }
 0x258   : > { %v5876_v59 = vcombine.low %v4733_v62, %v4716_v42  ;;  %v5897_v34 = vrot.slane %v5875_v40, %v11339_v13  ;;  %v8643_v12 = vcombine.high %v2266_v23, %v2280_v53  ;;  %v3484_v57 = vcombine.low %v2283_v31, %v2266_v23  ;;  %13012 = vst [vmem:[#allocation25_spill] sm:$0xff] %v11574_v19  ;;  %v11581_v40 = vpop.f32.mrb[104].mxu1 }
 0x259   : > { %v5905_v30 = vcombine.low %v5883_v35, %v5890_v4  ;;  %v3498_v8 = vrot.slane %v2280_v53, %v11339_v13  ;;  %v11567_v42 = vrot.slane %v4702_v54, %v11339_v13  ;;  %v1975_v11 = vadd.f32 %v11328_v52, %v1944_v22  ;;  %13013 = vst [vmem:[#allocation26_spill] sm:$0xff] %v11581_v40  ;;  %v11583_v22 = vpop.f32.mrb[89].mxu0 }
 0x25a   : > { %v5904_v38 = vrot.slane %v5876_v59, %v11339_v13  ;;  %v3466_v35 = vrot.slane %v3438_v50, %v11339_v13  ;;  %v3517_v0 = vrot.slane %v8643_v12, %v11339_v13  ;;  %v1849_v49 = vadd.f32 %v11366_v15, %v11354_v32  ;;  %13014 = vst [vmem:[#allocation27_spill] sm:$0xff] %v11583_v22  ;;  %v1715_v15 = vpop.f32.mrb[105].mxu1 }
 0x25b   : > { %v5913_v2 = vrot.slane %v5905_v30, %v11339_v13  ;;  %v3491_v18 = vrot.slane %v3484_v57, %v11339_v13  ;;  %v11579_v62 = vcombine.low %v11567_v42, %v4732_v14  ;;  %v1999_v54 = vmax.f32 %v1975_v11, 0.0 }
 0x25c   : > { %v5906_v5 = vcombine.low %v5897_v34, %v5904_v38  ;;  %v3468_v20 = vcombine.low %v3459_v16, %v3466_v35  ;;  %v3539_v33 = vcombine.low %v3517_v0, %v3524_v45  ;;  %v1943_v32 = vadd.f32 %v1849_v49, %v11272_v25 }
 0x25d   : > { %v3499_v53 = vcombine.low %v3491_v18, %v3498_v8  ;;  %v4734_v59 = vcombine.high %v11567_v42, %v11567_v42  ;;  %v2383_v23 = vcombine.high %v1999_v54, %v1999_v54  ;;  %v2390_v14 = vrot.slane %v1999_v54, %v11339_v13 }
 0x25e   : > { %v5920_v4 = vrot.slane %v5906_v5, %v11339_v13  ;;  %v3482_v10 = vrot.slane %v3468_v20, %v11339_v13  ;;  %v3547_v34 = vrot.slane %v3539_v33, %v11339_v13  ;;  %v1974_v30 = vadd.f32 %v11328_v52, %v1943_v32 }
 0x25f   : > { %v3506_v31 = vrot.slane %v3499_v53, %v11339_v13  ;;  %v2397_v45 = vrot.slane %v2383_v23, %v11339_v13  ;;  %v2398_v25 = vcombine.high %v2390_v14, %v2390_v14  ;;  %v11596_v38 = vrot.slane %v2390_v14, %v11339_v13 }
 0x260   : > { %v5921_v56 = vcombine.low %v5913_v2, %v5920_v4  ;;  %v3483_v50 = vcombine.low %v3475_v43, %v3482_v10  ;;  %v3555_v16 = vcombine.low %v3547_v34, %v3554_v29  ;;  %v8661_v12 = vcombine.low %v3482_v10, %v3482_v10 }
 0x261   : > { %v5932_v57 = vrot.slane %v11579_v62, %v11339_v13  ;;  %v4510_v8 = vsel %vm3223_vm3, %v3506_v31, 0.0  ;;  %v2399_v42 = vcombine.high %v2397_v45, %v2397_v45  ;;  %v11606_v11 = vrot.slane %v2397_v45, %v11339_v13 }
 0x262   : > { %6968 = vst [vmem:[#allocation3 + $0x10] sm:$0xff] %v5921_v56  ;;  %v11608_v5 = vmax.f32 %v1974_v30, 0.0  ;;  %v4511_v35 = vsel %vm3218_vm1, %v3555_v16, 0.0  ;;  %v4742_v9 = vrot.slane %v3483_v50, %v11339_v13  ;;  %v4749_v43 = vrot.slane %v8661_v12, %v11339_v13 }
 0x263   : > { %v4790_v29 = vrot.slane %v4510_v8, %v11339_v13  ;;  %v4807_v0 = vcombine.high %v4511_v35, %v4511_v35  ;;  %v4814_v49 = vrot.slane %v4511_v35, %v11339_v13  ;;  %v2420_v2 = vrot.slane %v2398_v25, %v11339_v13  ;;  %v11629_v8 = vpop.f32.mrb[106].mxu1 }
 0x264   : > { %v2428_v18 = vcombine.high %v11596_v38, %v11596_v38  ;;  %v4750_v62 = vcombine.high %v4742_v9, %v4742_v9  ;;  %v4751_v54 = vcombine.high %v4749_v43, %v4749_v43  ;;  %v4758_v4 = vrot.slane %v4742_v9, %v11339_v13  ;;  %13015 = vst [vmem:[#allocation28_spill] sm:$0xff] %v11629_v8 }
 0x265   : > { %v4765_v20 = vrot.slane %v4749_v43, %v11339_v13  ;;  %v4791_v33 = vcombine.high %v4790_v29, %v4790_v29  ;;  %v4798_v32 = vrot.slane %v4790_v29, %v11339_v13  ;;  %v4821_v15 = vrot.slane %v4807_v0, %v11339_v13  ;;  %v1720_v0 = vpop.f32.mrb[107].mxu1 }
 0x266   : > { %v4822_v53 = vcombine.high %v4814_v49, %v4814_v49  ;;  %v4772_v23 = vrot.slane %v4750_v62, %v11339_v13  ;;  %v4779_v14 = vrot.slane %v4751_v54, %v11339_v13  ;;  %v4780_v56 = vcombine.high %v4758_v4, %v4758_v4 }
 0x267   : > { %v4781_v10 = vcombine.high %v4765_v20, %v4765_v20  ;;  %v4805_v34 = vrot.slane %v4791_v33, %v11339_v13  ;;  %v4806_v30 = vcombine.high %v4798_v32, %v4798_v32  ;;  %v4823_v31 = vcombine.high %v4821_v15, %v4821_v15 }
 0x268   : > { %v4830_v45 = vrot.slane %v4814_v49, %v11339_v13  ;;  %v4782_v25 = vcombine.high %v4772_v23, %v4772_v23  ;;  %v4783_v50 = vcombine.high %v4779_v14, %v4779_v14  ;;  %v4837_v16 = vrot.slane %v4821_v15, %v11339_v13 }
 0x269   : > { %v4844_v12 = vrot.slane %v4822_v53, %v11339_v13  ;;  %v4851_v35 = vrot.slane %v4823_v31, %v11339_v13  ;;  %v5923_v9 = vcombine.low %v4734_v59, %v4758_v4  ;;  %v5924_v43 = vcombine.low %v4772_v23, %v4780_v56 }
 0x26a   : > { %v5971_v29 = vcombine.low %v4779_v14, %v4781_v10  ;;  %v5925_v62 = vcombine.low %v4782_v25, %v4765_v20  ;;  %v5972_v54 = vcombine.low %v4783_v50, %v4798_v32  ;;  %v5973_v33 = vcombine.low %v4805_v34, %v4806_v30 }
 0x26b   : > { %v5974_v19 = vcombine.low %v4830_v45, %v4844_v12  ;;  %v5939_v49 = vrot.slane %v5923_v9, %v11339_v13  ;;  %v5946_v22 = vrot.slane %v5924_v43, %v11339_v13  ;;  %v8673_v40 = vcombine.high %v4830_v45, %v4844_v12 }
 0x26c   : > { %v5981_v15 = vrot.slane %v5971_v29, %v11339_v13  ;;  %v5953_v53 = vrot.slane %v5925_v62, %v11339_v13  ;;  %v5988_v8 = vrot.slane %v5972_v54, %v11339_v13  ;;  %v5995_v59 = vrot.slane %v5973_v33, %v11339_v13 }
 0x26d   : > { %v6002_v4 = vrot.slane %v5974_v19, %v11339_v13  ;;  %v5954_v23 = vcombine.low %v5932_v57, %v5939_v49  ;;  %v6021_v20 = vcombine.low %v4837_v16, %v4851_v35  ;;  %v8674_v32 = vcombine.high %v4837_v16, %v4851_v35 }
 0x26e   : > { %v11640_v14 = vrot.slane %v2399_v42, %v11339_v13  ;;  %v5955_v56 = vcombine.low %v5946_v22, %v5953_v53  ;;  %v6003_v10 = vcombine.low %v5981_v15, %v5988_v8  ;;  %v2429_v30 = vcombine.high %v11606_v11, %v11606_v11 }
 0x26f   : > { %v6004_v34 = vcombine.low %v5995_v59, %v6002_v4  ;;  %v5962_v31 = vrot.slane %v5954_v23, %v11339_v13  ;;  %v6030_v45 = vrot.slane %v8673_v40, %v11339_v13  ;;  %v6037_v25 = vrot.slane %v6021_v20, %v11339_v13 }
 0x270   : > { %v2430_v50 = vcombine.high %v2420_v2, %v2420_v2  ;;  %v5969_v19 = vrot.slane %v5955_v56, %v11339_v13  ;;  %v6011_v57 = vrot.slane %v6003_v10, %v11339_v13  ;;  %v3628_v16 = vcombine.low %v2420_v2, %v2428_v18  ;;  %v11692_v56 = vpop.f32.mrb[90].mxu0 }
 0x271   : > { %v6018_v42 = vrot.slane %v6004_v34, %v11339_v13  ;;  %v6052_v22 = vcombine.low %v6030_v45, %v6037_v25  ;;  %v3619_v12 = vrot.slane %v11596_v38, %v11339_v13  ;;  %v2334_v35 = vcombine.high %v11608_v5, %v11608_v5 }
 0x272   : > { %v3629_v8 = vcombine.low %v2430_v50, %v11606_v11  ;;  %v5970_v40 = vcombine.low %v5962_v31, %v5969_v19  ;;  %v11656_v43 = vcombine.low %v11640_v14, %v2429_v30  ;;  %v2341_v29 = vrot.slane %v11608_v5, %v11339_v13 }
 0x273   : > { %v6019_v9 = vcombine.low %v6011_v57, %v6018_v42  ;;  %v11661_v0 = vrot.slane %v6052_v22, %v11339_v13  ;;  %v3638_v2 = vrot.slane %v3628_v16, %v11339_v13  ;;  %v2348_v11 = vrot.slane %v2334_v35, %v11339_v13 }
 0x274   : > { %v3645_v38 = vrot.slane %v3629_v8, %v11339_v13  ;;  %6969 = vst [vmem:[#allocation3 + $0x18] sm:$0xff] %v5970_v40  ;;  %v2349_v18 = vcombine.high %v2341_v29, %v2341_v29  ;;  %v2357_v62 = vrot.slane %v2341_v29, %v11339_v13  ;;  %v11668_v54 = vrot.slane %v8674_v32, %v11339_v13 }
 0x275   : > { %6970 = vst [vmem:[#allocation3 + $0x20] sm:$0xff] %v6019_v9  ;;  %v1859_v5 = vadd.f32 %v11385_v28, %v11389_v7  ;;  %v2350_v49 = vcombine.high %v2348_v11, %v2348_v11  ;;  %v2364_v15 = vrot.slane %v2348_v11, %v11339_v13  ;;  %v2431_v53 = vcombine.high %v11640_v14, %v11640_v14 }
 0x276   : > { %v11672_v33 = vcombine.low %v3638_v2, %v3645_v38  ;;  %v2371_v59 = vrot.slane %v2349_v18, %v11339_v13  ;;  %v1864_v23 = vadd.f32 %v11381_v21, %v11411_v3  ;;  %v1869_v20 = vadd.f32 %v11403_v39, %v11444_v48  ;;  %v11696_v3 = vpop.f32.mrb[108].mxu1  ;;  %v11698_v48 = vpop.f32.mrb[91].mxu0 }
 0x277   : > { %v1945_v4 = vadd.f32 %v1859_v5, %v11279_v47  ;;  %v2378_v28 = vrot.slane %v2350_v49, %v11339_v13  ;;  %v3652_v7 = vrot.slane %v11656_v43, %v11339_v13  ;;  %v1874_v32 = vadd.f32 %v11398_v27, %v11461_v6 }
 0x278   : > { %v11690_v14 = vadd.f32 %v11437_v51, %v11472_v55  ;;  %v3557_v47 = vcombine.low %v2357_v62, %v2371_v59  ;;  %v8646_v10 = vcombine.high %v2357_v62, %v2371_v59  ;;  %v1946_v39 = vadd.f32 %v1864_v23, %v11276_v58  ;;  %v1725_v51 = vpop.f32.mrb[109].mxu1 }
 0x279   : > { %v1976_v21 = vadd.f32 %v11328_v52, %v1945_v4  ;;  %v3559_v34 = vcombine.low %v2364_v15, %v2378_v28  ;;  %v8647_v30 = vcombine.high %v2364_v15, %v2378_v28  ;;  %v1947_v27 = vadd.f32 %v1869_v20, %v11286_v17 }
 0x27a   : > { %v1948_v6 = vadd.f32 %v1874_v32, %v11283_v36  ;;  %v3573_v55 = vrot.slane %v3557_v47, %v11339_v13  ;;  %v3580_v31 = vrot.slane %v8646_v10, %v11339_v13  ;;  %v1977_v25 = vadd.f32 %v11328_v52, %v1946_v39 }
 0x27b   : > { %v2000_v45 = vmax.f32 %v1976_v21, 0.0  ;;  %v3587_v58 = vrot.slane %v3559_v34, %v11339_v13  ;;  %v3612_v50 = vrot.slane %v8647_v30, %v11339_v13  ;;  %v1978_v19 = vadd.f32 %v11328_v52, %v1947_v27 }
 0x27c   : > { %v1979_v57 = vadd.f32 %v11328_v52, %v1948_v6  ;;  %v3588_v17 = vcombine.low %v11555_v63, %v3573_v55  ;;  %v2001_v16 = vmax.f32 %v1977_v25, 0.0  ;;  %v3668_v22 = vrot.slane %v11672_v33, %v11339_v13 }
 0x27d   : > { %v2432_v42 = vcombine.high %v2000_v45, %v2000_v45  ;;  %v2439_v36 = vrot.slane %v2000_v45, %v11339_v13  ;;  %v3589_v8 = vcombine.low %v3580_v31, %v3587_v58  ;;  %v3620_v35 = vcombine.low %v3612_v50, %v3619_v12 }
 0x27e   : > { %v11713_v40 = vmax.f32 %v1978_v19, 0.0  ;;  %v11717_v38 = vmax.f32 %v1979_v57, 0.0  ;;  %v3596_v52 = vrot.slane %v3588_v17, %v11339_v13  ;;  %v2481_v18 = vcombine.high %v2001_v16, %v2001_v16  ;;  %v11741_v19 = vpop.f32.mrb[110].mxu1 }
 0x27f   : > { %v2446_v9 = vrot.slane %v2432_v42, %v11339_v13  ;;  %v2447_v29 = vcombine.high %v2439_v36, %v2439_v36  ;;  %v2455_v2 = vrot.slane %v2439_v36, %v11339_v13  ;;  %v3603_v63 = vrot.slane %v3589_v8, %v11339_v13 }
 0x280   : > { %v3627_v11 = vrot.slane %v3620_v35, %v11339_v13  ;;  %v2488_v6 = vrot.slane %v2001_v16, %v11339_v13  ;;  %v1730_v16 = vpop.f32.mrb[111].mxu1 }
 0x281   : > { %v2448_v62 = vcombine.high %v2446_v9, %v2446_v9  ;;  %v2462_v5 = vrot.slane %v2446_v9, %v11339_v13  ;;  %v2469_v12 = vrot.slane %v2447_v29, %v11339_v13  ;;  %v2477_v33 = vcombine.high %v2455_v2, %v2455_v2 }
 0x282   : > { %v3604_v49 = vcombine.low %v3596_v52, %v3603_v63  ;;  %v4513_v15 = vsel %vm3223_vm3, %v3627_v11, 0.0  ;;  %v8662_v59 = vcombine.low %v3603_v63, %v3603_v63  ;;  %v3631_v4 = vcombine.low %v2431_v53, %v2455_v2 }
 0x283   : > { %v4911_v23 = vrot.slane %v4513_v15, %v11339_v13  ;;  %v2476_v20 = vrot.slane %v2448_v62, %v11339_v13  ;;  %v2478_v28 = vcombine.high %v2462_v5, %v2462_v5  ;;  %v2479_v32 = vcombine.high %v2469_v12, %v2469_v12 }
 0x284   : > { %v4863_v47 = vrot.slane %v3604_v49, %v11339_v13  ;;  %v4870_v10 = vrot.slane %v8662_v59, %v11339_v13  ;;  %v3659_v21 = vrot.slane %v3631_v4, %v11339_v13  ;;  %v3677_v39 = vcombine.low %v2469_v12, %v2477_v33 }
 0x285   : > { %v4912_v34 = vcombine.high %v4911_v23, %v4911_v23  ;;  %v4919_v30 = vrot.slane %v4911_v23, %v11339_v13  ;;  %v3678_v27 = vcombine.low %v2479_v32, %v2462_v5  ;;  %v11734_v31 = vcombine.low %v2476_v20, %v2478_v28 }
 0x286   : > { %v4871_v53 = vcombine.high %v4863_v47, %v4863_v47  ;;  %v4872_v51 = vcombine.high %v4870_v10, %v4870_v10  ;;  %v4879_v55 = vrot.slane %v4863_v47, %v11339_v13  ;;  %v4886_v45 = vrot.slane %v4870_v10, %v11339_v13 }
 0x287   : > { %v4926_v25 = vrot.slane %v4912_v34, %v11339_v13  ;;  %v4927_v58 = vcombine.high %v4919_v30, %v4919_v30  ;;  %v3661_v50 = vcombine.low %v3652_v7, %v3659_v21  ;;  %v3687_v42 = vrot.slane %v3677_v39, %v11339_v13 }
 0x288   : > { %v4893_v57 = vrot.slane %v4871_v53, %v11339_v13  ;;  %v4900_v17 = vrot.slane %v4872_v51, %v11339_v13  ;;  %v3694_v36 = vrot.slane %v3678_v27, %v11339_v13  ;;  %v2480_v9 = vcombine.high %v2476_v20, %v2476_v20 }
 0x289   : > { %v6072_v8 = vcombine.low %v4919_v30, %v4926_v25  ;;  %v3675_v35 = vrot.slane %v3661_v50, %v11339_v13  ;;  %v2495_v29 = vrot.slane %v2481_v18, %v11339_v13  ;;  %v2496_v62 = vcombine.high %v2488_v6, %v2488_v6 }
 0x28a   : > { %v6023_v2 = vcombine.low %v4879_v55, %v4893_v57  ;;  %v8675_v43 = vcombine.high %v4879_v55, %v4893_v57  ;;  %v6070_v7 = vcombine.low %v4886_v45, %v4900_v17  ;;  %v8676_v52 = vcombine.high %v4886_v45, %v4900_v17 }
 0x28b   : > { %v6100_v63 = vrot.slane %v6072_v8, %v11339_v13  ;;  %v3676_v11 = vcombine.low %v3668_v22, %v3675_v35  ;;  %v2497_v5 = vcombine.high %v2495_v29, %v2495_v29  ;;  %v3709_v59 = vcombine.low %v3687_v42, %v3694_v36 }
 0x28c   : > { %v6051_v12 = vrot.slane %v6023_v2, %v11339_v13  ;;  %v6079_v33 = vrot.slane %v8675_v43, %v11339_v13  ;;  %v6086_v49 = vrot.slane %v6070_v7, %v11339_v13  ;;  %v6093_v15 = vrot.slane %v8676_v52, %v11339_v13 }
 0x28d   : > { %v4514_v18 = vsel %vm3218_vm1, %v3676_v11, 0.0  ;;  %v2504_v4 = vrot.slane %v2488_v6, %v11339_v13  ;;  %v2511_v23 = vrot.slane %v2495_v29, %v11339_v13  ;;  %v2518_v10 = vrot.slane %v2496_v62, %v11339_v13 }
 0x28e   : > { %v6053_v22 = vcombine.low %v11668_v54, %v6051_v12  ;;  %v6101_v20 = vcombine.low %v6079_v33, %v6086_v49  ;;  %v6102_v28 = vcombine.low %v6093_v15, %v6100_v63  ;;  %v4928_v32 = vcombine.high %v4514_v18, %v4514_v18  ;;  %v7114_v33 = vld [vmem:[#allocation3 + $0x14] sm:$0xff] }
 0x28f   : > { %v4935_v47 = vrot.slane %v4514_v18, %v11339_v13  ;;  %v2525_v21 = vrot.slane %v2497_v5, %v11339_v13  ;;  %v2526_v39 = vcombine.high %v2504_v4, %v2504_v4  ;;  %v2528_v51 = vcombine.high %v2518_v10, %v2518_v10  ;;  %7265 = vmatprep.mubr.f32.mxu0 %v7114_v33 }
 0x290   : > { %v6067_v34 = vrot.slane %v6053_v22, %v11339_v13  ;;  %v6109_v30 = vrot.slane %v6101_v20, %v11339_v13  ;;  %v6116_v27 = vrot.slane %v6102_v28, %v11339_v13  ;;  %v4942_v6 = vrot.slane %v4928_v32, %v11339_v13 }
 0x291   : > { %v4943_v53 = vcombine.high %v4935_v47, %v4935_v47  ;;  %v4951_v54 = vrot.slane %v4935_v47, %v11339_v13  ;;  %v3680_v55 = vcombine.low %v2480_v9, %v2504_v4  ;;  %v3701_v16 = vrot.slane %v11734_v31, %v11339_v13 }
 0x292   : > { %v6068_v45 = vcombine.low %v11661_v0, %v6067_v34  ;;  %v6117_v25 = vcombine.low %v6109_v30, %v6116_v27  ;;  %v4944_v50 = vcombine.high %v4942_v6, %v4942_v6  ;;  %v4958_v57 = vrot.slane %v4942_v6, %v11339_v13 }
 0x293   : > { %v4965_v17 = vrot.slane %v4943_v53, %v11339_v13  ;;  %v4973_v42 = vcombine.high %v4951_v54, %v4951_v54  ;;  %v6118_v36 = vcombine.low %v4927_v58, %v4951_v54  ;;  %v3708_v9 = vrot.slane %v3680_v55, %v11339_v13 }
 0x294   : > { %6971 = vst [vmem:[#allocation3 + $0x28] sm:$0xff] %v6068_v45  ;;  %6972 = vst [vmem:[#allocation3 + $0x30] sm:$0xff] %v6117_v25  ;;  %v4972_v8 = vrot.slane %v4944_v50, %v11339_v13  ;;  %v4974_v35 = vcombine.high %v4958_v57, %v4958_v57  ;;  %v3726_v29 = vcombine.low %v2518_v10, %v2526_v39  ;;  %v11795_v39 = vpop.f32.mrb[112].mxu1 }
 0x295   : > { %v3717_v0 = vrot.slane %v3709_v59, %v11339_v13  ;;  %v4975_v2 = vcombine.high %v4965_v17, %v4965_v17  ;;  %v6119_v43 = vcombine.low %v4965_v17, %v4973_v42  ;;  %v3740_v7 = vrot.slane %v2528_v51, %v11339_v13  ;;  %v1735_v54 = vpop.f32.mrb[113].mxu1 }
 0x296   : > { %v6121_v52 = vcombine.low %v4972_v8, %v4974_v35  ;;  %v3710_v63 = vcombine.low %v3701_v16, %v3708_v9  ;;  %v3733_v58 = vrot.slane %v3726_v29, %v11339_v13  ;;  %v3749_v11 = vcombine.low %v2511_v23, %v2525_v21 }
 0x297   : > { %v6120_v31 = vcombine.low %v4975_v2, %v4958_v57  ;;  %v6128_v62 = vrot.slane %v6118_v36, %v11339_v13  ;;  %v6135_v5 = vrot.slane %v6119_v43, %v11339_v13  ;;  %v8648_v12 = vcombine.high %v2511_v23, %v2525_v21  ;;  %v11790_v23 = vpop.f32.mrb[92].mxu0 }
 0x298   : > { %v6149_v49 = vrot.slane %v6121_v52, %v11339_v13  ;;  %v3724_v15 = vrot.slane %v3710_v63, %v11339_v13  ;;  %v3741_v59 = vcombine.low %v3733_v58, %v3740_v7  ;;  %v11782_v18 = vrot.slane %v3749_v11, %v11339_v13  ;;  %v11797_v34 = vpop.f32.mrb[93].mxu0 }
 0x299   : > { %v6142_v4 = vrot.slane %v6120_v31, %v11339_v13  ;;  %v6150_v22 = vcombine.low %v6128_v62, %v6135_v5  ;;  %v11786_v20 = vrot.slane %v8648_v12, %v11339_v13  ;;  %v2530_v28 = vcombine.high %v11713_v40, %v11713_v40 }
 0x29a   : > { %v3725_v32 = vcombine.low %v3717_v0, %v3724_v15  ;;  %v3748_v47 = vrot.slane %v3741_v59, %v11339_v13  ;;  %v8663_v10 = vcombine.low %v3724_v15, %v3724_v15  ;;  %v2537_v21 = vrot.slane %v11713_v40, %v11339_v13 }
 0x29b   : > { %v6151_v30 = vcombine.low %v6142_v4, %v6149_v49  ;;  %v6158_v27 = vrot.slane %v6150_v22, %v11339_v13  ;;  %v4976_v6 = vcombine.high %v4972_v8, %v4972_v8  ;;  %v2544_v53 = vrot.slane %v2530_v28, %v11339_v13  ;;  %v11820_v4 = vpop.f32.mrb[114].mxu1 }
 0x29c   : > { %v3781_v51 = vcombine.low %v11782_v18, %v11786_v20  ;;  %v4516_v55 = vsel %vm3223_vm3, %v3748_v47, 0.0  ;;  %v4984_v45 = vrot.slane %v3725_v32, %v11339_v13  ;;  %v4991_v40 = vrot.slane %v8663_v10, %v11339_v13  ;;  %v1740_v47 = vpop.f32.mrb[115].mxu1 }
 0x29d   : > { %v6165_v25 = vrot.slane %v6151_v30, %v11339_v13  ;;  %v5032_v50 = vrot.slane %v4516_v55, %v11339_v13  ;;  %v2545_v57 = vcombine.high %v2537_v21, %v2537_v21  ;;  %v2546_v17 = vcombine.high %v2544_v53, %v2544_v53 }
 0x29e   : > { %v4992_v42 = vcombine.high %v4984_v45, %v4984_v45  ;;  %v4993_v36 = vcombine.high %v4991_v40, %v4991_v40  ;;  %v5000_v16 = vrot.slane %v4984_v45, %v11339_v13  ;;  %v5007_v8 = vrot.slane %v4991_v40, %v11339_v13 }
 0x29f   : > { %v6166_v35 = vcombine.low %v6158_v27, %v6165_v25  ;;  %v5033_v9 = vcombine.high %v5032_v50, %v5032_v50  ;;  %v5040_v29 = vrot.slane %v5032_v50, %v11339_v13  ;;  %v2553_v0 = vrot.slane %v2537_v21, %v11339_v13 }
 0x2a0   : > { %v5014_v2 = vrot.slane %v4992_v42, %v11339_v13  ;;  %v5021_v43 = vrot.slane %v4993_v36, %v11339_v13  ;;  %v5022_v7 = vcombine.high %v5000_v16, %v5000_v16  ;;  %v5023_v52 = vcombine.high %v5007_v8, %v5007_v8 }
 0x2a1   : > { %6973 = vst [vmem:[#allocation3 + $0x38] sm:$0xff] %v6166_v35  ;;  %v5047_v63 = vrot.slane %v5033_v9, %v11339_v13  ;;  %v5048_v58 = vcombine.high %v5040_v29, %v5040_v29  ;;  %v6167_v11 = vcombine.low %v4976_v6, %v5000_v16  ;;  %v2560_v31 = vrot.slane %v2544_v53, %v11339_v13 }
 0x2a2   : > { %v5024_v62 = vcombine.high %v5014_v2, %v5014_v2  ;;  %v5025_v5 = vcombine.high %v5021_v43, %v5021_v43  ;;  %v6168_v12 = vcombine.low %v5014_v2, %v5022_v7  ;;  %v6170_v33 = vcombine.low %v5021_v43, %v5023_v52 }
 0x2a3   : > { %v6177_v49 = vrot.slane %v6167_v11, %v11339_v13  ;;  %v6217_v15 = vcombine.low %v5047_v63, %v5048_v58  ;;  %v2567_v59 = vrot.slane %v2545_v57, %v11339_v13  ;;  %v2574_v18 = vrot.slane %v2546_v17, %v11339_v13  ;;  %v7169_v57 = vld [vmem:[#allocation5 + $0x200] sm:$0xff]  ;;  %v7170_v17 = vld [vmem:[#allocation5 + $0x208] sm:$0xff] }
 0x2a4   : > { %v6169_v22 = vcombine.low %v5024_v62, %v5007_v8  ;;  %v6184_v20 = vrot.slane %v6168_v12, %v11339_v13  ;;  %v6198_v28 = vrot.slane %v6170_v33, %v11339_v13  ;;  %v6216_v32 = vcombine.low %v5025_v5, %v5040_v29  ;;  %v7193_v63 = vld [vmem:[#allocation5 + $0x2c0] sm:$0xff]  ;;  %v7194_v58 = vld [vmem:[#allocation5 + $0x2c8] sm:$0xff]  ;;  %v7171_v5 = vld [vmem:[#allocation5 + $0x210] sm:$0xff] }
 0x2a5   : > { %v6233_v10 = vrot.slane %v6217_v15, %v11339_v13  ;;  %v3751_v21 = vcombine.low %v2553_v0, %v2567_v59  ;;  %v8649_v30 = vcombine.high %v2553_v0, %v2567_v59  ;;  %v3798_v27 = vcombine.low %v2560_v31, %v2574_v18  ;;  %v7172_v12 = vld [vmem:[#allocation5 + $0x218] sm:$0xff] }
 0x2a6   : > { %v6191_v6 = vrot.slane %v6169_v22, %v11339_v13  ;;  %v6199_v53 = vcombine.low %v6177_v49, %v6184_v20  ;;  %v6226_v54 = vrot.slane %v6216_v32, %v11339_v13  ;;  %v8650_v55 = vcombine.high %v2560_v31, %v2574_v18 }
 0x2a7   : > { %v3773_v45 = vrot.slane %v3751_v21, %v11339_v13  ;;  %v3780_v40 = vrot.slane %v8649_v30, %v11339_v13  ;;  %v3808_v25 = vrot.slane %v3798_v27, %v11339_v13  ;;  %v2579_v50 = vcombine.high %v11717_v38, %v11717_v38  ;;  %v11861_v21 = vpop.f32.mrb[94].mxu0 }
 0x2a8   : > { %v6200_v42 = vcombine.low %v6191_v6, %v6198_v28  ;;  %v6207_v36 = vrot.slane %v6199_v53, %v11339_v13  ;;  %v11833_v16 = vcombine.low %v6226_v54, %v6233_v10  ;;  %v3815_v8 = vrot.slane %v8650_v55, %v11339_v13  ;;  %v11866_v54 = vpop.f32.mrb[116].mxu1  ;;  %v11868_v55 = vpop.f32.mrb[95].mxu0 }
 0x2a9   : > { %v3782_v35 = vcombine.low %v3773_v45, %v3780_v40  ;;  %v2586_v9 = vrot.slane %v11717_v38, %v11339_v13  ;;  %v2593_v29 = vrot.slane %v2579_v50, %v11339_v13  ;;  %v1949_v0 = vadd.f32 %v11690_v14, %v11293_v44 }
 0x2aa   : > { %v3789_v2 = vrot.slane %v3781_v51, %v11339_v13  ;;  %v6214_v43 = vrot.slane %v6200_v42, %v11339_v13  ;;  %v6256_v7 = vrot.slane %v11833_v16, %v11339_v13  ;;  %v9656_v52 = vpack.c.bf16 %v7170_v17, %v7169_v57  ;;  %v11851_v51 = vld [vmem:[%s12976_s2] ss:$0 sm:$0xff] }
 0x2ab   : > { %v3796_v11 = vrot.slane %v3782_v35, %v11339_v13  ;;  %v3830_v31 = vcombine.low %v3808_v25, %v3815_v8  ;;  %v2594_v62 = vcombine.high %v2586_v9, %v2586_v9  ;;  %v2595_v38 = vcombine.high %v2593_v29, %v2593_v29  ;;  %v1745_v25 = vpop.f32.mrb[117].mxu1 }
 0x2ac   : > { %v6215_v33 = vcombine.low %v6207_v36, %v6214_v43  ;;  %v2602_v44 = vrot.slane %v2586_v9, %v11339_v13  ;;  %v2609_v14 = vrot.slane %v2593_v29, %v11339_v13  ;;  %v1980_v49 = vadd.f32 %v11851_v51, %v1949_v0  ;;  %9657 = vmatpush1.bf16.msra.mxu0 %v9656_v52  ;;  %v13017_v43 = vld [vmem:[#allocation14_spill] sm:$0xff] }
 0x2ad   : > { %v3797_v15 = vcombine.low %v3789_v2, %v3796_v11  ;;  %v2616_v59 = vrot.slane %v2594_v62, %v11339_v13  ;;  %v11856_v18 = vrot.slane %v2595_v38, %v11339_v13  ;;  %v9692_v22 = vpack.c.bf16 %v7194_v58, %v7193_v63 }
 0x2ae   : > { %v13016_v20 = vmov 0.0|0.0   ;;  %6974 = vst [vmem:[#allocation3 + $0x40] sm:$0xff] %v6215_v33  ;;  %v2625_v28 = vcombine.high %v2609_v14, %v2609_v14  ;;  %v2004_v32 = vmax.f32 %v1980_v49, 0.0  ;;  %v1884_v47 = vadd.f32 %v11425_v46, %v11481_v41 }
 0x2af   : > { %9658 = vmatprep.subr.bf16.mxu0 %v13016_v20  ;;  %v9659_v10 = vpack.c.bf16 %v7172_v12, %v7171_v5  ;;  %v4517_v30 = vsel %vm3218_vm1, %v3797_v15, 0.0  ;;  %v3800_v27 = vcombine.low %v2602_v44, %v2616_v59  ;;  %v8651_v6 = vcombine.high %v2602_v44, %v2616_v59  ;;  %9693 = vmatpush3.bf16.msra.mxu1 %v9692_v22 }
 0x2b0   : > { %v3847_v53 = vcombine.low %v2609_v14, %v11856_v18  ;;  %v3838_v45 = vrot.slane %v3830_v31, %v11339_v13  ;;  %v5049_v40 = vcombine.high %v4517_v30, %v4517_v30  ;;  %v5056_v46 = vrot.slane %v4517_v30, %v11339_v13  ;;  %9694 = vmatprep.subr.bf16.mxu1 %v13016_v20 }
 0x2b1   : > { %v3861_v41 = vrot.slane %v2625_v28, %v11339_v13  ;;  %9660 = vmatpush1.bf16.msra.mxu0 %v9659_v10  ;;  %v3822_v50 = vrot.slane %v3800_v27, %v11339_v13  ;;  %v3829_v57 = vrot.slane %v8651_v6, %v11339_v13  ;;  %v2628_v42 = vcombine.high %v2004_v32, %v2004_v32 }
 0x2b2   : > { %v3854_v17 = vrot.slane %v3847_v53, %v11339_v13  ;;  %9661 = vmatprep.subr.bf16.mxu0 %v13016_v20  ;;  %v5063_v36 = vrot.slane %v5049_v40, %v11339_v13  ;;  %v5064_v8 = vcombine.high %v5056_v46, %v5056_v46  ;;  %v2627_v35 = vcombine.high %v11856_v18, %v11856_v18 }
 0x2b3   : > { %v2635_v9 = vrot.slane %v2004_v32, %v11339_v13  ;;  %v3831_v29 = vcombine.low %v3822_v50, %v3829_v57  ;;  %v2642_v2 = vrot.slane %v2628_v42, %v11339_v13  ;;  %v11884_v52 = vadd.f32 %v1884_v47, %v13017_v43 }
 0x2b4   : > { %v3862_v0 = vcombine.low %v3854_v17, %v3861_v41  ;;  %v5065_v63 = vcombine.high %v5063_v36, %v5063_v36  ;;  %v5072_v58 = vrot.slane %v5056_v46, %v11339_v13  ;;  %v5079_v11 = vrot.slane %v5063_v36, %v11339_v13 }
 0x2b5   : > { %v5086_v31 = vrot.slane %v5064_v8, %v11339_v13  ;;  %v3845_v62 = vrot.slane %v3831_v29, %v11339_v13  ;;  %v2643_v5 = vcombine.high %v2635_v9, %v2635_v9  ;;  %v2644_v12 = vcombine.high %v2642_v2, %v2642_v2 }
 0x2b6   : > { %v3869_v38 = vrot.slane %v3862_v0, %v11339_v13  ;;  %v5093_v33 = vrot.slane %v5065_v63, %v11339_v13  ;;  %v2651_v49 = vrot.slane %v2635_v9, %v11339_v13  ;;  %v2658_v22 = vrot.slane %v2642_v2, %v11339_v13 }
 0x2b7   : > { %v6218_v44 = vcombine.low %v5072_v58, %v5086_v31  ;;  %v8677_v14 = vcombine.high %v5072_v58, %v5086_v31  ;;  %v3846_v15 = vcombine.low %v3838_v45, %v3845_v62  ;;  %v8664_v18 = vcombine.low %v3845_v62, %v3845_v62 }
 0x2b8   : > { %v4519_v59 = vsel %vm3223_vm3, %v3869_v38, 0.0  ;;  %v6265_v47 = vcombine.low %v5079_v11, %v5093_v33  ;;  %v8678_v10 = vcombine.high %v5079_v11, %v5093_v33  ;;  %v2665_v53 = vrot.slane %v2643_v5, %v11339_v13 }
 0x2b9   : > { %v6240_v28 = vrot.slane %v6218_v44, %v11339_v13  ;;  %v6247_v32 = vrot.slane %v8677_v14, %v11339_v13  ;;  %v5105_v30 = vrot.slane %v3846_v15, %v11339_v13  ;;  %v5112_v27 = vrot.slane %v8664_v18, %v11339_v13 }
 0x2ba   : > { %v5153_v6 = vrot.slane %v4519_v59, %v11339_v13  ;;  %v6275_v40 = vrot.slane %v6265_v47, %v11339_v13  ;;  %v6282_v46 = vrot.slane %v8678_v10, %v11339_v13  ;;  %v11905_v41 = vrot.slane %v2644_v12, %v11339_v13  ;;  %v11921_v59 = vpop.f32.mrb[118].mxu1 }
 0x2bb   : > { %v6249_v45 = vcombine.low %v6240_v28, %v6247_v32  ;;  %v5113_v25 = vcombine.high %v5105_v30, %v5105_v30  ;;  %v5114_v50 = vcombine.high %v5112_v27, %v5112_v27  ;;  %v5121_v57 = vrot.slane %v5105_v30, %v11339_v13  ;;  %v1750_v32 = vpop.f32.mrb[119].mxu1  ;;  %v7174_v30 = vld [vmem:[#allocation5 + $0x228] sm:$0xff] }
 0x2bc   : > { %v2673_v17 = vcombine.high %v2651_v49, %v2651_v49  ;;  %v6297_v36 = vcombine.low %v6275_v40, %v6282_v46  ;;  %v5128_v8 = vrot.slane %v5112_v27, %v11339_v13  ;;  %v5154_v9 = vcombine.high %v5153_v6, %v5153_v6 }
 0x2bd   : > { %v6263_v42 = vrot.slane %v6249_v45, %v11339_v13  ;;  %v5135_v29 = vrot.slane %v5113_v25, %v11339_v13  ;;  %v5142_v0 = vrot.slane %v5114_v50, %v11339_v13  ;;  %v11913_v2 = vrot.slane %v5153_v6, %v11339_v13 }
 0x2be   : > { %v2675_v43 = vcombine.high %v2665_v53, %v2665_v53  ;;  %v6305_v58 = vrot.slane %v6297_v36, %v11339_v13  ;;  %v5168_v11 = vrot.slane %v5154_v9, %v11339_v13  ;;  %v2674_v31 = vcombine.high %v2658_v22, %v2658_v22 }
 0x2bf   : > { %v6264_v63 = vcombine.low %v6256_v7, %v6263_v42  ;;  %v6267_v62 = vcombine.low %v5121_v57, %v5135_v29  ;;  %v8679_v38 = vcombine.high %v5121_v57, %v5135_v29  ;;  %v6314_v5 = vcombine.low %v5128_v8, %v5142_v0  ;;  %v7175_v57 = vld [vmem:[#allocation5 + $0x230] sm:$0xff] }
 0x2c0   : > { %v8680_v12 = vcombine.high %v5128_v8, %v5142_v0  ;;  %v6316_v33 = vcombine.low %v11913_v2, %v5168_v11  ;;  %v3870_v44 = vcombine.low %v2627_v35, %v2651_v49  ;;  %v3871_v14 = vcombine.low %v2665_v53, %v2673_v17  ;;  %v7176_v17 = vld [vmem:[#allocation5 + $0x238] sm:$0xff]  ;;  %v7195_v29 = vld [vmem:[#allocation5 + $0x2d0] sm:$0xff] }
 0x2c1   : > { %6975 = vst [vmem:[#allocation3 + $0x48] sm:$0xff] %v6264_v63  ;;  %v3872_v15 = vcombine.low %v2675_v43, %v2658_v22  ;;  %v6289_v16 = vrot.slane %v6267_v62, %v11339_v13  ;;  %v6296_v7 = vrot.slane %v8679_v38, %v11339_v13  ;;  %v6324_v18 = vrot.slane %v6314_v5, %v11339_v13  ;;  %v7173_v22 = vld [vmem:[#allocation5 + $0x220] sm:$0xff]  ;;  %v7196_v0 = vld [vmem:[#allocation5 + $0x2d8] sm:$0xff] }
 0x2c2   : > { %v6331_v28 = vrot.slane %v8680_v12, %v11339_v13  ;;  %v5169_v47 = vcombine.high %v11913_v2, %v11913_v2  ;;  %v3873_v10 = vcombine.low %v11905_v41, %v2674_v31  ;;  %v3880_v35 = vrot.slane %v3870_v44, %v11339_v13  ;;  %v13018_v63 = vld [vmem:[#allocation16_spill] sm:$0xff]  ;;  %v7178_v12 = vld [vmem:[#allocation5 + $0x248] sm:$0xff]  ;;  %v13019_v44 = vld [vmem:[#allocation15_spill] sm:$0xff] }
 0x2c3   : > { %v3887_v49 = vrot.slane %v3871_v14, %v11339_v13  ;;  %v6298_v27 = vcombine.low %v6289_v16, %v6296_v7  ;;  %v11933_v6 = vrot.slane %v6316_v33, %v11339_v13  ;;  %v3894_v53 = vrot.slane %v3872_v15, %v11339_v13  ;;  %v7177_v5 = vld [vmem:[#allocation5 + $0x240] sm:$0xff]  ;;  %v13020_v16 = vld [vmem:[#allocation26_spill] sm:$0xff]  ;;  %v13021_v7 = vld [vmem:[#allocation27_spill] sm:$0xff] }
 0x2c4   : > { %v1981_v45 = vadd.f32 %v11851_v51, %v11884_v52  ;;  %v6346_v40 = vcombine.low %v6324_v18, %v6331_v28  ;;  %v3901_v46 = vrot.slane %v3873_v10, %v11339_v13  ;;  %v1889_v50 = vadd.f32 %v11490_v60, %v11498_v1 }
 0x2c5   : > { %v3902_v25 = vcombine.low %v3880_v35, %v3887_v49  ;;  %v6312_v42 = vrot.slane %v6298_v27, %v11339_v13  ;;  %v2676_v8 = vcombine.high %v11905_v41, %v11905_v41  ;;  %v9662_v9 = vpack.c.bf16 %v7174_v30, %v7173_v22 }
 0x2c6   : > { %v2005_v36 = vmax.f32 %v1981_v45, 0.0  ;;  %v3903_v43 = vcombine.low %v3894_v53, %v3901_v46  ;;  %v1951_v11 = vadd.f32 %v1889_v50, %v13018_v63  ;;  %v1894_v31 = vadd.f32 %v11486_v37, %v11543_v26 }
 0x2c7   : > { %v3910_v52 = vrot.slane %v3902_v25, %v11339_v13  ;;  %v6313_v60 = vcombine.low %v6305_v58, %v6312_v42  ;;  %9663 = vmatpush1.bf16.msra.mxu0 %v9662_v9  ;;  %v9665_v38 = vpack.c.bf16 %v7176_v17, %v7175_v57  ;;  %v9695_v15 = vpack.c.bf16 %v7196_v0, %v7195_v29 }
 0x2c8   : > { %v2677_v1 = vcombine.high %v2005_v36, %v2005_v36  ;;  %v2684_v62 = vrot.slane %v2005_v36, %v11339_v13  ;;  %v3917_v41 = vrot.slane %v3903_v43, %v11339_v13  ;;  %v1982_v33 = vadd.f32 %v11851_v51, %v1951_v11  ;;  %9664 = vmatprep.subr.bf16.mxu0 %v13016_v20 }
 0x2c9   : > { %v1952_v14 = vadd.f32 %v1894_v31, %v13019_v44  ;;  %6976 = vst [vmem:[#allocation3 + $0x50] sm:$0xff] %v6313_v60  ;;  %v11957_v18 = vadd.f32 %v13021_v7, %v13020_v16  ;;  %v11960_v28 = vrot.slane %v6346_v40, %v11339_v13  ;;  %9696 = vmatpush3.bf16.msra.mxu1 %v9695_v15 }
 0x2ca   : > { %v2691_v37 = vrot.slane %v2677_v1, %v11339_v13  ;;  %v2692_v26 = vcombine.high %v2684_v62, %v2684_v62  ;;  %v2700_v58 = vrot.slane %v2684_v62, %v11339_v13  ;;  %v3918_v32 = vcombine.low %v3910_v52, %v3917_v41  ;;  %9697 = vmatprep.subr.bf16.mxu1 %v13016_v20 }
 0x2cb   : > { %v2006_v10 = vmax.f32 %v1982_v33, 0.0  ;;  %v9668_v35 = vpack.c.bf16 %v7178_v12, %v7177_v5  ;;  %9666 = vmatpush1.bf16.msra.mxu0 %v9665_v38  ;;  %v11973_v29 = vadd.f32 %v11851_v51, %v1952_v14 }
 0x2cc   : > { %v2693_v49 = vcombine.high %v2691_v37, %v2691_v37  ;;  %v2707_v22 = vrot.slane %v2691_v37, %v11339_v13  ;;  %v2714_v30 = vrot.slane %v2692_v26, %v11339_v13  ;;  %v2722_v27 = vcombine.high %v2700_v58, %v2700_v58  ;;  %9667 = vmatprep.subr.bf16.mxu0 %v13016_v20 }
 0x2cd   : > { %v4520_v53 = vsel %vm3218_vm1, %v3918_v32, 0.0  ;;  %v3919_v45 = vcombine.low %v2676_v8, %v2700_v58  ;;  %v2726_v46 = vcombine.high %v2006_v10, %v2006_v10  ;;  %v2733_v25 = vrot.slane %v2006_v10, %v11339_v13 }
 0x2ce   : > { %v5170_v40 = vcombine.high %v4520_v53, %v4520_v53  ;;  %v5177_v50 = vrot.slane %v4520_v53, %v11339_v13  ;;  %v2721_v57 = vrot.slane %v2693_v49, %v11339_v13  ;;  %v2723_v17 = vcombine.high %v2707_v22, %v2707_v22 }
 0x2cf   : > { %v2724_v42 = vcombine.high %v2714_v30, %v2714_v30  ;;  %v3920_v36 = vcombine.low %v2714_v30, %v2722_v27  ;;  %v3929_v9 = vrot.slane %v3919_v45, %v11339_v13  ;;  %9669 = vmatpush1.bf16.msra.mxu0 %v9668_v35  ;;  %v2740_v31 = vrot.slane %v2726_v46, %v11339_v13 }
 0x2d0   : > { %v5184_v8 = vrot.slane %v5170_v40, %v11339_v13  ;;  %v5185_v0 = vcombine.high %v5177_v50, %v5177_v50  ;;  %v5193_v43 = vrot.slane %v5177_v50, %v11339_v13  ;;  %v3922_v52 = vcombine.low %v2721_v57, %v2723_v17  ;;  %9670 = vmatprep.subr.bf16.mxu0 %v13016_v20 }
 0x2d1   : > { %v3921_v63 = vcombine.low %v2724_v42, %v2707_v22  ;;  %v3936_v11 = vrot.slane %v3920_v36, %v11339_v13  ;;  %v2741_v60 = vcombine.high %v2733_v25, %v2733_v25  ;;  %v2725_v7 = vcombine.high %v2721_v57, %v2721_v57 }
 0x2d2   : > { %v5186_v1 = vcombine.high %v5184_v8, %v5184_v8  ;;  %v5200_v62 = vrot.slane %v5184_v8, %v11339_v13  ;;  %v5207_v38 = vrot.slane %v5185_v0, %v11339_v13  ;;  %v5215_v5 = vcombine.high %v5193_v43, %v5193_v43 }
 0x2d3   : > { %v6317_v12 = vcombine.low %v5169_v47, %v5193_v43  ;;  %v3943_v41 = vrot.slane %v3921_v63, %v11339_v13  ;;  %v3950_v33 = vrot.slane %v3922_v52, %v11339_v13  ;;  %v3951_v44 = vcombine.low %v3929_v9, %v3936_v11 }
 0x2d4   : > { %v5214_v14 = vrot.slane %v5186_v1, %v11339_v13  ;;  %v5216_v15 = vcombine.high %v5200_v62, %v5200_v62  ;;  %v5217_v37 = vcombine.high %v5207_v38, %v5207_v38  ;;  %v6363_v26 = vcombine.low %v5207_v38, %v5215_v5 }
 0x2d5   : > { %v6345_v58 = vrot.slane %v6317_v12, %v11339_v13  ;;  %v3952_v16 = vcombine.low %v3943_v41, %v3950_v33  ;;  %v2742_v32 = vcombine.high %v2740_v31, %v2740_v31  ;;  %v3959_v47 = vrot.slane %v3951_v44, %v11339_v13 }
 0x2d6   : > { %v6364_v10 = vcombine.low %v5217_v37, %v5200_v62  ;;  %v6365_v35 = vcombine.low %v5214_v14, %v5216_v15  ;;  %v6373_v2 = vrot.slane %v6363_v26, %v11339_v13  ;;  %v5218_v30 = vcombine.high %v5214_v14, %v5214_v14 }
 0x2d7   : > { %v6347_v49 = vcombine.low %v11933_v6, %v6345_v58  ;;  %v3966_v22 = vrot.slane %v3952_v16, %v11339_v13  ;;  %v2749_v27 = vrot.slane %v2733_v25, %v11339_v13  ;;  %v2756_v45 = vrot.slane %v2740_v31, %v11339_v13 }
 0x2d8   : > { %v6380_v53 = vrot.slane %v6364_v10, %v11339_v13  ;;  %v2763_v46 = vrot.slane %v2741_v60, %v11339_v13  ;;  %v2770_v40 = vrot.slane %v2742_v32, %v11339_v13  ;;  %v6387_v6 = vrot.slane %v6365_v35, %v11339_v13 }
 0x2d9   : > { %v6361_v50 = vrot.slane %v6347_v49, %v11339_v13  ;;  %v3967_v57 = vcombine.low %v3959_v47, %v3966_v22  ;;  %v8665_v17 = vcombine.low %v3966_v22, %v3966_v22  ;;  %v3968_v42 = vcombine.low %v2725_v7, %v2749_v27 }
 0x2da   : > { %v6395_v36 = vcombine.low %v6373_v2, %v6380_v53  ;;  %v8652_v9 = vcombine.high %v2749_v27, %v2763_v46  ;;  %v3992_v8 = vcombine.low %v2756_v45, %v2770_v40  ;;  %v3982_v63 = vrot.slane %v2763_v46, %v11339_v13 }
 0x2db   : > { %v6362_v25 = vcombine.low %v11960_v28, %v6361_v50  ;;  %v5226_v0 = vrot.slane %v3967_v57, %v11339_v13  ;;  %v5233_v43 = vrot.slane %v8665_v17, %v11339_v13  ;;  %v3975_v52 = vrot.slane %v3968_v42, %v11339_v13 }
 0x2dc   : > { %v8653_v11 = vcombine.high %v2756_v45, %v2770_v40  ;;  %v4001_v31 = vrot.slane %v8652_v9, %v11339_v13  ;;  %v4008_v60 = vrot.slane %v3992_v8, %v11339_v13  ;;  %v6403_v5 = vrot.slane %v6395_v36, %v11339_v13 }
 0x2dd   : > { %6977 = vst [vmem:[#allocation3 + $0x58] sm:$0xff] %v6362_v25  ;;  %v5234_v1 = vcombine.high %v5226_v0, %v5226_v0  ;;  %v5235_v62 = vcombine.high %v5233_v43, %v5233_v43  ;;  %v5242_v38 = vrot.slane %v5226_v0, %v11339_v13  ;;  %v5249_v28 = vrot.slane %v5233_v43, %v11339_v13  ;;  %v13022_v43 = vld [vmem:[#allocation18_spill] sm:$0xff] }
 0x2de   : > { %v3983_v12 = vcombine.low %v3975_v52, %v3982_v63  ;;  %v4023_v41 = vcombine.low %v4001_v31, %v4008_v60  ;;  %v2007_v33 = vmax.f32 %v11973_v29, 0.0  ;;  %v4015_v16 = vrot.slane %v8653_v11, %v11339_v13 }
 0x2df   : > { %v5256_v44 = vrot.slane %v5234_v1, %v11339_v13  ;;  %v5263_v14 = vrot.slane %v5235_v62, %v11339_v13  ;;  %v5264_v15 = vcombine.high %v5242_v38, %v5242_v38  ;;  %v5265_v37 = vcombine.high %v5249_v28, %v5249_v28 }
 0x2e0   : > { %v6366_v26 = vcombine.low %v5218_v30, %v5242_v38  ;;  %v3990_v58 = vrot.slane %v3983_v12, %v11339_v13  ;;  %v2775_v7 = vcombine.high %v2007_v33, %v2007_v33  ;;  %v12016_v2 = vrot.slane %v4023_v41, %v11339_v13 }
 0x2e1   : > { %v5266_v32 = vcombine.high %v5256_v44, %v5256_v44  ;;  %v6412_v10 = vcombine.low %v5256_v44, %v5264_v15  ;;  %v6414_v35 = vcombine.low %v5263_v14, %v5265_v37  ;;  %v2782_v49 = vrot.slane %v2007_v33, %v11339_v13  ;;  %v7179_v44 = vld [vmem:[#allocation5 + $0x250] sm:$0xff] }
 0x2e2   : > { %v6394_v29 = vrot.slane %v6366_v26, %v11339_v13  ;;  %v4522_v47 = vsel %vm3223_vm3, %v3990_v58, 0.0  ;;  %v2789_v22 = vrot.slane %v2775_v7, %v11339_v13  ;;  %v5267_v53 = vcombine.high %v5263_v14, %v5263_v14  ;;  %v7180_v14 = vld [vmem:[#allocation5 + $0x258] sm:$0xff]  ;;  %v7197_v26 = vld [vmem:[#allocation5 + $0x2e0] sm:$0xff]  ;;  %v7198_v58 = vld [vmem:[#allocation5 + $0x2e8] sm:$0xff] }
 0x2e3   : > { %v6413_v30 = vcombine.low %v5266_v32, %v5249_v28  ;;  %v6422_v27 = vrot.slane %v6412_v10, %v11339_v13  ;;  %v5274_v45 = vrot.slane %v4522_v47, %v11339_v13  ;;  %v2790_v40 = vcombine.high %v2782_v49, %v2782_v49 }
 0x2e4   : > { %v6396_v46 = vcombine.low %v6387_v6, %v6394_v29  ;;  %v2791_v50 = vcombine.high %v2789_v22, %v2789_v22  ;;  %v2798_v57 = vrot.slane %v2782_v49, %v11339_v13  ;;  %v2805_v9 = vrot.slane %v2789_v22, %v11339_v13  ;;  %v13024_v29 = vld [vmem:[#allocation25_spill] sm:$0xff] }
 0x2e5   : > { %v6429_v17 = vrot.slane %v6413_v30, %v11339_v13  ;;  %v5275_v42 = vcombine.high %v5274_v45, %v5274_v45  ;;  %v5282_v36 = vrot.slane %v5274_v45, %v11339_v13  ;;  %v2812_v25 = vrot.slane %v2790_v40, %v11339_v13  ;;  %v13025_v45 = vld [vmem:[#allocation17_spill] sm:$0xff] }
 0x2e6   : > { %v6410_v8 = vrot.slane %v6396_v46, %v11339_v13  ;;  %v2819_v0 = vrot.slane %v2791_v50, %v11339_v13  ;;  %v1953_v6 = vadd.f32 %v11957_v18, %v13022_v43  ;;  %v6436_v28 = vrot.slane %v6414_v35, %v11339_v13  ;;  %v13023_v35 = vld [vmem:[#allocation28_spill] sm:$0xff] }
 0x2e7   : > { %v6444_v52 = vcombine.low %v6422_v27, %v6429_v17  ;;  %v5289_v63 = vrot.slane %v5275_v42, %v11339_v13  ;;  %v5290_v11 = vcombine.high %v5282_v36, %v5282_v36  ;;  %v6415_v31 = vcombine.low %v5267_v53, %v5282_v36 }
 0x2e8   : > { %v6411_v60 = vcombine.low %v6403_v5, %v6410_v8  ;;  %v3994_v1 = vcombine.low %v2798_v57, %v2812_v25  ;;  %v8654_v62 = vcombine.high %v2798_v57, %v2812_v25  ;;  %v4041_v38 = vcombine.low %v2805_v9, %v2819_v0  ;;  %v7181_v57 = vld [vmem:[#allocation5 + $0x260] sm:$0xff]  ;;  %v7199_v8 = vld [vmem:[#allocation5 + $0x2f0] sm:$0xff]  ;;  %v7200_v25 = vld [vmem:[#allocation5 + $0x2f8] sm:$0xff] }
 0x2e9   : > { %v6443_v12 = vrot.slane %v6415_v31, %v11339_v13  ;;  %v12037_v41 = vcombine.low %v5289_v63, %v5290_v11  ;;  %v8655_v33 = vcombine.high %v2805_v9, %v2819_v0  ;;  %v1984_v5 = vadd.f32 %v11851_v51, %v1953_v6  ;;  %v13026_v6 = vld [vmem:[#allocation20_spill] sm:$0xff] }
 0x2ea   : > { %6978 = vst [vmem:[#allocation3 + $0x60] sm:$0xff] %v6411_v60  ;;  %v4022_v18 = vrot.slane %v3994_v1, %v11339_v13  ;;  %v4050_v15 = vrot.slane %v8654_v62, %v11339_v13  ;;  %v4057_v37 = vrot.slane %v4041_v38, %v11339_v13  ;;  %v6452_v7 = vrot.slane %v6444_v52, %v11339_v13 }
 0x2eb   : > { %v6445_v32 = vcombine.low %v6436_v28, %v6443_v12  ;;  %v6471_v10 = vrot.slane %v12037_v41, %v11339_v13  ;;  %v1904_v47 = vadd.f32 %v13024_v29, %v13023_v35  ;;  %v2008_v30 = vmax.f32 %v1984_v5, 0.0 }
 0x2ec   : > { %v4024_v49 = vcombine.low %v4015_v16, %v4022_v18  ;;  %v4072_v22 = vcombine.low %v4050_v15, %v4057_v37  ;;  %v9671_v27 = vpack.c.bf16 %v7180_v14, %v7179_v44  ;;  %v9698_v40 = vpack.c.bf16 %v7198_v58, %v7197_v26  ;;  %v7182_v16 = vld [vmem:[#allocation5 + $0x268] sm:$0xff] }
 0x2ed   : > { %v6459_v53 = vrot.slane %v6445_v32, %v11339_v13  ;;  %v1954_v46 = vadd.f32 %v1904_v47, %v13025_v45  ;;  %v1909_v50 = vadd.f32 %v11698_v48, %v11696_v3  ;;  %v4064_v42 = vrot.slane %v8655_v33, %v11339_v13 }
 0x2ee   : > { %v4038_v17 = vrot.slane %v4024_v49, %v11339_v13  ;;  %v2824_v36 = vcombine.high %v2008_v30, %v2008_v30  ;;  %v2831_v9 = vrot.slane %v2008_v30, %v11339_v13  ;;  %9672 = vmatpush1.bf16.msra.mxu0 %v9671_v27  ;;  %9699 = vmatpush3.bf16.msra.mxu1 %v9698_v40 }
 0x2ef   : > { %v6460_v0 = vcombine.low %v6452_v7, %v6459_v53  ;;  %v1985_v43 = vadd.f32 %v11851_v51, %v1954_v46  ;;  %9673 = vmatprep.subr.bf16.mxu0 %v13016_v20  ;;  %v1955_v3 = vadd.f32 %v1909_v50, %v13026_v6  ;;  %v12060_v52 = vrot.slane %v4072_v22, %v11339_v13 }
 0x2f0   : > { %v4039_v48 = vcombine.low %v12016_v2, %v4038_v17  ;;  %v2838_v63 = vrot.slane %v2824_v36, %v11339_v13  ;;  %v2839_v11 = vcombine.high %v2831_v9, %v2831_v9  ;;  %9700 = vmatprep.subr.bf16.mxu1 %v13016_v20  ;;  %v2847_v31 = vrot.slane %v2831_v9, %v11339_v13 }
 0x2f1   : > { %6979 = vst [vmem:[#allocation3 + $0x68] sm:$0xff] %v6460_v0  ;;  %v2009_v60 = vmax.f32 %v1985_v43, 0.0  ;;  %v9674_v1 = vpack.c.bf16 %v7182_v16, %v7181_v57  ;;  %v9701_v62 = vpack.c.bf16 %v7200_v25, %v7199_v8  ;;  %v12076_v35 = vadd.f32 %v11851_v51, %v1955_v3 }
 0x2f2   : > { %v4523_v38 = vsel %vm3218_vm1, %v4039_v48, 0.0  ;;  %v2840_v28 = vcombine.high %v2838_v63, %v2838_v63  ;;  %v2854_v2 = vrot.slane %v2838_v63, %v11339_v13  ;;  %v2861_v12 = vrot.slane %v2839_v11, %v11339_v13 }
 0x2f3   : > { %v5291_v33 = vcombine.high %v4523_v38, %v4523_v38  ;;  %v5298_v44 = vrot.slane %v4523_v38, %v11339_v13  ;;  %v2873_v14 = vcombine.high %v2009_v60, %v2009_v60  ;;  %v2880_v18 = vrot.slane %v2009_v60, %v11339_v13  ;;  %9675 = vmatpush1.bf16.msra.mxu0 %v9674_v1 }
 0x2f4   : > { %v2868_v15 = vrot.slane %v2840_v28, %v11339_v13  ;;  %v2870_v37 = vcombine.high %v2854_v2, %v2854_v2  ;;  %v4043_v5 = vcombine.low %v2847_v31, %v2861_v12  ;;  %v8656_v26 = vcombine.high %v2847_v31, %v2861_v12  ;;  %9676 = vmatprep.subr.bf16.mxu0 %v13016_v20 }
 0x2f5   : > { %v5305_v58 = vrot.slane %v5291_v33, %v11339_v13  ;;  %v5306_v7 = vcombine.high %v5298_v44, %v5298_v44  ;;  %v5314_v32 = vrot.slane %v5298_v44, %v11339_v13  ;;  %9702 = vmatpush3.bf16.msra.mxu1 %v9701_v62  ;;  %v4103_v49 = vrot.slane %v2854_v2, %v11339_v13 }
 0x2f6   : > { %v4071_v29 = vrot.slane %v4043_v5, %v11339_v13  ;;  %v4096_v47 = vrot.slane %v8656_v26, %v11339_v13  ;;  %v12081_v22 = vcombine.low %v2868_v15, %v2870_v37  ;;  %9751 = vmatprep.subr.bf16.mxu1 %v13016_v20  ;;  %v2872_v53 = vcombine.high %v2868_v15, %v2868_v15 }
 0x2f7   : > { %v5307_v30 = vcombine.high %v5305_v58, %v5305_v58  ;;  %v5328_v27 = vrot.slane %v5306_v7, %v11339_v13  ;;  %v2887_v45 = vrot.slane %v2873_v14, %v11339_v13  ;;  %v5321_v46 = vrot.slane %v5305_v58, %v11339_v13 }
 0x2f8   : > { %v4073_v40 = vcombine.low %v4064_v42, %v4071_v29  ;;  %v4104_v50 = vcombine.low %v4096_v47, %v4103_v49  ;;  %v2888_v57 = vcombine.high %v2880_v18, %v2880_v18  ;;  %v2896_v0 = vrot.slane %v2880_v18, %v11339_v13 }
 0x2f9   : > { %v5335_v17 = vrot.slane %v5307_v30, %v11339_v13  ;;  %v6462_v36 = vcombine.low %v5314_v32, %v5328_v27  ;;  %v8681_v9 = vcombine.high %v5314_v32, %v5328_v27  ;;  %v2889_v16 = vcombine.high %v2887_v45, %v2887_v45 }
 0x2fa   : > { %v4087_v8 = vrot.slane %v4073_v40, %v11339_v13  ;;  %v4111_v25 = vrot.slane %v4104_v50, %v11339_v13  ;;  %v2903_v43 = vrot.slane %v2887_v45, %v11339_v13  ;;  %v2910_v42 = vrot.slane %v2888_v57, %v11339_v13 }
 0x2fb   : > { %v6464_v6 = vcombine.low %v5321_v46, %v5335_v17  ;;  %v6478_v3 = vrot.slane %v6462_v36, %v11339_v13  ;;  %v8682_v48 = vcombine.high %v5321_v46, %v5335_v17  ;;  %v6485_v63 = vrot.slane %v8681_v9, %v11339_v13 }
 0x2fc   : > { %v4088_v11 = vcombine.low %v12060_v52, %v4087_v8  ;;  %v4525_v31 = vsel %vm3223_vm3, %v4111_v25, 0.0  ;;  %v8666_v60 = vcombine.low %v4087_v8, %v4087_v8  ;;  %v12104_v28 = vrot.slane %v2889_v16, %v11339_v13 }
 0x2fd   : > { %v6492_v1 = vrot.slane %v6464_v6, %v11339_v13  ;;  %v6493_v62 = vcombine.low %v6471_v10, %v6478_v3  ;;  %v5395_v38 = vrot.slane %v4525_v31, %v11339_v13  ;;  %v6520_v2 = vrot.slane %v8682_v48, %v11339_v13 }
 0x2fe   : > { %v5347_v12 = vrot.slane %v4088_v11, %v11339_v13  ;;  %v5354_v52 = vrot.slane %v8666_v60, %v11339_v13  ;;  %v2918_v33 = vcombine.high %v2896_v0, %v2896_v0  ;;  %v2919_v15 = vcombine.high %v2903_v43, %v2903_v43 }
 0x2ff   : > { %v6494_v44 = vcombine.low %v6485_v63, %v6492_v1  ;;  %v6501_v14 = vrot.slane %v6493_v62, %v11339_v13  ;;  %v5396_v18 = vcombine.high %v5395_v38, %v5395_v38  ;;  %v12112_v5 = vrot.slane %v5395_v38, %v11339_v13 }
 0x300   : > { %v5355_v37 = vcombine.high %v5347_v12, %v5347_v12  ;;  %v5356_v41 = vcombine.high %v5354_v52, %v5354_v52  ;;  %v5363_v10 = vrot.slane %v5347_v12, %v11339_v13  ;;  %v5370_v58 = vrot.slane %v5354_v52, %v11339_v13  ;;  %v7183_v52 = vld [vmem:[#allocation5 + $0x270] sm:$0xff] }
 0x301   : > { %v6508_v26 = vrot.slane %v6494_v44, %v11339_v13  ;;  %v5410_v7 = vrot.slane %v5396_v18, %v11339_v13  ;;  %v2920_v32 = vcombine.high %v2910_v42, %v2910_v42  ;;  %v4113_v49 = vcombine.low %v2872_v53, %v2896_v0 }
 0x302   : > { %v5377_v29 = vrot.slane %v5355_v37, %v11339_v13  ;;  %v5384_v47 = vrot.slane %v5356_v41, %v11339_v13  ;;  %v4114_v30 = vcombine.low %v2910_v42, %v2918_v33  ;;  %v4122_v40 = vrot.slane %v12081_v22, %v11339_v13  ;;  %v7184_v33 = vld [vmem:[#allocation5 + $0x278] sm:$0xff] }
 0x303   : > { %v6509_v27 = vcombine.low %v6501_v14, %v6508_v26  ;;  %v6560_v45 = vcombine.low %v12112_v5, %v5410_v7  ;;  %v4115_v46 = vcombine.low %v2920_v32, %v2903_v43  ;;  %v4129_v16 = vrot.slane %v4113_v49, %v11339_v13 }
 0x304   : > { %v6511_v50 = vcombine.low %v5363_v10, %v5377_v29  ;;  %v8683_v57 = vcombine.high %v5363_v10, %v5377_v29  ;;  %v6513_v17 = vcombine.low %v5370_v58, %v5384_v47  ;;  %v8684_v36 = vcombine.high %v5370_v58, %v5384_v47  ;;  %v7133_v58 = vld [vmem:[#allocation3 + $0x15] sm:$0xff] }
 0x305   : > { %6980 = vst [vmem:[#allocation3 + $0x70] sm:$0xff] %v6509_v27  ;;  %v12123_v9 = vrot.slane %v6560_v45, %v11339_v13  ;;  %v4136_v53 = vrot.slane %v4114_v30, %v11339_v13  ;;  %v4143_v8 = vrot.slane %v4115_v46, %v11339_v13  ;;  %v4144_v6 = vcombine.low %v4122_v40, %v4129_v16  ;;  %v7095_v27 = vld [vmem:[#allocation3 + $0x13] sm:$0xff] }
 0x306   : > { %v6527_v25 = vrot.slane %v6511_v50, %v11339_v13  ;;  %v6534_v0 = vrot.slane %v8683_v57, %v11339_v13  ;;  %v6541_v22 = vrot.slane %v6513_v17, %v11339_v13  ;;  %v12132_v43 = vrot.slane %v8684_v36, %v11339_v13  ;;  %v13027_v50 = vld [vmem:[#allocation19_spill] sm:$0xff] }
 0x307   : > { %v4145_v3 = vcombine.low %v4136_v53, %v4143_v8  ;;  %v12135_v48 = vcombine.low %v12104_v28, %v2919_v15  ;;  %v2010_v42 = vmax.f32 %v12076_v35, 0.0  ;;  %v5411_v63 = vcombine.high %v12112_v5, %v12112_v5 }
 0x308   : > { %v6542_v11 = vcombine.low %v6520_v2, %v6527_v25  ;;  %v6543_v31 = vcombine.low %v6534_v0, %v6541_v22  ;;  %v6591_v60 = vcombine.low %v12132_v43, %v12123_v9  ;;  %v4152_v1 = vrot.slane %v4144_v6, %v11339_v13  ;;  %v7115_v6 = vld [vmem:[#allocation3 + $0x1c] sm:$0xff] }
 0x309   : > { %v4159_v62 = vrot.slane %v4145_v3, %v11339_v13  ;;  %v2922_v38 = vcombine.high %v2010_v42, %v2010_v42  ;;  %v2929_v12 = vrot.slane %v2010_v42, %v11339_v13  ;;  %v2921_v2 = vcombine.high %v12104_v28, %v12104_v28 }
 0x30a   : > { %v6550_v44 = vrot.slane %v6542_v11, %v11339_v13  ;;  %v6557_v35 = vrot.slane %v6543_v31, %v11339_v13  ;;  %v4171_v14 = vrot.slane %v12135_v48, %v11339_v13  ;;  %v1914_v5 = vadd.f32 %v11692_v56, %v11741_v19 }
 0x30b   : > { %v4160_v18 = vcombine.low %v4152_v1, %v4159_v62  ;;  %v2936_v15 = vrot.slane %v2922_v38, %v11339_v13  ;;  %v2937_v37 = vcombine.high %v2929_v12, %v2929_v12  ;;  %v2945_v41 = vrot.slane %v2929_v12, %v11339_v13  ;;  %v7134_v12 = vld [vmem:[#allocation3 + $0x1d] sm:$0xff] }
 0x30c   : > { %v6558_v10 = vcombine.low %v6550_v44, %v6557_v35  ;;  %v9677_v26 = vpack.c.bf16 %v7184_v33, %v7183_v52  ;;  %v10095_v47 = vmov 0.0   ;;  %v1956_v57 = vadd.f32 %v1914_v5, %v13027_v50  ;;  %v7117_v50 = vld [vmem:[#allocation3 + $0x2c] sm:$0xff] }
 0x30d   : > { %v4526_v7 = vsel %vm3218_vm1, %v4160_v18, 0.0  ;;  %v2938_v32 = vcombine.high %v2936_v15, %v2936_v15  ;;  %v2952_v28 = vrot.slane %v2936_v15, %v11339_v13  ;;  %v2959_v29 = vrot.slane %v2937_v37, %v11339_v13  ;;  %9156 = vmatprep.mubr.msk.f32.mxu1 %vm10094_vm5, %v10095_v47  ;;  %v7116_v37 = vld [vmem:[#allocation3 + $0x24] sm:$0xff] }
 0x30e   : > { %6981 = vst [vmem:[#allocation3 + $0x78] sm:$0xff] %v6558_v10  ;;  %v5412_v49 = vcombine.high %v4526_v7, %v4526_v7  ;;  %v5419_v30 = vrot.slane %v4526_v7, %v11339_v13  ;;  %v2967_v56 = vcombine.high %v2945_v41, %v2945_v41  ;;  %v4162_v19 = vcombine.low %v2921_v2, %v2945_v41  ;;  %v7096_v2 = vld [vmem:[#allocation3 + $0x1b] sm:$0xff] }
 0x30f   : > { %9678 = vmatpush1.bf16.msra.mxu0 %v9677_v26  ;;  %v2966_v45 = vrot.slane %v2938_v32, %v11339_v13  ;;  %v2968_v46 = vcombine.high %v2952_v28, %v2952_v28  ;;  %v2969_v40 = vcombine.high %v2959_v29, %v2959_v29  ;;  %9157 = vmatmul.mubr.f32.vlgmr.msra.gmra.mrb[120].mxu1 %v7133_v58 }
 0x310   : > { %v5426_v17 = vrot.slane %v5412_v49, %v11339_v13  ;;  %v5427_v36 = vcombine.high %v5419_v30, %v5419_v30  ;;  %v5435_v16 = vrot.slane %v5419_v30, %v11339_v13  ;;  %v4163_v53 = vcombine.low %v2959_v29, %v2967_v56  ;;  %9703 = vmatprep.subr.bf16.mxu0 %v13016_v20  ;;  %v7048_v29 = vld [vmem:[#allocation5 + $0x8] sm:$0xff]  ;;  %v7135_v49 = vld [vmem:[#allocation3 + $0x25] sm:$0xff] }
 0x311   : > { %v2970_v8 = vcombine.high %v2966_v45, %v2966_v45  ;;  %v4164_v25 = vcombine.low %v2969_v40, %v2952_v28  ;;  %v4178_v0 = vrot.slane %v4162_v19, %v11339_v13  ;;  %v4210_v22 = vcombine.low %v2966_v45, %v2968_v46  ;;  %9159 = vmatprep.mubr.msk.f32.mxu1 %vm10094_vm5, %v10095_v47  ;;  %v7047_v28 = vld [vmem:[#allocation5] sm:$0xff] }
 0x312   : > { %7266 = vmatmul.mubr.f32.vlgmr.msra.gmra.mrb[96].mxu0 %v7095_v27  ;;  %v5428_v3 = vcombine.high %v5426_v17, %v5426_v17  ;;  %v5442_v48 = vrot.slane %v5426_v17, %v11339_v13  ;;  %v5449_v42 = vrot.slane %v5427_v36, %v11339_v13  ;;  %v5457_v11 = vcombine.high %v5435_v16, %v5435_v16 }
 0x313   : > { %7270 = vmatprep.mubr.f32.mxu0 %v7115_v6  ;;  %v6561_v31 = vcombine.low %v5411_v63, %v5435_v16  ;;  %v4185_v1 = vrot.slane %v4163_v53, %v11339_v13  ;;  %v4192_v62 = vrot.slane %v4164_v25, %v11339_v13  ;;  %v4193_v38 = vcombine.low %v4171_v14, %v4178_v0  ;;  %v7136_v53 = vld [vmem:[#allocation3 + $0x2d] sm:$0xff] }
 0x314   : > { %v12175_v52 = vrot.slane %v5428_v3, %v11339_v13  ;;  %v5458_v33 = vcombine.high %v5442_v48, %v5442_v48  ;;  %v5459_v44 = vcombine.high %v5449_v42, %v5449_v42  ;;  %v6562_v35 = vcombine.low %v5449_v42, %v5457_v11  ;;  %9160 = vmatmul.mubr.f32.gmra.mrb[122].mxu1 %v7134_v12  ;;  %v7098_v11 = vld [vmem:[#allocation3 + $0x2b] sm:$0xff] }
 0x315   : > { %v6583_v18 = vrot.slane %v6561_v31, %v11339_v13  ;;  %v4194_v63 = vcombine.low %v4185_v1, %v4192_v62  ;;  %v4217_v15 = vrot.slane %v4210_v22, %v11339_v13  ;;  %v4224_v5 = vrot.slane %v2970_v8, %v11339_v13  ;;  %9162 = vmatprep.mubr.msk.f32.mxu1 %vm10094_vm5, %v10095_v47 }
 0x316   : > { %7271 = vmatmul.mubr.f32.gmra.mrb[98].mxu0 %v7096_v2  ;;  %v6590_v14 = vrot.slane %v6562_v35, %v11339_v13  ;;  %v6608_v41 = vcombine.low %v5459_v44, %v5442_v48  ;;  %v6609_v10 = vcombine.low %v12175_v52, %v5458_v33  ;;  %v4201_v26 = vrot.slane %v4193_v38, %v11339_v13  ;;  %v7118_v38 = vld [vmem:[#allocation3 + $0x34] sm:$0xff] }
 0x317   : > { %7275 = vmatprep.mubr.f32.mxu0 %v7116_v37  ;;  %v4208_v58 = vrot.slane %v4194_v63, %v11339_v13  ;;  %v1987_v7 = vadd.f32 %v11851_v51, %v1956_v57  ;;  %v1919_v32 = vadd.f32 %v11797_v34, %v11795_v39  ;;  %v6599_v30 = vrot.slane %v6591_v60, %v11339_v13  ;;  %v7097_v51 = vld [vmem:[#allocation3 + $0x23] sm:$0xff]  ;;  %v13028_v34 = vld [vmem:[#allocation22_spill] sm:$0xff]  ;;  %v12223_v63 = vld [vmem:[%s12976_s2] ss:$0 sm:$0xff] }
 0x318   : > { %v6592_v56 = vcombine.low %v6583_v18, %v6590_v14  ;;  %v6618_v19 = vrot.slane %v6608_v41, %v11339_v13  ;;  %v4225_v27 = vcombine.low %v4217_v15, %v4224_v5  ;;  %9163 = vmatmul.mubr.f32.gmra.mrb[124].mxu1 %v7135_v49  ;;  %v6625_v9 = vrot.slane %v6609_v10, %v11339_v13  ;;  %v7137_v37 = vld [vmem:[#allocation3 + $0x35] sm:$0xff] }
 0x319   : > { %v4209_v45 = vcombine.low %v4201_v26, %v4208_v58  ;;  %v8667_v46 = vcombine.low %v4208_v58, %v4208_v58  ;;  %v2011_v39 = vmax.f32 %v1987_v7, 0.0  ;;  %v1957_v40 = vadd.f32 %v1919_v32, %v13028_v34  ;;  %9165 = vmatprep.mubr.msk.f32.mxu1 %vm10094_vm5, %v10095_v47  ;;  %v7099_v5 = vld [vmem:[#allocation3 + $0x33] sm:$0xff]  ;;  %v7119_v7 = vld [vmem:[#allocation3 + $0x3c] sm:$0xff] }
 0x31a   : > { %7276 = vmatmul.mubr.f32.gmra.mrb[100].mxu0 %v7097_v51  ;;  %v6606_v57 = vrot.slane %v6592_v56, %v11339_v13  ;;  %v4232_v43 = vrot.slane %v4225_v27, %v11339_v13  ;;  %v9704_v60 = vpack.c.bf16 %v7048_v29, %v7047_v28  ;;  %v5460_v0 = vcombine.high %v12175_v52, %v12175_v52  ;;  %v7138_v51 = vld [vmem:[#allocation3 + $0x3d] sm:$0xff] }
 0x31b   : > { %7280 = vmatprep.mubr.f32.mxu0 %v7117_v50  ;;  %v5468_v17 = vrot.slane %v4209_v45, %v11339_v13  ;;  %v5475_v36 = vrot.slane %v8667_v46, %v11339_v13  ;;  %v2971_v16 = vcombine.high %v2011_v39, %v2011_v39  ;;  %v2978_v22 = vrot.slane %v2011_v39, %v11339_v13 }
 0x31c   : > { %v6607_v8 = vcombine.low %v6599_v30, %v6606_v57  ;;  %v4528_v25 = vsel %vm3223_vm3, %v4232_v43, 0.0  ;;  %9705 = vmatpush1.bf16.msra.mxu0 %v9704_v60  ;;  %9166 = vmatmul.mubr.f32.gmra.mrb[126].mxu1 %v7136_v53  ;;  %v12210_v31 = vcombine.low %v6618_v19, %v6625_v9  ;;  %v1988_v15 = vadd.f32 %v12223_v63, %v1957_v40  ;;  %v7100_v40 = vld [vmem:[#allocation3 + $0x3b] sm:$0xff]  ;;  %v7120_v60 = vld [vmem:[#allocation3 + $0x44] sm:$0xff] }
 0x31d   : > { %v5476_v6 = vcombine.high %v5468_v17, %v5468_v17  ;;  %v5477_v3 = vcombine.high %v5475_v36, %v5475_v36  ;;  %v5484_v48 = vrot.slane %v5468_v17, %v11339_v13  ;;  %v5491_v42 = vrot.slane %v5475_v36, %v11339_v13  ;;  %9706 = vmatprep.subr.bf16.mxu0 %v13016_v20 }
 0x31e   : > { %6982 = vst [vmem:[#allocation3 + $0x80] sm:$0xff] %v6607_v8  ;;  %v12213_v1 = vrot.slane %v4528_v25, %v11339_v13  ;;  %v2985_v62 = vrot.slane %v2971_v16, %v11339_v13  ;;  %7281 = vmatmul.mubr.f32.gmra.mrb[102].mxu0 %v7098_v11  ;;  %v2986_v2 = vcombine.high %v2978_v22, %v2978_v22  ;;  %v2012_v27 = vmax.f32 %v1988_v15, 0.0  ;;  %v7049_v25 = vld [vmem:[#allocation5 + $0x10] sm:$0xff]  ;;  %v7101_v11 = vld [vmem:[#allocation3 + $0x43] sm:$0xff]  ;;  %v7052_v15 = vld [vmem:[#allocation5 + $0x28] sm:$0xff] }
 0x31f   : > { %v5498_v12 = vrot.slane %v5476_v6, %v11339_v13  ;;  %v12218_v52 = vrot.slane %v5477_v3, %v11339_v13  ;;  %v5506_v33 = vcombine.high %v5484_v48, %v5484_v48  ;;  %v5507_v44 = vcombine.high %v5491_v42, %v5491_v42  ;;  %7285 = vmatprep.mubr.f32.mxu0 %v7118_v38  ;;  %v13029_v38 = vld [vmem:[#allocation21_spill] sm:$0xff] }
 0x320   : > { %v6610_v35 = vcombine.low %v5460_v0, %v5484_v48  ;;  %v2987_v18 = vcombine.high %v2985_v62, %v2985_v62  ;;  %9168 = vmatprep.mubr.msk.f32.mxu1 %vm10094_vm5, %v10095_v47  ;;  %v6648_v26 = vrot.slane %v12210_v31, %v11339_v13  ;;  %v5517_v32 = vcombine.high %v12213_v1, %v12213_v1  ;;  %v7050_v0 = vld [vmem:[#allocation5 + $0x18] sm:$0xff] }
 0x321   : > { %v5508_v14 = vcombine.high %v5498_v12, %v5498_v12  ;;  %v6611_v41 = vcombine.low %v5498_v12, %v5506_v33  ;;  %v6658_v10 = vcombine.low %v12218_v52, %v5507_v44  ;;  %9169 = vmatmul.mubr.f32.gmra.mrb[128].mxu1 %v7137_v37  ;;  %v2994_v49 = vrot.slane %v2978_v22, %v11339_v13  ;;  %v7139_v22 = vld [vmem:[#allocation3 + $0x45] sm:$0xff] }
 0x322   : > { %v6632_v58 = vrot.slane %v6610_v35, %v11339_v13  ;;  %7286 = vmatmul.mubr.f32.gmra.mrb[104].mxu0 %v7099_v5  ;;  %v3001_v30 = vrot.slane %v2985_v62, %v11339_v13  ;;  %v3008_v56 = vrot.slane %v2986_v2, %v11339_v13  ;;  %v3015_v19 = vrot.slane %v2987_v18, %v11339_v13  ;;  %v7121_v33 = vld [vmem:[#allocation3 + $0x4c] sm:$0xff] }
 0x323   : > { %v6639_v28 = vrot.slane %v6611_v41, %v11339_v13  ;;  %v6657_v29 = vcombine.low %v5508_v14, %v5491_v42  ;;  %7290 = vmatprep.mubr.f32.mxu0 %v7119_v7  ;;  %9171 = vmatprep.mubr.msk.f32.mxu1 %vm10094_vm5, %v10095_v47  ;;  %v6674_v39 = vrot.slane %v6658_v10, %v11339_v13  ;;  %v7051_v18 = vld [vmem:[#allocation5 + $0x20] sm:$0xff] }
 0x324   : > { %v1924_v34 = vadd.f32 %v11790_v23, %v11820_v4  ;;  %v12247_v50 = vrot.slane %v12213_v1, %v11339_v13  ;;  %v4233_v57 = vcombine.low %v2994_v49, %v3008_v56  ;;  %v8657_v9 = vcombine.high %v2994_v49, %v3008_v56  ;;  %v7140_v5 = vld [vmem:[#allocation3 + $0x4d] sm:$0xff] }
 0x325   : > { %v6641_v45 = vcombine.low %v6632_v58, %v6639_v28  ;;  %v6667_v46 = vrot.slane %v6657_v29, %v11339_v13  ;;  %9172 = vmatmul.mubr.f32.gmra.mrb[130].mxu1 %v7138_v51  ;;  %v4235_v43 = vcombine.low %v3001_v30, %v3015_v19  ;;  %v8658_v16 = vcombine.high %v3001_v30, %v3015_v19  ;;  %v7122_v56 = vld [vmem:[#allocation3 + $0x54] sm:$0xff] }
 0x326   : > { %7291 = vmatmul.mubr.f32.gmra.mrb[106].mxu0 %v7100_v40  ;;  %v3020_v53 = vcombine.high %v2012_v27, %v2012_v27  ;;  %v4243_v23 = vrot.slane %v4233_v57, %v11339_v13  ;;  %v4250_v4 = vrot.slane %v8657_v9, %v11339_v13  ;;  %9174 = vmatprep.mubr.msk.f32.mxu1 %vm10094_vm5, %v10095_v47  ;;  %v7141_v40 = vld [vmem:[#allocation3 + $0x55] sm:$0xff] }
 0x327   : > { %v6655_v17 = vrot.slane %v6641_v45, %v11339_v13  ;;  %v12250_v36 = vcombine.low %v6667_v46, %v6674_v39  ;;  %7295 = vmatprep.mubr.f32.mxu0 %v7120_v60  ;;  %v4257_v8 = vrot.slane %v4235_v43, %v11339_v13  ;;  %v5509_v6 = vcombine.high %v12218_v52, %v12218_v52  ;;  %v13030_v45 = vld [vmem:[#allocation24_spill] sm:$0xff] }
 0x328   : > { %v4264_v48 = vrot.slane %v8658_v16, %v11339_v13  ;;  %v3027_v42 = vrot.slane %v2012_v27, %v11339_v13  ;;  %v5531_v31 = vrot.slane %v5517_v32, %v11339_v13  ;;  %v4265_v1 = vcombine.low %v4243_v23, %v4250_v4  ;;  %v7102_v32 = vld [vmem:[#allocation3 + $0x4b] sm:$0xff] }
 0x329   : > { %v6656_v3 = vcombine.low %v6648_v26, %v6655_v17  ;;  %9175 = vmatmul.mubr.f32.gmra.mrb[132].mxu1 %v7139_v22  ;;  %v3034_v62 = vrot.slane %v3020_v53, %v11339_v13  ;;  %v1958_v12 = vadd.f32 %v1924_v34, %v13029_v38  ;;  %v5532_v44 = vcombine.high %v12247_v50, %v12247_v50  ;;  %v7123_v22 = vld [vmem:[#allocation3 + $0x5c] sm:$0xff] }
 0x32a   : > { %7296 = vmatmul.mubr.f32.gmra.mrb[108].mxu0 %v7101_v11  ;;  %v4266_v52 = vcombine.low %v4257_v8, %v4264_v48  ;;  %v3035_v35 = vcombine.high %v3027_v42, %v3027_v42  ;;  %v9707_v2 = vpack.c.bf16 %v7050_v0, %v7049_v25  ;;  %v4273_v37 = vrot.slane %v4265_v1, %v11339_v13 }
 0x32b   : > { %6983 = vst [vmem:[#allocation3 + $0x88] sm:$0xff] %v6656_v3  ;;  %7300 = vmatprep.mubr.f32.mxu0 %v7121_v33  ;;  %v3036_v14 = vcombine.high %v3034_v62, %v3034_v62  ;;  %v3043_v41 = vrot.slane %v3027_v42, %v11339_v13  ;;  %v1989_v10 = vadd.f32 %v12223_v63, %v1958_v12  ;;  %v7142_v12 = vld [vmem:[#allocation3 + $0x5d] sm:$0xff] }
 0x32c   : > { %9177 = vmatprep.mubr.msk.f32.mxu1 %vm10094_vm5, %v10095_v47  ;;  %v4280_v26 = vrot.slane %v4266_v52, %v11339_v13  ;;  %v3057_v58 = vrot.slane %v3035_v35, %v11339_v13  ;;  %9708 = vmatpush1.bf16.msra.mxu0 %v9707_v2  ;;  %v1929_v7 = vadd.f32 %v11868_v55, %v11866_v54  ;;  %v7104_v35 = vld [vmem:[#allocation3 + $0x5b] sm:$0xff] }
 0x32d   : > { %9178 = vmatmul.mubr.f32.gmra.mrb[134].mxu1 %v7140_v5  ;;  %v3050_v28 = vrot.slane %v3034_v62, %v11339_v13  ;;  %v3064_v29 = vrot.slane %v3036_v14, %v11339_v13  ;;  %v2013_v49 = vmax.f32 %v1989_v10, 0.0  ;;  %9709 = vmatprep.subr.bf16.mxu0 %v13016_v20  ;;  %v9710_v30 = vpack.c.bf16 %v7052_v15, %v7051_v18  ;;  %v7124_v14 = vld [vmem:[#allocation3 + $0x64] sm:$0xff] }
 0x32e   : > { %7301 = vmatmul.mubr.f32.gmra.mrb[110].mxu0 %v7102_v32  ;;  %v4281_v19 = vcombine.low %v4273_v37, %v4280_v26  ;;  %v4282_v27 = vcombine.low %v3043_v41, %v3057_v58  ;;  %v8659_v51 = vcombine.high %v3043_v41, %v3057_v58  ;;  %v12279_v46 = vadd.f32 %v1929_v7, %v13030_v45 }
 0x32f   : > { %7305 = vmatprep.mubr.f32.mxu0 %v7122_v56  ;;  %v4284_v54 = vcombine.low %v3050_v28, %v3064_v29  ;;  %v8660_v55 = vcombine.high %v3050_v28, %v3064_v29  ;;  %v3069_v39 = vcombine.high %v2013_v49, %v2013_v49  ;;  %v3076_v34 = vrot.slane %v2013_v49, %v11339_v13  ;;  %v7143_v29 = vld [vmem:[#allocation3 + $0x65] sm:$0xff] }
 0x330   : > { %9180 = vmatprep.mubr.msk.f32.mxu1 %vm10094_vm5, %v10095_v47  ;;  %v12285_v57 = vcombine.low %v5509_v6, %v12247_v50  ;;  %v4529_v9 = vsel %vm3218_vm1, %v4281_v19, 0.0  ;;  %v4292_v43 = vrot.slane %v4282_v27, %v11339_v13  ;;  %v4299_v60 = vrot.slane %v8659_v51, %v11339_v13  ;;  %9711 = vmatpush1.bf16.msra.mxu0 %v9710_v30  ;;  %v7103_v50 = vld [vmem:[#allocation3 + $0x53] sm:$0xff]  ;;  %v7105_v27 = vld [vmem:[#allocation3 + $0x63] sm:$0xff] }
 0x331   : > { %9181 = vmatmul.mubr.f32.gmra.mrb[136].mxu1 %v7141_v40  ;;  %v5533_v17 = vcombine.high %v4529_v9, %v4529_v9  ;;  %v5540_v16 = vrot.slane %v4529_v9, %v11339_v13  ;;  %v4306_v53 = vrot.slane %v4284_v54, %v11339_v13  ;;  %v4313_v23 = vrot.slane %v8660_v55, %v11339_v13 }
 0x332   : > { %9712 = vmatprep.subr.bf16.mxu0 %v13016_v20  ;;  %v4314_v4 = vcombine.low %v4292_v43, %v4299_v60  ;;  %v3083_v8 = vrot.slane %v3069_v39, %v11339_v13  ;;  %v3084_v25 = vcombine.high %v3076_v34, %v3076_v34  ;;  %v3092_v0 = vrot.slane %v3076_v34, %v11339_v13  ;;  %v7125_v39 = vld [vmem:[#allocation3 + $0x6c] sm:$0xff] }
 0x333   : > { %7306 = vmatmul.mubr.f32.gmra.mrb[112].mxu0 %v7103_v50  ;;  %v12297_v6 = vcombine.low %v5531_v31, %v5532_v44  ;;  %v5547_v3 = vrot.slane %v5533_v17, %v11339_v13  ;;  %v5548_v48 = vcombine.high %v5540_v16, %v5540_v16  ;;  %v4315_v42 = vcombine.low %v4306_v53, %v4313_v23 }
 0x334   : > { %7310 = vmatprep.mubr.f32.mxu0 %v7123_v22  ;;  %v5556_v11 = vrot.slane %v5540_v16, %v11339_v13  ;;  %v3085_v1 = vcombine.high %v3083_v8, %v3083_v8  ;;  %v3099_v62 = vrot.slane %v3083_v8, %v11339_v13  ;;  %v3106_v38 = vrot.slane %v3084_v25, %v11339_v13  ;;  %v7106_v25 = vld [vmem:[#allocation3 + $0x6b] sm:$0xff] }
 0x335   : > { %9183 = vmatprep.mubr.msk.f32.mxu1 %vm10094_vm5, %v10095_v47  ;;  %v5549_v33 = vcombine.high %v5547_v3, %v5547_v3  ;;  %v5570_v31 = vrot.slane %v5548_v48, %v11339_v13  ;;  %v4322_v44 = vrot.slane %v4314_v4, %v11339_v13  ;;  %v4329_v52 = vrot.slane %v4315_v42, %v11339_v13  ;;  %v7126_v42 = vld [vmem:[#allocation3 + $0x74] sm:$0xff] }
 0x336   : > { %9184 = vmatmul.mubr.f32.gmra.mrb[138].mxu1 %v7142_v12  ;;  %v6681_v2 = vrot.slane %v12285_v57, %v11339_v13  ;;  %v5563_v18 = vrot.slane %v5547_v3, %v11339_v13  ;;  %v12312_v15 = vrot.slane %v3085_v1, %v11339_v13  ;;  %v3114_v37 = vcombine.high %v3092_v0, %v3092_v0  ;;  %v7058_v57 = vld [vmem:[#allocation5 + $0x58] sm:$0xff] }
 0x337   : > { %7311 = vmatmul.mubr.f32.gmra.mrb[114].mxu0 %v7104_v35  ;;  %v5577_v41 = vrot.slane %v5549_v33, %v11339_v13  ;;  %v6706_v10 = vcombine.low %v5556_v11, %v5570_v31  ;;  %v8685_v5 = vcombine.high %v5556_v11, %v5570_v31  ;;  %v4330_v26 = vcombine.low %v4322_v44, %v4329_v52  ;;  %v7054_v35 = vld [vmem:[#allocation5 + $0x38] sm:$0xff] }
 0x338   : > { %7315 = vmatprep.mubr.f32.mxu0 %v7124_v14  ;;  %v8668_v58 = vcombine.low %v4329_v52, %v4329_v52  ;;  %v3115_v7 = vcombine.high %v3099_v62, %v3099_v62  ;;  %v3116_v32 = vcombine.high %v3106_v38, %v3106_v38  ;;  %v4331_v28 = vcombine.low %v3092_v0, %v3106_v38  ;;  %v7053_v52 = vld [vmem:[#allocation5 + $0x30] sm:$0xff] }
 0x339   : > { %9186 = vmatprep.mubr.msk.f32.mxu1 %vm10094_vm5, %v10095_v47  ;;  %v6708_v49 = vcombine.low %v5563_v18, %v5577_v41  ;;  %v8686_v30 = vcombine.high %v5563_v18, %v5577_v41  ;;  %v6716_v56 = vrot.slane %v6706_v10, %v11339_v13  ;;  %v6723_v19 = vrot.slane %v8685_v5, %v11339_v13  ;;  %v7145_v18 = vld [vmem:[#allocation3 + $0x75] sm:$0xff]  ;;  %v7079_v5 = vld [vmem:[#allocation5 + $0x100] sm:$0xff] }
 0x33a   : > { %9187 = vmatmul.mubr.f32.gmra.mrb[140].mxu1 %v7143_v29  ;;  %v5589_v51 = vrot.slane %v4330_v26, %v11339_v13  ;;  %v5596_v45 = vrot.slane %v8668_v58, %v11339_v13  ;;  %v4338_v54 = vrot.slane %v4331_v28, %v11339_v13  ;;  %v1990_v55 = vadd.f32 %v12223_v63, %v12279_v46  ;;  %v7144_v46 = vld [vmem:[#allocation3 + $0x6d] sm:$0xff]  ;;  %v7127_v28 = vld [vmem:[#allocation3 + $0x7c] sm:$0xff] }
 0x33b   : > { %7316 = vmatmul.mubr.f32.gmra.mrb[116].mxu0 %v7105_v27  ;;  %v6730_v34 = vrot.slane %v6708_v49, %v11339_v13  ;;  %v6737_v40 = vrot.slane %v8686_v30, %v11339_v13  ;;  %v6738_v9 = vcombine.low %v6716_v56, %v6723_v19  ;;  %v4345_v43 = vrot.slane %v3114_v37, %v11339_v13  ;;  %v7080_v26 = vld [vmem:[#allocation5 + $0x108] sm:$0xff]  ;;  %v13031_v30 = vld [vmem:[#allocation23_spill] sm:$0xff] }
 0x33c   : > { %7320 = vmatprep.mubr.f32.mxu0 %v7125_v39  ;;  %v6688_v60 = vrot.slane %v12297_v6, %v11339_v13  ;;  %v5597_v17 = vcombine.high %v5589_v51, %v5589_v51  ;;  %v5598_v16 = vcombine.high %v5596_v45, %v5596_v45  ;;  %v12329_v53 = vcombine.low %v3116_v32, %v3099_v62  ;;  %v7057_v6 = vld [vmem:[#allocation5 + $0x50] sm:$0xff] }
 0x33d   : > { %9189 = vmatprep.mubr.msk.f32.mxu1 %vm10094_vm5, %v10095_v47  ;;  %v6739_v23 = vcombine.low %v6730_v34, %v6737_v40  ;;  %v5605_v50 = vrot.slane %v5589_v51, %v11339_v13  ;;  %v4346_v4 = vcombine.low %v4338_v54, %v4345_v43  ;;  %v12335_v8 = vcombine.low %v12312_v15, %v3115_v7  ;;  %v7146_v54 = vld [vmem:[#allocation3 + $0x7d] sm:$0xff] }
 0x33e   : > { %9190 = vmatmul.mubr.f32.gmra.mrb[142].mxu1 %v7144_v46  ;;  %v5612_v0 = vrot.slane %v5596_v45, %v11339_v13  ;;  %v5619_v22 = vrot.slane %v5597_v17, %v11339_v13  ;;  %v5626_v3 = vrot.slane %v5598_v16, %v11339_v13  ;;  %v2014_v48 = vmax.f32 %v1990_v55, 0.0 }
 0x33f   : > { %7321 = vmatmul.mubr.f32.gmra.mrb[118].mxu0 %v7106_v25  ;;  %9192 = vmatprep.mubr.msk.f32.mxu1 %vm10094_vm5, %v10095_v47  ;;  %v6746_v11 = vrot.slane %v6738_v9, %v11339_v13  ;;  %v6753_v1 = vrot.slane %v6739_v23, %v11339_v13  ;;  %v4353_v62 = vrot.slane %v4346_v4, %v11339_v13  ;;  %v7055_v4 = vld [vmem:[#allocation5 + $0x40] sm:$0xff] }
 0x340   : > { %v1934_v38 = vadd.f32 %v11861_v21, %v11921_v59  ;;  %7325 = vmatprep.mubr.f32.mxu0 %v7126_v42  ;;  %v6755_v12 = vcombine.low %v5605_v50, %v5619_v22  ;;  %v8687_v33 = vcombine.high %v5605_v50, %v5619_v22  ;;  %v6757_v31 = vcombine.low %v5612_v0, %v5626_v3  ;;  %v7107_v21 = vld [vmem:[#allocation3 + $0x73] sm:$0xff] }
 0x341   : > { %v8688_v44 = vcombine.high %v5612_v0, %v5626_v3  ;;  %v6754_v37 = vcombine.low %v6746_v11, %v6753_v1  ;;  %v4531_v14 = vsel %vm3223_vm3, %v4353_v62, 0.0  ;;  %v3117_v41 = vcombine.high %v12312_v15, %v12312_v15  ;;  %v7081_v11 = vld [vmem:[#allocation5 + $0x110] sm:$0xff]  ;;  %v7082_v1 = vld [vmem:[#allocation5 + $0x118] sm:$0xff] }
 0x342   : > { %v3118_v10 = vcombine.high %v2014_v48, %v2014_v48  ;;  %9193 = vmatmul.mubr.f32.gmra.mrb[144].mxu1 %v7145_v18  ;;  %v6765_v59 = vrot.slane %v6755_v12, %v11339_v13  ;;  %v6772_v58 = vrot.slane %v8687_v33, %v11339_v13  ;;  %v6779_v7 = vrot.slane %v6757_v31, %v11339_v13  ;;  %v7108_v62 = vld [vmem:[#allocation3 + $0x7b] sm:$0xff] }
 0x343   : > { %v6786_v32 = vrot.slane %v8688_v44, %v11339_v13  ;;  %7326 = vmatmul.mubr.f32.gmra.mrb[120].mxu0 %v7107_v21  ;;  %6985 = vst [vmem:[#allocation3 + $0x98] sm:$0xff] %v6754_v37  ;;  %v5637_v15 = vrot.slane %v4531_v14, %v11339_v13  ;;  %v3125_v29 = vrot.slane %v2014_v48, %v11339_v13  ;;  %v3239_v48 = vstv %s12368_s6  ;;  %v7128_v44 = vld [vmem:[#allocation3 + $0x84] sm:$0xff]  ;;  %v7084_v14 = vld [vmem:[#allocation5 + $0x128] sm:$0xff]  ;;  %s9986_s6 = scalar_lea.vmem %s12912_s16, 2432 }
 0x344   : > { %v3132_v49 = vrot.slane %v3118_v10, %v11339_v13  ;;  %v1960_v56 = vadd.f32 %v1934_v38, %v13031_v30  ;;  %7330 = vmatprep.mubr.f32.mxu0 %v7127_v28  ;;  %v6787_v19 = vcombine.low %v6765_v59, %v6772_v58  ;;  %v9713_v51 = vpack.c.bf16 %v7054_v35, %v7053_v52  ;;  %v7083_v37 = vld [vmem:[#allocation5 + $0x120] sm:$0xff]  ;;  %v7060_v28 = vld [vmem:[#allocation5 + $0x68] sm:$0xff]  ;;  %v12416_v30 = vld [vmem:[#allocation5 + $0x70] sm:$0xff]  ;;  %p9987_p5 = scmp.ne.s32.totalorder %s12912_s16, %s9986_s6  ;;  %p9994_p13 = scmp.lt.s32.totalorder %s9992_s15, %s9986_s6 }
 0x345   : > { %v6788_v27 = vcombine.low %v6779_v7, %v6786_v32  ;;  %v9752_v45 = vpack.c.bf16 %v7080_v26, %v7079_v5  ;;  %9195 = vmatprep.mubr.msk.f32.mxu1 %vm10094_vm5, %v10095_v47  ;;  %v4364_v55 = vrot.slane %v12329_v53, %v11339_v13  ;;  %v4371_v39 = vrot.slane %v12335_v8, %v11339_v13  ;;  %v7056_v8 = vld [vmem:[#allocation5 + $0x48] sm:$0xff]  ;;  %v7059_v32 = vld [vmem:[#allocation5 + $0x60] sm:$0xff] }
 0x346   : > { %v3133_v34 = vcombine.high %v3125_v29, %v3125_v29  ;;  %v3134_v40 = vcombine.high %v3132_v49, %v3132_v49  ;;  %9196 = vmatmul.mubr.f32.gmra.mrb[146].mxu1 %v7146_v54  ;;  %v6795_v9 = vrot.slane %v6787_v19, %v11339_v13  ;;  %v3141_v17 = vrot.slane %v3125_v29, %v11339_v13  ;;  %p9988_p7 = pnand %p9987_p5, %p13039_p6  ;;  %p9995_p1 = por %p9994_p13, %p9993_p11 }
 0x347   : > { %v6802_v43 = vrot.slane %v6788_v27, %v11339_v13  ;;  %v3148_v16 = vrot.slane %v3132_v49, %v11339_v13  ;;  %9714 = vmatpush1.bf16.msra.mxu0 %v9713_v51  ;;  %v12380_v53 = vcombine.low %v6681_v2, %v6688_v60  ;;  %v5638_v46 = vcombine.high %v5637_v15, %v5637_v15 }
 0x348   : > { %v3155_v23 = vrot.slane %v3133_v34, %v11339_v13  ;;  %v12384_v50 = vrot.slane %v3134_v40, %v11339_v13  ;;  %9753 = vmatpush3.bf16.msra.mxu1 %v9752_v45  ;;  %v3163_v0 = vcombine.high %v3141_v17, %v3141_v17  ;;  %v4356_v3 = vcombine.low %v3117_v41, %v3141_v17  ;;  %p9989_p9 = pneg %p9988_p7 }
 0x349   : > { %v6803_v25 = vcombine.low %v6795_v9, %v6802_v43  ;;  %v3164_v22 = vcombine.high %v3148_v16, %v3148_v16  ;;  %9715 = vmatprep.subr.bf16.mxu0 %v13016_v20  ;;  %v6697_v2 = vrot.slane %v12250_v36, %v11339_v13  ;;  %v1991_v42 = vadd.f32 %v12223_v63, %v1960_v56  ;;  %v7062_v56 = vld [vmem:[#allocation5 + $0x78] sm:$0xff] }
 0x34a   : > { %v3165_v60 = vcombine.high %v3155_v23, %v3155_v23  ;;  %9754 = vmatprep.subr.bf16.mxu1 %v13016_v20  ;;  %v4386_v38 = vcombine.low %v4364_v55, %v4371_v39  ;;  %v4357_v12 = vcombine.low %v3155_v23, %v3163_v0  ;;  %v4378_v33 = vrot.slane %v4356_v3, %v11339_v13  ;;  %v7085_v55 = vld [vmem:[#allocation5 + $0x130] sm:$0xff]  ;;  %v7086_v39 = vld [vmem:[#allocation5 + $0x138] sm:$0xff]  ;;  %v7087_v3 = vld [vmem:[#allocation5 + $0x140] sm:$0xff]  ;;  %p9996_p4 = pnand %p9995_p1, %p9989_p9 }
 0x34b   : > { %6986 = vst [vmem:[#allocation3 + $0xa0] sm:$0xff] %v6803_v25  ;;  %v9716_v31 = vpack.c.bf16 %v7056_v8, %v7055_v4  ;;  %7331 = vmatmul.mubr.f32.gmra.mrb[122].mxu0 %v7108_v62  ;;  %v6704_v52 = vrot.slane %v12380_v53, %v11339_v13  ;;  %v12396_v35 = vrot.slane %v5637_v15, %v11339_v13  ;;  %v2015_v18 = vmax.f32 %v1991_v42, 0.0  ;;  %v7147_v0 = vld [vmem:[#allocation3 + $0x85] sm:$0xff]  ;;  %v7064_v62 = vld [vmem:[#allocation5 + $0x88] sm:$0xff] }
 0x34c   : > { %v12399_v63 = vrot.slane %v5638_v46, %v11339_v13  ;;  %7335 = vmatprep.mubr.f32.mxu0 %v7128_v44  ;;  %9198 = vmatprep.mubr.msk.f32.mxu1 %vm10094_vm5, %v10095_v47  ;;  %v4385_v41 = vrot.slane %v4357_v12, %v11339_v13  ;;  %v12405_v10 = vcombine.low %v12384_v50, %v3164_v22  ;;  %vm12407_vm6 = vcmp.eq.s32.totalorder %v3239_v48, 1  ;;  %v7109_v44 = vld [vmem:[#allocation3 + $0x83] sm:$0xff] }
 0x34d   : > { %9717 = vmatpush1.bf16.msra.mxu0 %v9716_v31  ;;  %v9719_v5 = vpack.c.bf16 %v7058_v57, %v7057_v6  ;;  %v9755_v26 = vpack.c.bf16 %v7082_v1, %v7081_v11  ;;  %v4403_v59 = vcombine.low %v3165_v60, %v3148_v16  ;;  %v3167_v58 = vcombine.high %v2015_v18, %v2015_v18  ;;  %vm12432_vm7 = vmand %vm3218_vm1, %vm12407_vm6  ;;  %v7088_v6 = vld [vmem:[#allocation5 + $0x148] sm:$0xff]  ;;  %v7063_v1 = vld [vmem:[#allocation5 + $0x80] sm:$0xff] }
 0x34e   : > { %v3174_v7 = vrot.slane %v2015_v18, %v11339_v13  ;;  %9718 = vmatprep.subr.bf16.mxu0 %v13016_v20  ;;  %v4394_v15 = vrot.slane %v4386_v38, %v11339_v13  ;;  %v4387_v29 = vcombine.low %v4378_v33, %v4385_v41  ;;  %v3166_v49 = vcombine.high %v12384_v50, %v12384_v50  ;;  %v12456_v33 = vld [vmem:[#allocation5 + $0x90] sm:$0xff]  ;;  %v12458_v31 = vld [vmem:[#allocation5 + $0x98] sm:$0xff]  ;;  %vm12490_vm8 = vmand %vm3223_vm3, %vm12407_vm6 }
 0x34f   : > { %9756 = vmatpush3.bf16.msra.mxu1 %v9755_v26  ;;  %v9758_v19 = vpack.c.bf16 %v7084_v14, %v7083_v37  ;;  %v5653_v27 = vcombine.high %v12396_v35, %v12396_v35  ;;  %v3181_v51 = vrot.slane %v3167_v58, %v11339_v13  ;;  %v6804_v34 = vcombine.low %v12396_v35, %v12399_v63 }
 0x350   : > { %v3182_v45 = vcombine.high %v3174_v7, %v3174_v7  ;;  %v3190_v54 = vrot.slane %v3174_v7, %v11339_v13  ;;  %9757 = vmatprep.subr.bf16.mxu1 %v13016_v20  ;;  %v4401_v40 = vrot.slane %v4387_v29, %v11339_v13  ;;  %v4420_v9 = vrot.slane %v12405_v10, %v11339_v13  ;;  %v12472_v29 = vld [vmem:[#allocation5 + $0xa0] sm:$0xff] }
 0x351   : > { %9720 = vmatpush1.bf16.msra.mxu0 %v9719_v5  ;;  %v9722_v43 = vpack.c.bf16 %v7060_v28, %v7059_v32  ;;  %v4413_v16 = vrot.slane %v4403_v59, %v11339_v13  ;;  %v3183_v53 = vcombine.high %v3181_v51, %v3181_v51  ;;  %v9725_v23 = vpack.c.bf16 %v7062_v56, %v12416_v30  ;;  %v12476_v30 = vld [vmem:[#allocation5 + $0xb0] sm:$0xff] }
 0x352   : > { %v3204_v46 = vrot.slane %v3182_v45, %v11339_v13  ;;  %9721 = vmatprep.subr.bf16.mxu0 %v13016_v20  ;;  %v4402_v50 = vcombine.low %v4394_v15, %v4401_v40  ;;  %v3212_v4 = vcombine.high %v3190_v54, %v3190_v54  ;;  %v4405_v8 = vcombine.low %v3166_v49, %v3190_v54  ;;  %v12474_v49 = vld [vmem:[#allocation5 + $0xa8] sm:$0xff]  ;;  %v12483_v54 = vld [vmem:[#allocation5 + $0xb8] sm:$0xff] }
 0x353   : > { %9759 = vmatpush3.bf16.msra.mxu1 %v9758_v19  ;;  %v9761_v25 = vpack.c.bf16 %v7086_v39, %v7085_v55  ;;  %v3197_v24 = vrot.slane %v3181_v51, %v11339_v13  ;;  %v12445_v57 = vcombine.low %v6697_v2, %v6704_v52  ;;  %v3211_v48 = vrot.slane %v3183_v53, %v11339_v13  ;;  %v7089_v55 = vld [vmem:[#allocation5 + $0x150] sm:$0xff]  ;;  %v7090_v39 = vld [vmem:[#allocation5 + $0x158] sm:$0xff] }
 0x354   : > { %v3213_v22 = vcombine.high %v3204_v46, %v3204_v46  ;;  %9760 = vmatprep.subr.bf16.mxu1 %v13016_v20  ;;  %9199 = vmatmul.mubr.f32.gmra.mrb[148].mxu1 %v7147_v0  ;;  %v4532_v60 = vsel %vm12432_vm7, %v4402_v50, 0.0  ;;  %v4406_v42 = vcombine.low %v3204_v46, %v3212_v4  ;;  %v4427_v11 = vrot.slane %v4405_v8, %v11339_v13  ;;  %v12499_v46 = vld [vmem:[#allocation5 + $0x160] sm:$0xff]  ;;  %v12505_v0 = vld [vmem:[#allocation5 + $0x168] sm:$0xff] }
 0x355   : > { %9723 = vmatpush1.bf16.msra.mxu0 %v9722_v43  ;;  %9201 = vmatprep.mubr.msk.f32.mxu1 %vm10094_vm5, %v10095_v47  ;;  %v6814_v38 = vrot.slane %v6804_v34, %v11339_v13  ;;  %v5654_v12 = vcombine.high %v4532_v60, %v4532_v60  ;;  %v5661_v36 = vrot.slane %v4532_v60, %v11339_v13 }
 0x356   : > { %v4452_v2 = vcombine.low %v3213_v22, %v3197_v24  ;;  %9724 = vmatprep.subr.bf16.mxu0 %v13016_v20  ;;  %6984 = vst [vmem:[#allocation3 + $0x90] sm:$0xff] %v12445_v57  ;;  %v4435_v52 = vcombine.low %v4413_v16, %v4420_v9  ;;  %v4434_v63 = vrot.slane %v4406_v42, %v11339_v13 }
 0x357   : > { %9762 = vmatpush3.bf16.msra.mxu1 %v9761_v25  ;;  %v9764_v18 = vpack.c.bf16 %v7088_v6, %v7087_v3  ;;  %7336 = vmatmul.mubr.f32.gmra.mrb[124].mxu0 %v7109_v44  ;;  %v5668_v37 = vrot.slane %v5654_v12, %v11339_v13  ;;  %v5669_v14 = vcombine.high %v5661_v36, %v5661_v36 }
 0x358   : > { %v5677_v41 = vrot.slane %v5661_v36, %v11339_v13  ;;  %v4459_v10 = vrot.slane %v4452_v2, %v11339_v13  ;;  %9763 = vmatprep.subr.bf16.mxu1 %v13016_v20  ;;  %v4436_v5 = vcombine.low %v4427_v11, %v4434_v63  ;;  %v4466_v26 = vrot.slane %v3211_v48, %v11339_v13 }
 0x359   : > { %9726 = vmatpush1.bf16.msra.mxu0 %v9725_v23  ;;  %v9728_v59 = vpack.c.bf16 %v7064_v62, %v7063_v1  ;;  %v9731_v58 = vpack.c.bf16 %v12458_v31, %v12456_v33  ;;  %v5670_v7 = vcombine.high %v5668_v37, %v5668_v37  ;;  %v5684_v32 = vrot.slane %v5668_v37, %v11339_v13 }
 0x35a   : > { %v5691_v28 = vrot.slane %v5669_v14, %v11339_v13  ;;  %v5699_v15 = vcombine.high %v5677_v41, %v5677_v41  ;;  %9727 = vmatprep.subr.bf16.mxu0 %v13016_v20  ;;  %v4443_v56 = vrot.slane %v4435_v52, %v11339_v13  ;;  %v6805_v19 = vcombine.low %v5653_v27, %v5677_v41 }
 0x35b   : > { %v4450_v51 = vrot.slane %v4436_v5, %v11339_v13  ;;  %v4467_v45 = vcombine.low %v4459_v10, %v4466_v26  ;;  %9765 = vmatpush3.bf16.msra.mxu1 %v9764_v18  ;;  %v5698_v34 = vrot.slane %v5670_v7, %v11339_v13  ;;  %v5700_v40 = vcombine.high %v5684_v32, %v5684_v32  ;;  %v7071_v7 = vld [vmem:[#allocation5 + $0xc0] sm:$0xff] }
 0x35c   : > { %v5701_v9 = vcombine.high %v5691_v28, %v5691_v28  ;;  %v6806_v43 = vcombine.low %v5691_v28, %v5699_v15  ;;  %9766 = vmatprep.subr.bf16.mxu1 %v13016_v20  ;;  %v6821_v27 = vrot.slane %v6805_v19, %v11339_v13  ;;  %v9734_v53 = vpack.c.bf16 %v12474_v49, %v12472_v29  ;;  %v7093_v19 = vld [vmem:[#allocation5 + $0x170] sm:$0xff] }
 0x35d   : > { %v4451_v17 = vcombine.low %v4443_v56, %v4450_v51  ;;  %v4474_v16 = vrot.slane %v4467_v45, %v11339_v13  ;;  %9729 = vmatpush1.bf16.msra.mxu0 %v9728_v59  ;;  %v9737_v50 = vpack.c.bf16 %v12483_v54, %v12476_v30  ;;  %v7129_v4 = vld [vmem:[#allocation3 + $0x8c] sm:$0xff]  ;;  %v9767_v25 = vpack.c.bf16 %v7090_v39, %v7089_v55  ;;  %v7130_v62 = vld [vmem:[#allocation3 + $0x94] sm:$0xff]  ;;  %v7094_v51 = vld [vmem:[#allocation5 + $0x178] sm:$0xff] }
 0x35e   : > { %v6807_v23 = vcombine.low %v5701_v9, %v5684_v32  ;;  %v6828_v61 = vrot.slane %v6806_v43, %v11339_v13  ;;  %9730 = vmatprep.subr.bf16.mxu0 %v13016_v20  ;;  %v7148_v8 = vld [vmem:[#allocation3 + $0x8d] sm:$0xff]  ;;  %v6836_v24 = vcombine.low %v6814_v38, %v6821_v27  ;;  %v6853_v22 = vcombine.low %v5698_v34, %v5700_v40  ;;  %v7149_v18 = vld [vmem:[#allocation3 + $0x95] sm:$0xff]  ;;  %v7150_v40 = vld [vmem:[#allocation3 + $0x9d] sm:$0xff] }
 0x35f   : > { %v4533_v3 = vsel %vm12407_vm6, %v4451_v17, 0.0  ;;  %v4534_v6 = vsel %vm12490_vm8, %v4474_v16, 0.0  ;;  %7340 = vmatprep.mubr.f32.mxu0 %v7129_v4  ;;  %9202 = vmatmul.mubr.f32.gmra.mrb[150].mxu1 %v7148_v8  ;;  %v7110_v60 = vld [vmem:[#allocation3 + $0x8b] sm:$0xff]  ;;  %v5702_v12 = vcombine.high %v5698_v34, %v5698_v34  ;;  %v9770_v21 = vpack.c.bf16 %v12505_v0, %v12499_v46  ;;  %v7111_v56 = vld [vmem:[#allocation3 + $0x93] sm:$0xff]  ;;  %v7131_v34 = vld [vmem:[#allocation3 + $0x9c] sm:$0xff] }
 0x360   : > { %v6835_v48 = vrot.slane %v6807_v23, %v11339_v13  ;;  %v5703_v42 = vcombine.high %v4533_v3, %v4533_v3  ;;  %v5710_v11 = vrot.slane %v4533_v3, %v11339_v13  ;;  %v5758_v1 = vrot.slane %v4534_v6, %v11339_v13  ;;  %7341 = vmatmul.mubr.f32.gmra.mrb[126].mxu0 %v7110_v60  ;;  %v7072_v32 = vld [vmem:[#allocation5 + $0xc8] sm:$0xff]  ;;  %v7074_v4 = vld [vmem:[#allocation5 + $0xd8] sm:$0xff]  ;;  %v7075_v6 = vld [vmem:[#allocation5 + $0xe0] sm:$0xff] }
 0x361   : > { %v6844_v38 = vrot.slane %v6836_v24, %v11339_v13  ;;  %9732 = vmatpush1.bf16.msra.mxu0 %v9731_v58  ;;  %7345 = vmatprep.mubr.f32.mxu0 %v7130_v62  ;;  %v6863_v63 = vrot.slane %v6853_v22, %v11339_v13  ;;  %v9740_v17 = vpack.c.bf16 %v7072_v32, %v7071_v7  ;;  %v7112_v8 = vld [vmem:[#allocation3 + $0x9b] sm:$0xff]  ;;  %v7076_v60 = vld [vmem:[#allocation5 + $0xe8] sm:$0xff] }
 0x362   : > { %v6837_v36 = vcombine.low %v6828_v61, %v6835_v48  ;;  %v5717_v2 = vrot.slane %v5703_v42, %v11339_v13  ;;  %v5718_v33 = vcombine.high %v5710_v11, %v5710_v11  ;;  %v5726_v31 = vrot.slane %v5710_v11, %v11339_v13  ;;  %9733 = vmatprep.subr.bf16.mxu0 %v13016_v20  ;;  %v7073_v61 = vld [vmem:[#allocation5 + $0xd0] sm:$0xff]  ;;  %v7931_v48 = vld [vmem:[#allocation5 + $0x400] sm:$0xff]  ;;  %v7902_v32 = vld [vmem:[#allocation5 + $0x318] sm:$0xff] }
 0x363   : > { %v5759_v44 = vcombine.high %v5758_v1, %v5758_v1  ;;  %v5766_v52 = vrot.slane %v5758_v1, %v11339_v13  ;;  %9204 = vmatprep.mubr.msk.f32.mxu1 %vm10094_vm5, %v10095_v47  ;;  %9768 = vmatpush3.bf16.msra.mxu1 %v9767_v25  ;;  %v9773_v16 = vpack.c.bf16 %v7094_v51, %v7093_v19  ;;  %v7932_v1 = vld [vmem:[#allocation5 + $0x408] sm:$0xff]  ;;  %v7901_v7 = vld [vmem:[#allocation5 + $0x310] sm:$0xff]  ;;  %v7903_v19 = vld [vmem:[#allocation5 + $0x320] sm:$0xff] }
 0x364   : > { %v6851_v37 = vrot.slane %v6837_v36, %v11339_v13  ;;  %v5719_v14 = vcombine.high %v5717_v2, %v5717_v2  ;;  %v5733_v41 = vrot.slane %v5717_v2, %v11339_v13  ;;  %v5740_v10 = vrot.slane %v5718_v33, %v11339_v13  ;;  %9205 = vmatmul.mubr.f32.gmra.mrb[152].mxu1 %v7149_v18  ;;  %v7077_v33 = vld [vmem:[#allocation5 + $0xf0] sm:$0xff]  ;;  %v7934_v18 = vld [vmem:[#allocation5 + $0x418] sm:$0xff]  ;;  %v7904_v51 = vld [vmem:[#allocation5 + $0x328] sm:$0xff] }
 0x365   : > { %v5748_v5 = vcombine.high %v5726_v31, %v5726_v31  ;;  %v5773_v26 = vrot.slane %v5759_v44, %v11339_v13  ;;  %v5774_v59 = vcombine.high %v5766_v52, %v5766_v52  ;;  %v6854_v58 = vcombine.low %v5702_v12, %v5726_v31  ;;  %9735 = vmatpush1.bf16.msra.mxu0 %v9734_v53  ;;  %v7078_v31 = vld [vmem:[#allocation5 + $0xf8] sm:$0xff] }
 0x366   : > { %v6852_v28 = vcombine.low %v6844_v38, %v6851_v37  ;;  %v5747_v15 = vrot.slane %v5719_v14, %v11339_v13  ;;  %v5749_v29 = vcombine.high %v5733_v41, %v5733_v41  ;;  %v5750_v49 = vcombine.high %v5740_v10, %v5740_v10  ;;  %9736 = vmatprep.subr.bf16.mxu0 %v13016_v20  ;;  %v7009_v44 = vld [vmem:[#allocation3 + $0x1] sm:$0xff] }
 0x367   : > { %v6855_v45 = vcombine.low %v5740_v10, %v5748_v5  ;;  %v6870_v55 = vrot.slane %v6854_v58, %v11339_v13  ;;  %v6904_v39 = vcombine.low %v5773_v26, %v5774_v59  ;;  %7346 = vmatmul.mubr.f32.gmra.mrb[128].mxu0 %v7111_v56  ;;  %9207 = vmatprep.mubr.msk.f32.mxu1 %vm10094_vm5, %v10095_v47  ;;  %v7899_v14 = vld [vmem:[#allocation5 + $0x300] sm:$0xff]  ;;  %v7936_v59 = vld [vmem:[#allocation5 + $0x428] sm:$0xff] }
 0x368   : > { %6987 = vst [vmem:[#allocation3 + $0xa8] sm:$0xff] %v6852_v28  ;;  %v5751_v9 = vcombine.high %v5747_v15, %v5747_v15  ;;  %v6856_v43 = vcombine.low %v5750_v49, %v5733_v41  ;;  %v6902_v35 = vcombine.low %v5747_v15, %v5749_v29  ;;  %7350 = vmatprep.mubr.f32.mxu0 %v7131_v34  ;;  %v7900_v41 = vld [vmem:[#allocation5 + $0x308] sm:$0xff]  ;;  %v7935_v26 = vld [vmem:[#allocation5 + $0x420] sm:$0xff]  ;;  %v6990_v28 = vld [vmem:[#allocation3] sm:$0xff] }
 0x369   : > { %9208 = vmatmul.mubr.f32.gmra.mrb[154].mxu1 %v7150_v40  ;;  %v6885_v27 = vcombine.low %v6863_v63, %v6870_v55  ;;  %9738 = vmatpush1.bf16.msra.mxu0 %v9737_v50  ;;  %v6877_v53 = vrot.slane %v6855_v45, %v11339_v13  ;;  %v6925_v25 = vrot.slane %v6904_v39, %v11339_v13  ;;  %v7933_v63 = vld [vmem:[#allocation5 + $0x410] sm:$0xff]  ;;  %v7029_v5 = vld [vmem:[#allocation3 + $0xa] sm:$0xff]  ;;  %v7938_v40 = vld [vmem:[#allocation5 + $0x438] sm:$0xff] }
 0x36a   : > { %9769 = vmatprep.subr.bf16.mxu1 %v13016_v20  ;;  %v6884_v46 = vrot.slane %v6856_v43, %v11339_v13  ;;  %v6903_v23 = vcombine.low %v5751_v9, %v5766_v52  ;;  %9739 = vmatprep.subr.bf16.mxu0 %v13016_v20  ;;  %v6911_v54 = vrot.slane %v6902_v35, %v11339_v13  ;;  %v7030_v15 = vld [vmem:[#allocation3 + $0x12] sm:$0xff]  ;;  %v7010_v49 = vld [vmem:[#allocation3 + $0x9] sm:$0xff]  ;;  %v7031_v55 = vld [vmem:[#allocation3 + $0x1a] sm:$0xff] }
 0x36b   : > { %9771 = vmatpush3.bf16.msra.mxu1 %v9770_v21  ;;  %7351 = vmatmul.mubr.f32.gmra.mrb[130].mxu0 %v7112_v8  ;;  %v9743_v0 = vpack.c.bf16 %v7074_v4, %v7073_v61  ;;  %v6893_v24 = vrot.slane %v6885_v27, %v11339_v13  ;;  %v6940_v12 = vrot.slane %v6925_v25, %v11339_v13  ;;  %v6991_v45 = vld [vmem:[#allocation3 + $0x8] sm:$0xff]  ;;  %v7011_v39 = vld [vmem:[#allocation3 + $0x11] sm:$0xff]  ;;  %v7906_v35 = vld [vmem:[#allocation5 + $0x338] sm:$0xff] }
 0x36c   : > { %9210 = vmatprep.mubr.msk.f32.mxu1 %vm10094_vm5, %v10095_v47  ;;  %v6886_v30 = vcombine.low %v6877_v53, %v6884_v46  ;;  %v6918_v50 = vrot.slane %v6903_v23, %v11339_v13  ;;  %9772 = vmatprep.subr.bf16.mxu1 %v13016_v20  ;;  %v9746_v21 = vpack.c.bf16 %v7076_v60, %v7075_v6  ;;  %v7937_v34 = vld [vmem:[#allocation5 + $0x430] sm:$0xff]  ;;  %v6992_v27 = vld [vmem:[#allocation3 + $0x10] sm:$0xff]  ;;  %v7907_v23 = vld [vmem:[#allocation5 + $0x340] sm:$0xff] }
 0x36d   : > { %9741 = vmatpush1.bf16.msra.mxu0 %v9740_v17  ;;  %v12555_v52 = vpack.c.bf16 %v7932_v1, %v7931_v48  ;;  %v9749_v37 = vpack.c.bf16 %v7078_v31, %v7077_v33  ;;  %v12561_v10 = vpack.c.bf16 %v7934_v18, %v7933_v63  ;;  %v9776_v58 = vpack.c.bf16 %v7900_v41, %v7899_v14  ;;  %v7905_v43 = vld [vmem:[#allocation5 + $0x330] sm:$0xff]  ;;  %v7032_v17 = vld [vmem:[#allocation3 + $0x22] sm:$0xff]  ;;  %v7908_v61 = vld [vmem:[#allocation5 + $0x348] sm:$0xff] }
 0x36e   : > { %v6900_v22 = vrot.slane %v6886_v30, %v11339_v13  ;;  %v6926_v3 = vcombine.low %v6911_v54, %v6918_v50  ;;  %9742 = vmatprep.subr.bf16.mxu0 %v13016_v20  ;;  %v12569_v29 = vpack.c.bf16 %v7936_v59, %v7935_v26  ;;  %v9779_v56 = vpack.c.bf16 %v7902_v32, %v7901_v7  ;;  %v7012_v53 = vld [vmem:[#allocation3 + $0x19] sm:$0xff]  ;;  %v7033_v8 = vld [vmem:[#allocation3 + $0x2a] sm:$0xff]  ;;  %v7013_v30 = vld [vmem:[#allocation3 + $0x21] sm:$0xff] }
 0x36f   : > { %9774 = vmatpush3.bf16.msra.mxu1 %v9773_v16  ;;  %v7132_v42 = vld [vmem:[#allocation3 + $0xa4] sm:$0xff]  ;;  %v9782_v9 = vpack.c.bf16 %v7904_v51, %v7903_v19  ;;  %v12579_v16 = vpack.c.bf16 %v7938_v40, %v7937_v34  ;;  %v9785_v46 = vpack.c.bf16 %v7906_v35, %v7905_v43  ;;  %v6993_v4 = vld [vmem:[#allocation3 + $0x18] sm:$0xff]  ;;  %v7940_v50 = vld [vmem:[#allocation5 + $0x448] sm:$0xff]  ;;  %v9788_v25 = vpack.c.bf16 %v7908_v61, %v7907_v23 }
 0x370   : > { %v7151_v11 = vld [vmem:[#allocation3 + $0xa5] sm:$0xff]  ;;  %9847 = vmatprep.subr.bf16.mxu1 %v13016_v20  ;;  %v6901_v62 = vcombine.low %v6893_v24, %v6900_v22  ;;  %v6933_v38 = vrot.slane %v6926_v3, %v11339_v13  ;;  %7355 = vmatprep.mubr.f32.mxu0 %v7132_v42  ;;  %v7034_v3 = vld [vmem:[#allocation3 + $0x32] sm:$0xff]  ;;  %v7039_v34 = vld [vmem:[#allocation3 + $0x5a] sm:$0xff] }
 0x371   : > { %9211 = vmatmul.mubr.f32.gmra.mrb[156].mxu1 %v7151_v11  ;;  %9744 = vmatpush1.bf16.msra.mxu0 %v9743_v0  ;;  %v7113_v36 = vld [vmem:[#allocation3 + $0xa3] sm:$0xff]  ;;  %v7909_v0 = vld [vmem:[#allocation5 + $0x350] sm:$0xff]  ;;  %v7912_v11 = vld [vmem:[#allocation5 + $0x368] sm:$0xff] }
 0x372   : > { %9245 = vmatprep.mubr.msk.f32.mxu1 %vm10094_vm5, %v10095_v47  ;;  %v6941_v2 = vcombine.low %v6933_v38, %v6940_v12  ;;  %6988 = vst [vmem:[#allocation3 + $0xb0] sm:$0xff] %v6901_v62  ;;  %9745 = vmatprep.subr.bf16.mxu0 %v13016_v20  ;;  %v7028_v13 = vld [vmem:[#allocation3 + $0x2] sm:$0xff]  ;;  %v7035_v62 = vld [vmem:[#allocation3 + $0x3a] sm:$0xff]  ;;  %v7015_v38 = vld [vmem:[#allocation3 + $0x31] sm:$0xff] }
 0x373   : > { %7356 = vmatmul.mubr.f32.gmra.mrb[132].mxu0 %v7113_v36  ;;  %v7939_v54 = vld [vmem:[#allocation5 + $0x440] sm:$0xff]  ;;  %v7910_v24 = vld [vmem:[#allocation5 + $0x358] sm:$0xff]  ;;  %v7941_v12 = vld [vmem:[#allocation5 + $0x450] sm:$0xff] }
 0x374   : > { %7585 = vmatprep.mubr.f32.mxu0 %v7009_v44  ;;  %6989 = vst [vmem:[#allocation3 + $0xb8] sm:$0x3f] %v6941_v2  ;;  %v6994_v22 = vld [vmem:[#allocation3 + $0x20] sm:$0xff]  ;;  %v12589_v6 = vpack.c.bf16 %v7940_v50, %v7939_v54  ;;  %v7014_v60 = vld [vmem:[#allocation3 + $0x29] sm:$0xff]  ;;  %v9791_v48 = vpack.c.bf16 %v7910_v24, %v7909_v0  ;;  %v7913_v2 = vld [vmem:[#allocation5 + $0x370] sm:$0xff] }
 0x375   : > { %9246 = vmatmul.mubr.f32.vlgmr.msra.gmra.mrb[158].mxu1 %v7028_v13  ;;  %9747 = vmatpush1.bf16.msra.mxu0 %v9746_v21  ;;  %v7911_v42 = vld [vmem:[#allocation5 + $0x360] sm:$0xff]  ;;  %v7942_v21 = vld [vmem:[#allocation5 + $0x458] sm:$0xff]  ;;  %v12601_v31 = vld [vmem:[#allocation3 + $0x30] sm:$0xff] }
 0x376   : > { %9248 = vmatprep.mubr.msk.f32.mxu1 %vm10094_vm5, %v10095_v47  ;;  %9748 = vmatprep.subr.bf16.mxu0 %v13016_v20  ;;  %v12594_v1 = vld [vmem:[#allocation3 + $0x28] sm:$0xff]  ;;  %v9794_v36 = vpack.c.bf16 %v7912_v11, %v7911_v42  ;;  %v7914_v33 = vld [vmem:[#allocation5 + $0x378] sm:$0xff]  ;;  %v12604_v13 = vpack.c.bf16 %v7942_v21, %v7941_v12  ;;  %v7916_v14 = vld [vmem:[#allocation5 + $0x388] sm:$0xff] }
 0x377   : > { %9855 = vmatpush3.bf16.msra.mxu1 %v12555_v52  ;;  %v7036_v44 = vld [vmem:[#allocation3 + $0x42] sm:$0xff]  ;;  %v7016_v63 = vld [vmem:[#allocation3 + $0x39] sm:$0xff]  ;;  %v9797_v18 = vpack.c.bf16 %v7914_v33, %v7913_v2  ;;  %v7019_v40 = vld [vmem:[#allocation3 + $0x51] sm:$0xff] }
 0x378   : > { %9848 = vmatprep.subr.bf16.mxu1 %v13016_v20  ;;  %v12610_v41 = vld [vmem:[#allocation3 + $0x38] sm:$0xff]  ;;  %v7017_v26 = vld [vmem:[#allocation3 + $0x41] sm:$0xff]  ;;  %v7018_v19 = vld [vmem:[#allocation3 + $0x49] sm:$0xff] }
 0x379   : > { %9249 = vmatmul.mubr.f32.gmra.mrb[160].mxu1 %v7029_v5  ;;  %9750 = vmatpush1.bf16.msra.mxu0 %v9749_v37  ;;  %v7915_v37 = vld [vmem:[#allocation5 + $0x380] sm:$0xff]  ;;  %v7917_v32 = vld [vmem:[#allocation5 + $0x390] sm:$0xff]  ;;  %v7946_v43 = vld [vmem:[#allocation5 + $0x478] sm:$0xff] }
 0x37a   : > { %9251 = vmatprep.mubr.msk.f32.mxu1 %vm10094_vm5, %v10095_v47  ;;  %9775 = vmatprep.subr.bf16.mxu0 %v13016_v20  ;;  %v7037_v5 = vld [vmem:[#allocation3 + $0x4a] sm:$0xff]  ;;  %v9800_v7 = vpack.c.bf16 %v7916_v14, %v7915_v37  ;;  %v7020_v61 = vld [vmem:[#allocation3 + $0x59] sm:$0xff]  ;;  %v7044_v33 = vld [vmem:[#allocation3 + $0x82] sm:$0xff] }
 0x37b   : > { %9856 = vmatpush3.bf16.msra.mxu1 %v12561_v10  ;;  %v7943_v59 = vld [vmem:[#allocation5 + $0x460] sm:$0xff]  ;;  %v7924_v50 = vld [vmem:[#allocation5 + $0x3c8] sm:$0xff]  ;;  %v12648_v0 = vld [vmem:[#allocation3 + $0x60] sm:$0xff] }
 0x37c   : > { %9849 = vmatprep.subr.bf16.mxu1 %v13016_v20  ;;  %7586 = vmatmul.mubr.f32.vlgmr.msra.gmra.mrb[134].mxu0 %v6990_v28  ;;  %v7918_v28 = vld [vmem:[#allocation5 + $0x398] sm:$0xff]  ;;  %v7923_v54 = vld [vmem:[#allocation5 + $0x3c0] sm:$0xff]  ;;  %v7928_v12 = vld [vmem:[#allocation5 + $0x3e8] sm:$0xff] }
 0x37d   : > { %9252 = vmatmul.mubr.f32.gmra.mrb[162].mxu1 %v7030_v15  ;;  %7590 = vmatprep.mubr.f32.mxu0 %v7010_v49  ;;  %v12617_v15 = vld [vmem:[#allocation3 + $0x40] sm:$0xff]  ;;  %v7038_v49 = vld [vmem:[#allocation3 + $0x52] sm:$0xff]  ;;  %v9803_v51 = vpack.c.bf16 %v7918_v28, %v7917_v32  ;;  %v9812_v24 = vpack.c.bf16 %v7924_v50, %v7923_v54  ;;  %v12654_v42 = vld [vmem:[#allocation3 + $0x68] sm:$0xff] }
 0x37e   : > { %9777 = vmatpush1.bf16.msra.mxu0 %v9776_v58  ;;  %9254 = vmatprep.mubr.msk.f32.mxu1 %vm10094_vm5, %v10095_v47  ;;  %v7944_v58 = vld [vmem:[#allocation5 + $0x468] sm:$0xff]  ;;  %v12666_v14 = vld [vmem:[#allocation3 + $0x78] sm:$0xff]  ;;  %v12678_v32 = vld [vmem:[#allocation3 + $0x88] sm:$0xff] }
 0x37f   : > { %9778 = vmatprep.subr.bf16.mxu0 %v13016_v20  ;;  %9857 = vmatpush3.bf16.msra.mxu1 %v12569_v29  ;;  %v7023_v21 = vld [vmem:[#allocation3 + $0x71] sm:$0xff] }
 0x380   : > { %7591 = vmatmul.mubr.f32.gmra.mrb[136].mxu0 %v6991_v45  ;;  %9850 = vmatprep.subr.bf16.mxu1 %v13016_v20  ;;  %v7919_v45 = vld [vmem:[#allocation5 + $0x3a0] sm:$0xff]  ;;  %v7027_v28 = vld [vmem:[#allocation3 + $0x91] sm:$0xff] }
 0x381   : > { %9255 = vmatmul.mubr.f32.gmra.mrb[164].mxu1 %v7031_v55  ;;  %7595 = vmatprep.mubr.f32.mxu0 %v7011_v39  ;;  %v7920_v55 = vld [vmem:[#allocation5 + $0x3a8] sm:$0xff]  ;;  %v12626_v39 = vld [vmem:[#allocation3 + $0x48] sm:$0xff] }
 0x382   : > { %9780 = vmatpush1.bf16.msra.mxu0 %v9779_v56  ;;  %9257 = vmatprep.mubr.msk.f32.mxu1 %vm10094_vm5, %v10095_v47  ;;  %v12620_v56 = vpack.c.bf16 %v7944_v58, %v7943_v59  ;;  %v9806_v35 = vpack.c.bf16 %v7920_v55, %v7919_v45  ;;  %v12672_v59 = vld [vmem:[#allocation3 + $0x80] sm:$0xff]  ;;  %v7046_v58 = vld [vmem:[#allocation3 + $0x92] sm:$0xff] }
 0x383   : > { %9781 = vmatprep.subr.bf16.mxu0 %v13016_v20  ;;  %9858 = vmatpush3.bf16.msra.mxu1 %v12579_v16  ;;  %v7843_v45 = vld [vmem:[#allocation3 + $0x36] sm:$0xff]  ;;  %v7844_v55 = vld [vmem:[#allocation3 + $0x3e] sm:$0xff]  ;;  %v7850_v54 = vld [vmem:[#allocation3 + $0x6e] sm:$0xff] }
 0x384   : > { %7596 = vmatmul.mubr.f32.gmra.mrb[138].mxu0 %v6992_v27  ;;  %9851 = vmatprep.subr.bf16.mxu1 %v13016_v20  ;;  %v12630_v27 = vld [vmem:[#allocation3 + $0x50] sm:$0xff] }
 0x385   : > { %9258 = vmatmul.mubr.f32.gmra.mrb[166].mxu1 %v7032_v17  ;;  %7600 = vmatprep.mubr.f32.mxu0 %v7012_v53  ;;  %v7040_v17 = vld [vmem:[#allocation3 + $0x62] sm:$0xff]  ;;  %v7921_v53 = vld [vmem:[#allocation5 + $0x3b0] sm:$0xff] }
 0x386   : > { %9783 = vmatpush1.bf16.msra.mxu0 %v9782_v9  ;;  %9260 = vmatprep.mubr.msk.f32.mxu1 %vm10094_vm5, %v10095_v47  ;;  %v7945_v9 = vld [vmem:[#allocation5 + $0x470] sm:$0xff] }
 0x387   : > { %9784 = vmatprep.subr.bf16.mxu0 %v13016_v20  ;;  %9859 = vmatpush3.bf16.msra.mxu1 %v12589_v6  ;;  %v12636_v23 = vpack.c.bf16 %v7946_v43, %v7945_v9  ;;  %v7867_v9 = vld [vmem:[#allocation3 + $0x5f] sm:$0xff] }
 0x388   : > { %7601 = vmatmul.mubr.f32.gmra.mrb[140].mxu0 %v6993_v4  ;;  %9852 = vmatprep.subr.bf16.mxu1 %v13016_v20  ;;  %v12639_v4 = vld [vmem:[#allocation3 + $0x58] sm:$0xff] }
 0x389   : > { %9261 = vmatmul.mubr.f32.gmra.mrb[168].mxu1 %v7033_v8  ;;  %7605 = vmatprep.mubr.f32.mxu0 %v7013_v30  ;;  %v7041_v30 = vld [vmem:[#allocation3 + $0x6a] sm:$0xff]  ;;  %v7848_v43 = vld [vmem:[#allocation3 + $0x5e] sm:$0xff] }
 0x38a   : > { %9786 = vmatpush1.bf16.msra.mxu0 %v9785_v46  ;;  %9263 = vmatprep.mubr.msk.f32.mxu1 %vm10094_vm5, %v10095_v47  ;;  %v7922_v46 = vld [vmem:[#allocation5 + $0x3b8] sm:$0xff] }
 0x38b   : > { %9787 = vmatprep.subr.bf16.mxu0 %v13016_v20  ;;  %9860 = vmatpush3.bf16.msra.mxu1 %v12604_v13  ;;  %v9809_v8 = vpack.c.bf16 %v7922_v46, %v7921_v53  ;;  %v7849_v46 = vld [vmem:[#allocation3 + $0x66] sm:$0xff] }
 0x38c   : > { %7606 = vmatmul.mubr.f32.gmra.mrb[142].mxu0 %v6994_v22  ;;  %9853 = vmatprep.subr.bf16.mxu1 %v13016_v20  ;;  %v7042_v22 = vld [vmem:[#allocation3 + $0x72] sm:$0xff] }
 0x38d   : > { %9264 = vmatmul.mubr.f32.gmra.mrb[170].mxu1 %v7034_v3  ;;  %7610 = vmatprep.mubr.f32.mxu0 %v7014_v60  ;;  %v7925_v3 = vld [vmem:[#allocation5 + $0x3d0] sm:$0xff]  ;;  %v7926_v60 = vld [vmem:[#allocation5 + $0x3d8] sm:$0xff] }
 0x38e   : > { %9789 = vmatpush1.bf16.msra.mxu0 %v9788_v25  ;;  %9266 = vmatprep.mubr.msk.f32.mxu1 %vm10094_vm5, %v10095_v47  ;;  %v7021_v25 = vld [vmem:[#allocation3 + $0x61] sm:$0xff]  ;;  %v9815_v11 = vpack.c.bf16 %v7926_v60, %v7925_v3  ;;  %v7851_v3 = vld [vmem:[#allocation3 + $0x76] sm:$0xff] }
 0x38f   : > { %9790 = vmatprep.subr.bf16.mxu0 %v13016_v20  ;;  %9861 = vmatpush3.bf16.msra.mxu1 %v12620_v56  ;;  %v7893_v60 = vld [vmem:[#allocation3 + $0x98] sm:$0xff] }
 0x390   : > { %7611 = vmatmul.mubr.f32.gmra.mrb[144].mxu0 %v12594_v1  ;;  %9854 = vmatprep.subr.bf16.mxu1 %v13016_v20 }
 0x391   : > { %9267 = vmatmul.mubr.f32.gmra.mrb[172].mxu1 %v7035_v62  ;;  %7615 = vmatprep.mubr.f32.mxu0 %v7015_v38  ;;  %v7043_v62 = vld [vmem:[#allocation3 + $0x7a] sm:$0xff]  ;;  %v7927_v38 = vld [vmem:[#allocation5 + $0x3e0] sm:$0xff] }
 0x392   : > { %9792 = vmatpush1.bf16.msra.mxu0 %v9791_v48  ;;  %9269 = vmatprep.mubr.msk.f32.mxu1 %vm10094_vm5, %v10095_v47  ;;  %v7022_v48 = vld [vmem:[#allocation3 + $0x69] sm:$0xff]  ;;  %v9818_v2 = vpack.c.bf16 %v7928_v12, %v7927_v38  ;;  %v7852_v12 = vld [vmem:[#allocation3 + $0x7e] sm:$0xff] }
 0x393   : > { %9793 = vmatprep.subr.bf16.mxu0 %v13016_v20  ;;  %9862 = vmatpush3.bf16.msra.mxu1 %v12636_v23 }
 0x394   : > { %7616 = vmatmul.mubr.f32.gmra.mrb[146].mxu0 %v12601_v31 }
 0x395   : > { %9270 = vmatmul.mubr.f32.gmra.mrb[174].mxu1 %v7036_v44  ;;  %7620 = vmatprep.mubr.f32.mxu0 %v7016_v63  ;;  %v7929_v44 = vld [vmem:[#allocation5 + $0x3f0] sm:$0xff]  ;;  %v7930_v63 = vld [vmem:[#allocation5 + $0x3f8] sm:$0xff] }
 0x396   : > { %9795 = vmatpush1.bf16.msra.mxu0 %v9794_v36  ;;  %9272 = vmatprep.mubr.msk.f32.mxu1 %vm10094_vm5, %v10095_v47  ;;  %v12660_v36 = vld [vmem:[#allocation3 + $0x70] sm:$0xff]  ;;  %v9821_v37 = vpack.c.bf16 %v7930_v63, %v7929_v44 }
 0x397   : > { %9796 = vmatprep.subr.bf16.mxu0 %v13016_v20 }
 0x398   : > { %7621 = vmatmul.mubr.f32.gmra.mrb[148].mxu0 %v12610_v41 }
 0x399   : > { %9273 = vmatmul.mubr.f32.gmra.mrb[176].mxu1 %v7037_v5  ;;  %7625 = vmatprep.mubr.f32.mxu0 %v7017_v26  ;;  %v7045_v5 = vld [vmem:[#allocation3 + $0x8a] sm:$0xff]  ;;  %v7025_v26 = vld [vmem:[#allocation3 + $0x81] sm:$0xff] }
 0x39a   : > { %9798 = vmatpush1.bf16.msra.mxu0 %v9797_v18  ;;  %9275 = vmatprep.mubr.msk.f32.mxu1 %vm10094_vm5, %v10095_v47  ;;  %v7024_v18 = vld [vmem:[#allocation3 + $0x79] sm:$0xff] }
 0x39b   : > { %9799 = vmatprep.subr.bf16.mxu0 %v13016_v20 }
 0x39c   : > { %7626 = vmatmul.mubr.f32.gmra.mrb[150].mxu0 %v12617_v15 }
 0x39d   : > { %9276 = vmatmul.mubr.f32.gmra.mrb[178].mxu1 %v7038_v49  ;;  %7630 = vmatprep.mubr.f32.mxu0 %v7018_v19  ;;  %v7860_v49 = vld [vmem:[#allocation3 + $0x27] sm:$0xff] }
 0x39e   : > { %9801 = vmatpush1.bf16.msra.mxu0 %v9800_v7  ;;  %9278 = vmatprep.mubr.msk.f32.mxu1 %vm10094_vm5, %v10095_v47  ;;  %v7026_v7 = vld [vmem:[#allocation3 + $0x89] sm:$0xff] }
 0x39f   : > { %9802 = vmatprep.subr.bf16.mxu0 %v13016_v20  ;;  %v7841_v19 = vld [vmem:[#allocation3 + $0x26] sm:$0xff] }
 0x3a0   : > { %7631 = vmatmul.mubr.f32.gmra.mrb[152].mxu0 %v12626_v39 }
 0x3a1   : > { %9279 = vmatmul.mubr.f32.gmra.mrb[180].mxu1 %v7039_v34  ;;  %7635 = vmatprep.mubr.f32.mxu0 %v7019_v40  ;;  %v7865_v34 = vld [vmem:[#allocation3 + $0x4f] sm:$0xff]  ;;  %v7866_v40 = vld [vmem:[#allocation3 + $0x57] sm:$0xff] }
 0x3a2   : > { %9804 = vmatpush1.bf16.msra.mxu0 %v9803_v51  ;;  %9281 = vmatprep.mubr.msk.f32.mxu1 %vm10094_vm5, %v10095_v47  ;;  %v7861_v51 = vld [vmem:[#allocation3 + $0x2f] sm:$0xff] }
 0x3a3   : > { %9805 = vmatprep.subr.bf16.mxu0 %v13016_v20 }
 0x3a4   : > { %7636 = vmatmul.mubr.f32.gmra.mrb[154].mxu0 %v12630_v27 }
 0x3a5   : > { %9282 = vmatmul.mubr.f32.gmra.mrb[182].mxu1 %v7040_v17  ;;  %7640 = vmatprep.mubr.f32.mxu0 %v7020_v61  ;;  %v7869_v61 = vld [vmem:[#allocation3 + $0x6f] sm:$0xff] }
 0x3a6   : > { %9807 = vmatpush1.bf16.msra.mxu0 %v9806_v35  ;;  %9284 = vmatprep.mubr.msk.f32.mxu1 %vm10094_vm5, %v10095_v47 }
 0x3a7   : > { %9808 = vmatprep.subr.bf16.mxu0 %v13016_v20 }
 0x3a8   : > { %7641 = vmatmul.mubr.f32.gmra.mrb[156].mxu0 %v12639_v4 }
 0x3a9   : > { %9285 = vmatmul.mubr.f32.gmra.mrb[184].mxu1 %v7041_v30  ;;  %7645 = vmatprep.mubr.f32.mxu0 %v7021_v25  ;;  %v7870_v25 = vld [vmem:[#allocation3 + $0x77] sm:$0xff] }
 0x3aa   : > { %9287 = vmatprep.mubr.msk.f32.mxu1 %vm10094_vm5, %v10095_v47  ;;  %9810 = vmatpush1.bf16.msra.mxu0 %v9809_v8 }
 0x3ab   : > { %9811 = vmatprep.subr.bf16.mxu0 %v13016_v20 }
 0x3ac   : > { %7646 = vmatmul.mubr.f32.gmra.mrb[158].mxu0 %v12648_v0 }
 0x3ad   : > { %9288 = vmatmul.mubr.f32.gmra.mrb[186].mxu1 %v7042_v22  ;;  %7650 = vmatprep.mubr.f32.mxu0 %v7022_v48 }
 0x3ae   : > { %9290 = vmatprep.mubr.msk.f32.mxu1 %vm10094_vm5, %v10095_v47  ;;  %9813 = vmatpush1.bf16.msra.mxu0 %v9812_v24 }
 0x3af   : > { %9814 = vmatprep.subr.bf16.mxu0 %v13016_v20 }
 0x3b0   : > { %7651 = vmatmul.mubr.f32.gmra.mrb[160].mxu0 %v12654_v42 }
 0x3b1   : > { %9291 = vmatmul.mubr.f32.gmra.mrb[188].mxu1 %v7043_v62  ;;  %7655 = vmatprep.mubr.f32.mxu0 %v7023_v21  ;;  %v7894_v21 = vld [vmem:[#allocation3 + $0xa0] sm:$0xff] }
 0x3b2   : > { %9293 = vmatprep.mubr.msk.f32.mxu1 %vm10094_vm5, %v10095_v47  ;;  %9816 = vmatpush1.bf16.msra.mxu0 %v9815_v11 }
 0x3b3   : > { %9817 = vmatprep.subr.bf16.mxu0 %v13016_v20 }
 0x3b4   : > { %7656 = vmatmul.mubr.f32.gmra.mrb[162].mxu0 %v12660_v36 }
 0x3b5   : > { %9294 = vmatmul.mubr.f32.gmra.mrb[190].mxu1 %v7044_v33  ;;  %7660 = vmatprep.mubr.f32.mxu0 %v7024_v18 }
 0x3b6   : > { %9296 = vmatprep.mubr.msk.f32.mxu1 %vm10094_vm5, %v10095_v47  ;;  %9819 = vmatpush1.bf16.msra.mxu0 %v9818_v2 }
 0x3b7   : > { %9820 = vmatprep.subr.bf16.mxu0 %v13016_v20 }
 0x3b8   : > { %7661 = vmatmul.mubr.f32.gmra.mrb[164].mxu0 %v12666_v14 }
 0x3b9   : > { %9297 = vmatmul.mubr.f32.gmra.mrb[192].mxu1 %v7045_v5  ;;  %7665 = vmatprep.mubr.f32.mxu0 %v7025_v26  ;;  %v7873_v5 = vld [vmem:[#allocation3 + $0x8f] sm:$0xff] }
 0x3ba   : > { %9299 = vmatprep.mubr.msk.f32.mxu1 %vm10094_vm5, %v10095_v47  ;;  %9822 = vmatpush1.bf16.msra.mxu0 %v9821_v37  ;;  %v7853_v37 = vld [vmem:[#allocation3 + $0x86] sm:$0xff] }
 0x3bb   : > { %9823 = vmatprep.subr.bf16.mxu0 %v13016_v20 }
 0x3bc   : > { %7666 = vmatmul.mubr.f32.gmra.mrb[166].mxu0 %v12672_v59 }
 0x3bd   : > { %9300 = vmatmul.mubr.f32.gmra.mrb[194].mxu1 %v7046_v58  ;;  %7670 = vmatprep.mubr.f32.mxu0 %v7026_v7 }
 0x3be   : > { %9340 = vmatprep.mubr.msk.f32.mxu1 %vm10094_vm5, %v10095_v47 }
 0x3c0   : > { %7671 = vmatmul.mubr.f32.gmra.mrb[168].mxu0 %v12678_v32 }
 0x3c1   : > { %9341 = vmatmul.mubr.f32.vlgmr.msra.gmra.mrb[196].mxu1 %v12610_v41  ;;  %7675 = vmatprep.mubr.f32.mxu0 %v7027_v28  ;;  %v7842_v41 = vld [vmem:[#allocation3 + $0x2e] sm:$0xff] }
 0x3c2   : > { %9343 = vmatprep.mubr.msk.f32.mxu1 %vm10094_vm5, %v10095_v47  ;;  %v7854_v28 = vld [vmem:[#allocation3 + $0x8e] sm:$0xff] }
 0x3c4   : > { %7676 = vmatmul.mubr.f32.gmra.mrb[170].mxu0 %v12445_v57 }
 0x3c5   : > { %9344 = vmatmul.mubr.f32.gmra.mrb[198].mxu1 %v12617_v15  ;;  %8011 = vmatprep.mubr.f32.mxu0 %v7860_v49  ;;  %v7862_v15 = vld [vmem:[#allocation3 + $0x37] sm:$0xff] }
 0x3c6   : > { %9346 = vmatprep.mubr.msk.f32.mxu1 %vm10094_vm5, %v10095_v47  ;;  %v7896_v49 = vld [vmem:[#allocation3 + $0xb0] sm:$0xff] }
 0x3c8   : > { %8012 = vmatmul.mubr.f32.vlgmr.msra.gmra.mrb[172].mxu0 %v7841_v19  ;;  %v7874_v19 = vld [vmem:[#allocation3 + $0x97] sm:$0xff] }
 0x3c9   : > { %9347 = vmatmul.mubr.f32.gmra.mrb[200].mxu1 %v12626_v39  ;;  %8016 = vmatprep.mubr.f32.mxu0 %v7861_v51  ;;  %v7845_v39 = vld [vmem:[#allocation3 + $0x46] sm:$0xff] }
 0x3ca   : > { %9825 = vmatpush3.bf16.msra.mxu0 %v12555_v52  ;;  %9349 = vmatprep.mubr.msk.f32.mxu1 %vm10094_vm5, %v10095_v47  ;;  %v7863_v52 = vld [vmem:[#allocation3 + $0x3f] sm:$0xff] }
 0x3cb   : > { %9826 = vmatprep.subr.bf16.mxu0 %v13016_v20 }
 0x3cc   : > { %8017 = vmatmul.mubr.f32.gmra.mrb[174].mxu0 %v7842_v41 }
 0x3cd   : > { %9350 = vmatmul.mubr.f32.gmra.mrb[202].mxu1 %v12630_v27  ;;  %8021 = vmatprep.mubr.f32.mxu0 %v7862_v15 }
 0x3ce   : > { %9828 = vmatpush3.bf16.msra.mxu0 %v12561_v10  ;;  %9352 = vmatprep.mubr.msk.f32.mxu1 %vm10094_vm5, %v10095_v47  ;;  %v7864_v10 = vld [vmem:[#allocation3 + $0x47] sm:$0xff] }
 0x3cf   : > { %9829 = vmatprep.subr.bf16.mxu0 %v13016_v20 }
 0x3d0   : > { %8022 = vmatmul.mubr.f32.gmra.mrb[176].mxu0 %v7843_v45 }
 0x3d1   : > { %9353 = vmatmul.mubr.f32.gmra.mrb[204].mxu1 %v12639_v4  ;;  %8026 = vmatprep.mubr.f32.mxu0 %v7863_v52 }
 0x3d2   : > { %9355 = vmatprep.mubr.msk.f32.mxu1 %vm10094_vm5, %v10095_v47  ;;  %9831 = vmatpush3.bf16.msra.mxu0 %v12569_v29  ;;  %v7846_v29 = vld [vmem:[#allocation3 + $0x4e] sm:$0xff] }
 0x3d3   : > { %9832 = vmatprep.subr.bf16.mxu0 %v13016_v20 }
 0x3d4   : > { %8027 = vmatmul.mubr.f32.gmra.mrb[178].mxu0 %v7844_v55  ;;  %v7855_v55 = vld [vmem:[#allocation3 + $0x96] sm:$0xff] }
 0x3d5   : > { %9356 = vmatmul.mubr.f32.gmra.mrb[206].mxu1 %v12648_v0  ;;  %8031 = vmatprep.mubr.f32.mxu0 %v7864_v10  ;;  %v7897_v10 = vld [vmem:[#allocation3 + $0xb8] sm:$0xff] }
 0x3d6   : > { %9358 = vmatprep.mubr.msk.f32.mxu1 %vm10094_vm5, %v10095_v47  ;;  %9834 = vmatpush3.bf16.msra.mxu0 %v12579_v16  ;;  %v7847_v16 = vld [vmem:[#allocation3 + $0x56] sm:$0xff] }
 0x3d7   : > { %9835 = vmatprep.subr.bf16.mxu0 %v13016_v20 }
 0x3d8   : > { %8032 = vmatmul.mubr.f32.gmra.mrb[180].mxu0 %v7845_v39  ;;  %v7875_v39 = vld [vmem:[#allocation3 + $0x9f] sm:$0xff] }
 0x3d9   : > { %9359 = vmatmul.mubr.f32.gmra.mrb[208].mxu1 %v12654_v42  ;;  %8036 = vmatprep.mubr.f32.mxu0 %v7865_v34  ;;  %v7871_v42 = vld [vmem:[#allocation3 + $0x7f] sm:$0xff] }
 0x3da   : > { %9361 = vmatprep.mubr.msk.f32.mxu1 %vm10094_vm5, %v10095_v47  ;;  %9837 = vmatpush3.bf16.msra.mxu0 %v12589_v6 }
 0x3db   : > { %9838 = vmatprep.subr.bf16.mxu0 %v13016_v20 }
 0x3dc   : > { %8037 = vmatmul.mubr.f32.gmra.mrb[182].mxu0 %v7846_v29 }
 0x3dd   : > { %9362 = vmatmul.mubr.f32.gmra.mrb[210].mxu1 %v12660_v36  ;;  %8041 = vmatprep.mubr.f32.mxu0 %v7866_v40  ;;  %v7872_v36 = vld [vmem:[#allocation3 + $0x87] sm:$0xff] }
 0x3de   : > { %9364 = vmatprep.mubr.msk.f32.mxu1 %vm10094_vm5, %v10095_v47  ;;  %9840 = vmatpush3.bf16.msra.mxu0 %v12604_v13  ;;  %v7868_v13 = vld [vmem:[#allocation3 + $0x67] sm:$0xff] }
 0x3df   : > { %9841 = vmatprep.subr.bf16.mxu0 %v13016_v20 }
 0x3e0   : > { %8042 = vmatmul.mubr.f32.gmra.mrb[184].mxu0 %v7847_v16 }
 0x3e1   : > { %9365 = vmatmul.mubr.f32.gmra.mrb[212].mxu1 %v12666_v14  ;;  %8046 = vmatprep.mubr.f32.mxu0 %v7867_v9  ;;  %v7895_v14 = vld [vmem:[#allocation3 + $0xa8] sm:$0xff] }
 0x3e2   : > { %9367 = vmatprep.mubr.msk.f32.mxu1 %vm10094_vm5, %v10095_v47  ;;  %v7427_v6 = vpop.f32.mrb[120].mxu1  ;;  %9843 = vmatpush3.bf16.msra.mxu0 %v12620_v56 }
 0x3e3   : > { %v9158_v35 = vpop.f32.mrb[121].mxu1  ;;  %9844 = vmatprep.subr.bf16.mxu0 %v13016_v20 }
 0x3e4   : > { %8047 = vmatmul.mubr.f32.gmra.mrb[186].mxu0 %v7848_v43  ;;  %v7876_v43 = vld [vmem:[#allocation3 + $0xa7] sm:$0xff] }
 0x3e5   : > { %9368 = vmatmul.mubr.f32.gmra.mrb[214].mxu1 %v12672_v59  ;;  %v7267_v27 = vpop.f32.mrb[96].mxu0  ;;  %8051 = vmatprep.mubr.f32.mxu0 %v7868_v13 }
 0x3e6   : > { %9370 = vmatprep.mubr.msk.f32.mxu1 %vm10094_vm5, %v10095_v47  ;;  %v12726_v17 = vadd.f32 %v7427_v6, %v7267_v27  ;;  %v7269_v53 = vpop.f32.mrb[97].mxu0  ;;  %9846 = vmatpush3.bf16.msra.mxu0 %v12636_v23  ;;  %v7856_v6 = vld [vmem:[#allocation3 + $0x9e] sm:$0xff] }
 0x3e7   : > { %v7432_v56 = vpop.f32.mrb[122].mxu1  ;;  %v7857_v53 = vld [vmem:[#allocation3 + $0xa6] sm:$0xff] }
 0x3e8   : > { %8052 = vmatmul.mubr.f32.gmra.mrb[188].mxu0 %v7849_v46  ;;  %v9161_v4 = vpop.f32.mrb[123].mxu1 }
 0x3e9   : > { %9371 = vmatmul.mubr.f32.gmra.mrb[216].mxu1 %v12678_v32  ;;  %v7272_v20 = vpop.f32.mrb[98].mxu0  ;;  %8056 = vmatprep.mubr.f32.mxu0 %v7869_v61  ;;  %v7877_v61 = vld [vmem:[#allocation3 + $0xaf] sm:$0xff] }
 0x3ea   : > { %9373 = vmatprep.mubr.msk.f32.mxu1 %vm10094_vm5, %v10095_v47  ;;  %v12732_v8 = vadd.f32 %v7432_v56, %v7272_v20  ;;  %v7274_v30 = vpop.f32.mrb[99].mxu0 }
 0x3eb   : > { %v7437_v50 = vpop.f32.mrb[124].mxu1 }
 0x3ec   : > { %8057 = vmatmul.mubr.f32.gmra.mrb[190].mxu0 %v7850_v54  ;;  %v9164_v0 = vpop.f32.mrb[125].mxu1  ;;  %v7858_v54 = vld [vmem:[#allocation3 + $0xae] sm:$0xff] }
 0x3ed   : > { %9374 = vmatmul.mubr.f32.gmra.mrb[218].mxu1 %v12445_v57  ;;  %v7277_v23 = vpop.f32.mrb[100].mxu0  ;;  %8061 = vmatprep.mubr.f32.mxu0 %v7870_v25 }
 0x3ee   : > { %9376 = vmatprep.mubr.msk.f32.mxu1 %vm10094_vm5, %v10095_v47  ;;  %v12737_v24 = vadd.f32 %v7437_v50, %v7277_v23  ;;  %v7279_v22 = vpop.f32.mrb[101].mxu0  ;;  %v7878_v23 = vld [vmem:[#allocation3 + $0xb7] sm:$0xff] }
 0x3ef   : > { %v7442_v48 = vpop.f32.mrb[126].mxu1 }
 0x3f0   : > { %8062 = vmatmul.mubr.f32.gmra.mrb[192].mxu0 %v7851_v3  ;;  %v9167_v11 = vpop.f32.mrb[127].mxu1 }
 0x3f1   : > { %9377 = vmatmul.mubr.f32.gmra.mrb[220].mxu1 %v7893_v60  ;;  %8066 = vmatprep.mubr.f32.mxu0 %v7871_v42  ;;  %v7282_v57 = vpop.f32.mrb[102].mxu0  ;;  %v7859_v60 = vld [vmem:[#allocation3 + $0xb6] sm:$0xff] }
 0x3f2   : > { %9379 = vmatprep.mubr.msk.f32.mxu1 %vm10094_vm5, %v10095_v47  ;;  %v12741_v62 = vadd.f32 %v7442_v48, %v7282_v57  ;;  %v7284_v38 = vpop.f32.mrb[103].mxu0 }
 0x3f4   : > { %8067 = vmatmul.mubr.f32.gmra.mrb[194].mxu0 %v7852_v12  ;;  %v7447_v2 = vpop.f32.mrb[128].mxu1 }
 0x3f5   : > { %9380 = vmatmul.mubr.f32.gmra.mrb[222].mxu1 %v7894_v21  ;;  %8071 = vmatprep.mubr.f32.mxu0 %v7872_v36  ;;  %v7287_v33 = vpop.f32.mrb[104].mxu0  ;;  %v9170_v44 = vpop.f32.mrb[129].mxu1 }
 0x3f6   : > { %9382 = vmatprep.mubr.msk.f32.mxu1 %vm10094_vm5, %v10095_v47  ;;  %v12745_v63 = vadd.f32 %v7447_v2, %v7287_v33  ;;  %v7289_v18 = vpop.f32.mrb[105].mxu0 }
 0x3f8   : > { %8072 = vmatmul.mubr.f32.gmra.mrb[196].mxu0 %v7853_v37  ;;  %v7452_v26 = vpop.f32.mrb[130].mxu1 }
 0x3f9   : > { %9383 = vmatmul.mubr.f32.gmra.mrb[224].mxu1 %v7895_v14  ;;  %8076 = vmatprep.mubr.f32.mxu0 %v7873_v5  ;;  %v7292_v59 = vpop.f32.mrb[106].mxu0  ;;  %v9173_v58 = vpop.f32.mrb[131].mxu1 }
 0x3fa   : > { %9385 = vmatprep.mubr.msk.f32.mxu1 %vm10094_vm5, %v10095_v47  ;;  %v12749_v7 = vadd.f32 %v7452_v26, %v7292_v59  ;;  %v7294_v32 = vpop.f32.mrb[107].mxu0 }
 0x3fc   : > { %8077 = vmatmul.mubr.f32.gmra.mrb[198].mxu0 %v7854_v28  ;;  %v7457_v51 = vpop.f32.mrb[132].mxu1 }
 0x3fd   : > { %9386 = vmatmul.mubr.f32.gmra.mrb[226].mxu1 %v7896_v49  ;;  %8081 = vmatprep.mubr.f32.mxu0 %v7874_v19  ;;  %v7297_v41 = vpop.f32.mrb[108].mxu0  ;;  %v9176_v15 = vpop.f32.mrb[133].mxu1 }
 0x3fe   : > { %9388 = vmatprep.mubr.msk.f32.mxu1 %vm10094_vm5, %v10095_v47  ;;  %v12753_v45 = vadd.f32 %v7457_v51, %v7297_v41  ;;  %v7299_v52 = vpop.f32.mrb[109].mxu0 }
 0x400   : > { %8082 = vmatmul.mubr.f32.gmra.mrb[200].mxu0 %v7855_v55  ;;  %v7462_v34 = vpop.f32.mrb[134].mxu1 }
 0x401   : > { %9389 = vmatmul.mubr.f32.gmra.mrb[228].mxu1 %v7897_v10  ;;  %8086 = vmatprep.mubr.f32.mxu0 %v7875_v39  ;;  %v7302_v29 = vpop.f32.mrb[110].mxu0  ;;  %v9179_v40 = vpop.f32.mrb[135].mxu1 }
 0x402   : > { %v12755_v16 = vadd.f32 %v7462_v34, %v7302_v29  ;;  %v7304_v9 = vpop.f32.mrb[111].mxu0 }
 0x404   : > { %8087 = vmatmul.mubr.f32.gmra.mrb[202].mxu0 %v7856_v6  ;;  %v7467_v35 = vpop.f32.mrb[136].mxu1 }
 0x405   : > { %8091 = vmatprep.mubr.f32.mxu0 %v7876_v43  ;;  %v9182_v13 = vpop.f32.mrb[137].mxu1 }
 0x406   : > { %v7307_v27 = vpop.f32.mrb[112].mxu0 }
 0x407   : > { %v12757_v46 = vadd.f32 %v7467_v35, %v7307_v27  ;;  %v7309_v56 = vpop.f32.mrb[113].mxu0 }
 0x408   : > { %8092 = vmatmul.mubr.f32.gmra.mrb[204].mxu0 %v7857_v53 }
 0x409   : > { %8096 = vmatprep.mubr.f32.mxu0 %v7877_v61  ;;  %v7472_v20 = vpop.f32.mrb[138].mxu1 }
 0x40a   : > { %v7312_v4 = vpop.f32.mrb[114].mxu0  ;;  %v9185_v30 = vpop.f32.mrb[139].mxu1 }
 0x40b   : > { %v12759_v50 = vadd.f32 %v7472_v20, %v7312_v4  ;;  %v7314_v25 = vpop.f32.mrb[115].mxu0 }
 0x40c   : > { %8097 = vmatmul.mubr.f32.gmra.mrb[206].mxu0 %v7858_v54 }
 0x40d   : > { %8101 = vmatprep.mubr.f32.mxu0 %v7878_v23  ;;  %v7477_v0 = vpop.f32.mrb[140].mxu1 }
 0x40e   : > { %v7317_v22 = vpop.f32.mrb[116].mxu0  ;;  %v9188_v3 = vpop.f32.mrb[141].mxu1 }
 0x40f   : > { %v12761_v48 = vadd.f32 %v7477_v0, %v7317_v22  ;;  %v7319_v42 = vpop.f32.mrb[117].mxu0 }
 0x410   : > { %8102 = vmatmul.mubr.f32.gmra.mrb[208].mxu0 %v7859_v60 }
 0x411   : > { %9334 = vmatprep.mubr.msk.f32.mxu0 %vm10094_vm5, %v10095_v47  ;;  %v7482_v11 = vpop.f32.mrb[142].mxu1 }
 0x412   : > { %v7322_v57 = vpop.f32.mrb[118].mxu0  ;;  %v9191_v38 = vpop.f32.mrb[143].mxu1 }
 0x413   : > { %v12765_v12 = vadd.f32 %v7482_v11, %v7322_v57  ;;  %v7324_v21 = vpop.f32.mrb[119].mxu0 }
 0x414   : > { %9335 = vmatmul.mubr.f32.vlgmr.msra.gmra.mrb[210].mxu0 %v12594_v1 }
 0x415   : > { %9337 = vmatprep.mubr.msk.f32.mxu0 %vm10094_vm5, %v10095_v47  ;;  %v7487_v36 = vpop.f32.mrb[144].mxu1 }
 0x416   : > { %v7327_v2 = vpop.f32.mrb[120].mxu0  ;;  %v9194_v33 = vpop.f32.mrb[145].mxu1 }
 0x417   : > { %v12770_v44 = vadd.f32 %v7487_v36, %v7327_v2  ;;  %v7329_v18 = vpop.f32.mrb[121].mxu0 }
 0x418   : > { %9338 = vmatmul.mubr.f32.gmra.mrb[212].mxu0 %v12601_v31 }
 0x419   : > { %v7492_v37 = vpop.f32.mrb[146].mxu1 }
 0x41a   : > { %v9197_v14 = vpop.f32.mrb[147].mxu1 }
 0x41e   : > { %v7332_v5 = vpop.f32.mrb[122].mxu0 }
 0x41f   : > { %v12773_v26 = vadd.f32 %v7492_v37, %v7332_v5  ;;  %v7334_v59 = vpop.f32.mrb[123].mxu0 }
 0x427   : > { %v7497_v58 = vpop.f32.mrb[148].mxu1 }
 0x428   : > { %v9200_v32 = vpop.f32.mrb[149].mxu1 }
 0x42a   : > { %v7337_v1 = vpop.f32.mrb[124].mxu0 }
 0x42b   : > { %v12775_v28 = vadd.f32 %v7497_v58, %v7337_v1  ;;  %v7339_v47 = vpop.f32.mrb[125].mxu0 }
 0x432   : > { %v7502_v49 = vpop.f32.mrb[150].mxu1 }
 0x433   : > { %v7342_v19 = vpop.f32.mrb[126].mxu0  ;;  %v9203_v51 = vpop.f32.mrb[151].mxu1 }
 0x434   : > { %v12777_v41 = vadd.f32 %v7502_v49, %v7342_v19  ;;  %v7344_v15 = vpop.f32.mrb[127].mxu0 }
 0x437   : > { %v7507_v52 = vpop.f32.mrb[152].mxu1 }
 0x438   : > { %v9206_v31 = vpop.f32.mrb[153].mxu1 }
 0x43a   : > { %v7347_v55 = vpop.f32.mrb[128].mxu0 }
 0x43b   : > { %v12779_v10 = vadd.f32 %v7507_v52, %v7347_v55  ;;  %v7349_v39 = vpop.f32.mrb[129].mxu0 }
 0x43c   : > { %v7512_v34 = vpop.f32.mrb[154].mxu1 }
 0x43d   : > { %v9209_v29 = vpop.f32.mrb[155].mxu1 }
 0x43e   : > { %v7352_v40 = vpop.f32.mrb[130].mxu0 }
 0x43f   : > { %v12781_v9 = vadd.f32 %v7512_v34, %v7352_v40  ;;  %v7354_v6 = vpop.f32.mrb[131].mxu0 }
 0x444   : > { %v7517_v43 = vpop.f32.mrb[156].mxu1 }
 0x445   : > { %v9212_v35 = vpop.f32.mrb[157].mxu1 }
 0x446   : > { %v7357_v13 = vpop.f32.mrb[132].mxu0 }
 0x447   : > { %v12783_v27 = vadd.f32 %v7517_v43, %v7357_v13  ;;  %v7359_v53 = vpop.f32.mrb[133].mxu0 }
 0x448   : > { %v7747_v56 = vpop.f32.mrb[158].mxu1 }
 0x449   : > { %v9247_v61 = vpop.f32.mrb[159].mxu1 }
 0x44c   : > { %v7752_v20 = vpop.f32.mrb[160].mxu1 }
 0x44d   : > { %v9250_v4 = vpop.f32.mrb[161].mxu1 }
 0x44f   : > { %v7587_v30 = vpop.f32.mrb[134].mxu0 }
 0x450   : > { %v7757_v54 = vpop.f32.mrb[162].mxu1  ;;  %v7588_v25 = vadd.f32 %v7587_v30, %v12726_v17  ;;  %v7589_v23 = vpop.f32.mrb[135].mxu0 }
 0x451   : > { %v9253_v0 = vpop.f32.mrb[163].mxu1 }
 0x452   : > { %v12786_v22 = vadd.f32 %v7747_v56, %v7588_v25 }
 0x453   : > { %v7592_v3 = vpop.f32.mrb[136].mxu0 }
 0x454   : > { %v7762_v60 = vpop.f32.mrb[164].mxu1  ;;  %v7593_v42 = vadd.f32 %v7592_v3, %v12732_v8  ;;  %v7594_v11 = vpop.f32.mrb[137].mxu0 }
 0x455   : > { %v9256_v57 = vpop.f32.mrb[165].mxu1 }
 0x456   : > { %v12789_v38 = vadd.f32 %v7752_v20, %v7593_v42 }
 0x457   : > { %v7597_v21 = vpop.f32.mrb[138].mxu0 }
 0x458   : > { %v7767_v36 = vpop.f32.mrb[166].mxu1  ;;  %v7598_v2 = vadd.f32 %v7597_v21, %v12737_v24  ;;  %v7599_v33 = vpop.f32.mrb[139].mxu0 }
 0x459   : > { %v9259_v18 = vpop.f32.mrb[167].mxu1 }
 0x45a   : > { %v12792_v37 = vadd.f32 %v7757_v54, %v7598_v2 }
 0x45b   : > { %v7602_v17 = vpop.f32.mrb[140].mxu0 }
 0x45c   : > { %v7772_v14 = vpop.f32.mrb[168].mxu1  ;;  %v7603_v5 = vadd.f32 %v7602_v17, %v12741_v62  ;;  %v7604_v59 = vpop.f32.mrb[141].mxu0 }
 0x45d   : > { %v9262_v58 = vpop.f32.mrb[169].mxu1 }
 0x45e   : > { %v12795_v32 = vadd.f32 %v7762_v60, %v7603_v5 }
 0x45f   : > { %v7607_v8 = vpop.f32.mrb[142].mxu0 }
 0x460   : > { %v7777_v1 = vpop.f32.mrb[170].mxu1  ;;  %v7608_v47 = vadd.f32 %v7607_v8, %v12745_v63  ;;  %v7609_v49 = vpop.f32.mrb[143].mxu0 }
 0x461   : > { %v9265_v19 = vpop.f32.mrb[171].mxu1 }
 0x462   : > { %v12798_v51 = vadd.f32 %v7767_v36, %v7608_v47 }
 0x463   : > { %v7612_v24 = vpop.f32.mrb[144].mxu0 }
 0x464   : > { %v7782_v15 = vpop.f32.mrb[172].mxu1  ;;  %v7613_v52 = vadd.f32 %v7612_v24, %v12749_v7  ;;  %v7614_v31 = vpop.f32.mrb[145].mxu0 }
 0x465   : > { %v9268_v55 = vpop.f32.mrb[173].mxu1 }
 0x466   : > { %v12801_v39 = vadd.f32 %v7772_v14, %v7613_v52 }
 0x467   : > { %v7617_v62 = vpop.f32.mrb[146].mxu0 }
 0x468   : > { %v7787_v34 = vpop.f32.mrb[174].mxu1  ;;  %v7618_v29 = vadd.f32 %v7617_v62, %v12753_v45  ;;  %v7619_v40 = vpop.f32.mrb[147].mxu0 }
 0x469   : > { %v9271_v6 = vpop.f32.mrb[175].mxu1 }
 0x46a   : > { %v12804_v43 = vadd.f32 %v7777_v1, %v7618_v29 }
 0x46b   : > { %v7622_v63 = vpop.f32.mrb[148].mxu0 }
 0x46c   : > { %v7792_v35 = vpop.f32.mrb[176].mxu1  ;;  %v7623_v13 = vadd.f32 %v7622_v63, %v12755_v16  ;;  %v7624_v53 = vpop.f32.mrb[149].mxu0 }
 0x46d   : > { %v9274_v56 = vpop.f32.mrb[177].mxu1 }
 0x46e   : > { %v12807_v61 = vadd.f32 %v7782_v15, %v7623_v13 }
 0x46f   : > { %v7627_v7 = vpop.f32.mrb[150].mxu0 }
 0x470   : > { %v7797_v20 = vpop.f32.mrb[178].mxu1  ;;  %v7628_v4 = vadd.f32 %v7627_v7, %v12757_v46  ;;  %v7629_v30 = vpop.f32.mrb[151].mxu0 }
 0x471   : > { %v9277_v54 = vpop.f32.mrb[179].mxu1 }
 0x472   : > { %v12810_v25 = vadd.f32 %v7787_v34, %v7628_v4 }
 0x473   : > { %v7632_v45 = vpop.f32.mrb[152].mxu0 }
 0x474   : > { %v7802_v23 = vpop.f32.mrb[180].mxu1  ;;  %v7633_v0 = vadd.f32 %v7632_v45, %v12759_v50  ;;  %v7634_v3 = vpop.f32.mrb[153].mxu0 }
 0x475   : > { %v9280_v60 = vpop.f32.mrb[181].mxu1 }
 0x476   : > { %v12813_v42 = vadd.f32 %v7792_v35, %v7633_v0 }
 0x477   : > { %v7637_v16 = vpop.f32.mrb[154].mxu0 }
 0x478   : > { %v7807_v11 = vpop.f32.mrb[182].mxu1  ;;  %v7638_v57 = vadd.f32 %v7637_v16, %v12761_v48  ;;  %v7639_v21 = vpop.f32.mrb[155].mxu0 }
 0x479   : > { %v9283_v36 = vpop.f32.mrb[183].mxu1 }
 0x47a   : > { %v12816_v2 = vadd.f32 %v7797_v20, %v7638_v57 }
 0x47b   : > { %v7642_v46 = vpop.f32.mrb[156].mxu0 }
 0x47c   : > { %v7812_v33 = vpop.f32.mrb[184].mxu1  ;;  %v7643_v18 = vadd.f32 %v7642_v46, %v12765_v12  ;;  %v7644_v17 = vpop.f32.mrb[157].mxu0 }
 0x47d   : > { %v9286_v14 = vpop.f32.mrb[185].mxu1 }
 0x47e   : > { %v12819_v5 = vadd.f32 %v7802_v23, %v7643_v18 }
 0x47f   : > { %v7647_v50 = vpop.f32.mrb[158].mxu0 }
 0x480   : > { %v7817_v59 = vpop.f32.mrb[186].mxu1  ;;  %v7648_v58 = vadd.f32 %v7647_v50, %v12770_v44  ;;  %v7649_v8 = vpop.f32.mrb[159].mxu0 }
 0x481   : > { %v9289_v1 = vpop.f32.mrb[187].mxu1  ;;  %v12849_v8 = vld [vmem:[%s12978_s4] ss:$0 sm:$0xff] }
 0x482   : > { %v12822_v47 = vadd.f32 %v7807_v11, %v7648_v58 }
 0x483   : > { %v7652_v48 = vpop.f32.mrb[160].mxu0 }
 0x484   : > { %v7822_v49 = vpop.f32.mrb[188].mxu1  ;;  %v7653_v19 = vadd.f32 %v7652_v48, %v12773_v26  ;;  %v7654_v24 = vpop.f32.mrb[161].mxu0 }
 0x485   : > { %v9292_v15 = vpop.f32.mrb[189].mxu1 }
 0x486   : > { %v12825_v52 = vadd.f32 %v7812_v33, %v7653_v19 }
 0x487   : > { %v7657_v12 = vpop.f32.mrb[162].mxu0 }
 0x488   : > { %v7827_v31 = vpop.f32.mrb[190].mxu1  ;;  %v7658_v55 = vadd.f32 %v7657_v12, %v12775_v28  ;;  %v7659_v62 = vpop.f32.mrb[163].mxu0 }
 0x489   : > { %v9295_v34 = vpop.f32.mrb[191].mxu1 }
 0x48a   : > { %v12828_v29 = vadd.f32 %v7817_v59, %v7658_v55 }
 0x48b   : > { %v7662_v44 = vpop.f32.mrb[164].mxu0 }
 0x48c   : > { %v7832_v40 = vpop.f32.mrb[192].mxu1  ;;  %v7663_v6 = vadd.f32 %v7662_v44, %v12777_v41  ;;  %v7664_v63 = vpop.f32.mrb[165].mxu0 }
 0x48d   : > { %v9298_v35 = vpop.f32.mrb[193].mxu1 }
 0x48e   : > { %v12831_v13 = vadd.f32 %v7822_v49, %v7663_v6 }
 0x48f   : > { %v7667_v26 = vpop.f32.mrb[166].mxu0 }
 0x490   : > { %v7837_v53 = vpop.f32.mrb[194].mxu1  ;;  %v7668_v56 = vadd.f32 %v7667_v26, %v12779_v10  ;;  %v7669_v7 = vpop.f32.mrb[167].mxu0 }
 0x491   : > { %v9301_v20 = vpop.f32.mrb[195].mxu1 }
 0x492   : > { %v12834_v4 = vadd.f32 %v7827_v31, %v7668_v56 }
 0x493   : > { %v7672_v28 = vpop.f32.mrb[168].mxu0 }
 0x494   : > { %v8183_v30 = vpop.f32.mrb[196].mxu1  ;;  %v7673_v54 = vadd.f32 %v7672_v28, %v12781_v9  ;;  %v7674_v45 = vpop.f32.mrb[169].mxu0 }
 0x495   : > { %v9342_v23 = vpop.f32.mrb[197].mxu1 }
 0x496   : > { %v12837_v0 = vadd.f32 %v7832_v40, %v7673_v54 }
 0x497   : > { %v7677_v41 = vpop.f32.mrb[170].mxu0 }
 0x498   : > { %v8188_v3 = vpop.f32.mrb[198].mxu1  ;;  %v7678_v60 = vadd.f32 %v7677_v41, %v12783_v27  ;;  %v7679_v16 = vpop.f32.mrb[171].mxu0 }
 0x499   : > { %v9345_v11 = vpop.f32.mrb[199].mxu1 }
 0x49a   : > { %v12840_v57 = vadd.f32 %v7837_v53, %v7678_v60 }
 0x49b   : > { %v12842_v10 = vpop.f32.mrb[172].mxu0 }
 0x49c   : > { %v8193_v21 = vpop.f32.mrb[200].mxu1  ;;  %v8015_v36 = vpop.f32.mrb[173].mxu0 }
 0x49d   : > { %v9348_v46 = vpop.f32.mrb[201].mxu1 }
 0x49f   : > { %v12844_v33 = vpop.f32.mrb[174].mxu0 }
 0x4a0   : > { %v8198_v9 = vpop.f32.mrb[202].mxu1  ;;  %v8020_v18 = vpop.f32.mrb[175].mxu0 }
 0x4a1   : > { %v9351_v17 = vpop.f32.mrb[203].mxu1 }
 0x4a3   : > { %v8023_v14 = vpop.f32.mrb[176].mxu0 }
 0x4a4   : > { %v8203_v50 = vpop.f32.mrb[204].mxu1  ;;  %v8184_v59 = vadd.f32 %v8183_v30, %v8023_v14  ;;  %v8025_v58 = vpop.f32.mrb[177].mxu0 }
 0x4a5   : > { %v9354_v27 = vpop.f32.mrb[205].mxu1 }
 0x4a6   : > { %v8269_v1 = vadd.f32 %v8184_v59, %v12792_v37 }
 0x4a7   : > { %v8028_v48 = vpop.f32.mrb[178].mxu0 }
 0x4a8   : > { %v8208_v49 = vpop.f32.mrb[206].mxu1  ;;  %v8295_v19 = vadd.f32 %v12849_v8, %v8269_v1  ;;  %v8189_v24 = vadd.f32 %v8188_v3, %v8028_v48  ;;  %v8030_v15 = vpop.f32.mrb[179].mxu0 }
 0x4a9   : > { %v9357_v12 = vpop.f32.mrb[207].mxu1 }
 0x4aa   : > { %v8314_v31 = vmax.f32 %v8295_v19, 0.0  ;;  %v8270_v55 = vadd.f32 %v8189_v24, %v12795_v32 }
 0x4ab   : > { %v8033_v62 = vpop.f32.mrb[180].mxu0 }
 0x4ac   : > { %v8213_v34 = vpop.f32.mrb[208].mxu1  ;;  %8333 = vst [vmem:[%s10241_s10 + $0x10] sm:$0xff] %v8314_v31  ;;  %v8296_v44 = vadd.f32 %v12849_v8, %v8270_v55  ;;  %v8194_v40 = vadd.f32 %v8193_v21, %v8033_v62  ;;  %v8035_v6 = vpop.f32.mrb[181].mxu0 }
 0x4ad   : > { %v9360_v37 = vpop.f32.mrb[209].mxu1 }
 0x4ae   : > { %v8315_v63 = vmax.f32 %v8296_v44, 0.0  ;;  %v8271_v35 = vadd.f32 %v8194_v40, %v12798_v51 }
 0x4af   : > { %v8038_v26 = vpop.f32.mrb[182].mxu0 }
 0x4b0   : > { %v8218_v53 = vpop.f32.mrb[210].mxu1  ;;  %8334 = vst [vmem:[%s10241_s10 + $0x18] sm:$0xff] %v8315_v63  ;;  %v8297_v56 = vadd.f32 %v12849_v8, %v8271_v35  ;;  %v8199_v7 = vadd.f32 %v8198_v9, %v8038_v26  ;;  %v8040_v32 = vpop.f32.mrb[183].mxu0 }
 0x4b1   : > { %v9363_v20 = vpop.f32.mrb[211].mxu1 }
 0x4b2   : > { %v8316_v28 = vmax.f32 %v8297_v56, 0.0  ;;  %v8272_v30 = vadd.f32 %v8199_v7, %v12801_v39 }
 0x4b3   : > { %v8043_v54 = vpop.f32.mrb[184].mxu0 }
 0x4b4   : > { %v8223_v45 = vpop.f32.mrb[212].mxu1  ;;  %8335 = vst [vmem:[%s10241_s10 + $0x20] sm:$0xff] %v8316_v28  ;;  %v8298_v23 = vadd.f32 %v12849_v8, %v8272_v30  ;;  %v8204_v41 = vadd.f32 %v8203_v50, %v8043_v54  ;;  %v8045_v51 = vpop.f32.mrb[185].mxu0 }
 0x4b5   : > { %v9366_v3 = vpop.f32.mrb[213].mxu1 }
 0x4b6   : > { %v8317_v60 = vmax.f32 %v8298_v23, 0.0  ;;  %v8273_v16 = vadd.f32 %v8204_v41, %v12804_v43 }
 0x4b7   : > { %v8048_v11 = vpop.f32.mrb[186].mxu0 }
 0x4b8   : > { %v8228_v21 = vpop.f32.mrb[214].mxu1  ;;  %8336 = vst [vmem:[%s10241_s10 + $0x28] sm:$0xff] %v8317_v60  ;;  %v8299_v36 = vadd.f32 %v12849_v8, %v8273_v16  ;;  %v8209_v46 = vadd.f32 %v8208_v49, %v8048_v11  ;;  %v8050_v39 = vpop.f32.mrb[187].mxu0 }
 0x4b9   : > { %v9369_v9 = vpop.f32.mrb[215].mxu1 }
 0x4ba   : > { %v8318_v18 = vmax.f32 %v8299_v36, 0.0  ;;  %v8274_v17 = vadd.f32 %v8209_v46, %v12807_v61 }
 0x4bb   : > { %v8053_v14 = vpop.f32.mrb[188].mxu0 }
 0x4bc   : > { %v8233_v50 = vpop.f32.mrb[216].mxu1  ;;  %8337 = vst [vmem:[%s10241_s10 + $0x30] sm:$0xff] %v8318_v18  ;;  %v8300_v59 = vadd.f32 %v12849_v8, %v8274_v17  ;;  %v8214_v58 = vadd.f32 %v8213_v34, %v8053_v14  ;;  %v8055_v43 = vpop.f32.mrb[189].mxu0 }
 0x4bd   : > { %v9372_v27 = vpop.f32.mrb[217].mxu1 }
 0x4be   : > { %v8319_v1 = vmax.f32 %v8300_v59, 0.0  ;;  %v8275_v48 = vadd.f32 %v8214_v58, %v12810_v25 }
 0x4bf   : > { %v8058_v19 = vpop.f32.mrb[190].mxu0 }
 0x4c0   : > { %v8238_v49 = vpop.f32.mrb[218].mxu1  ;;  %8338 = vst [vmem:[%s10241_s10 + $0x38] sm:$0xff] %v8319_v1  ;;  %v8301_v24 = vadd.f32 %v12849_v8, %v8275_v48  ;;  %v8219_v15 = vadd.f32 %v8218_v53, %v8058_v19  ;;  %v8060_v61 = vpop.f32.mrb[191].mxu0 }
 0x4c1   : > { %v9375_v12 = vpop.f32.mrb[219].mxu1 }
 0x4c2   : > { %v8320_v31 = vmax.f32 %v8301_v24, 0.0  ;;  %v8276_v55 = vadd.f32 %v8219_v15, %v12813_v42 }
 0x4c3   : > { %v8063_v62 = vpop.f32.mrb[192].mxu0 }
 0x4c4   : > { %v8243_v34 = vpop.f32.mrb[220].mxu1  ;;  %8339 = vst [vmem:[%s10241_s10 + $0x40] sm:$0xff] %v8320_v31  ;;  %v8302_v44 = vadd.f32 %v12849_v8, %v8276_v55  ;;  %v8224_v40 = vadd.f32 %v8223_v45, %v8063_v62  ;;  %v8065_v25 = vpop.f32.mrb[193].mxu0 }
 0x4c5   : > { %v9378_v6 = vpop.f32.mrb[221].mxu1 }
 0x4c6   : > { %v8321_v37 = vmax.f32 %v8302_v44, 0.0  ;;  %v8277_v63 = vadd.f32 %v8224_v40, %v12816_v2 }
 0x4c7   : > { %v8068_v35 = vpop.f32.mrb[194].mxu0 }
 0x4c8   : > { %v8248_v26 = vpop.f32.mrb[222].mxu1  ;;  %8340 = vst [vmem:[%s10241_s10 + $0x48] sm:$0xff] %v8321_v37  ;;  %v8303_v53 = vadd.f32 %v12849_v8, %v8277_v63  ;;  %v8229_v56 = vadd.f32 %v8228_v21, %v8068_v35  ;;  %v8070_v42 = vpop.f32.mrb[195].mxu0 }
 0x4c9   : > { %v9381_v7 = vpop.f32.mrb[223].mxu1 }
 0x4ca   : > { %v8322_v32 = vmax.f32 %v8303_v53, 0.0  ;;  %v8278_v20 = vadd.f32 %v8229_v56, %v12819_v5 }
 0x4cb   : > { %v8073_v28 = vpop.f32.mrb[196].mxu0 }
 0x4cc   : > { %v8253_v30 = vpop.f32.mrb[224].mxu1  ;;  %8341 = vst [vmem:[%s10241_s10 + $0x50] sm:$0xff] %v8322_v32  ;;  %v8304_v54 = vadd.f32 %v12849_v8, %v8278_v20  ;;  %v8234_v45 = vadd.f32 %v8233_v50, %v8073_v28  ;;  %v8075_v2 = vpop.f32.mrb[197].mxu0 }
 0x4cd   : > { %v9384_v23 = vpop.f32.mrb[225].mxu1 }
 0x4ce   : > { %v8323_v41 = vmax.f32 %v8304_v54, 0.0  ;;  %v8279_v51 = vadd.f32 %v8234_v45, %v12822_v47 }
 0x4cf   : > { %v8078_v3 = vpop.f32.mrb[198].mxu0 }
 0x4d0   : > { %v8258_v60 = vpop.f32.mrb[226].mxu1  ;;  %8342 = vst [vmem:[%s10241_s10 + $0x58] sm:$0xff] %v8323_v41  ;;  %v8305_v16 = vadd.f32 %v12849_v8, %v8279_v51  ;;  %v8239_v11 = vadd.f32 %v8238_v49, %v8078_v3  ;;  %v8080_v5 = vpop.f32.mrb[199].mxu0 }
 0x4d1   : > { %v9387_v21 = vpop.f32.mrb[227].mxu1 }
 0x4d2   : > { %v8324_v36 = vmax.f32 %v8305_v16, 0.0  ;;  %v8280_v46 = vadd.f32 %v8239_v11, %v12825_v52 }
 0x4d3   : > { %v8083_v39 = vpop.f32.mrb[200].mxu0 }
 0x4d4   : > { %v8263_v9 = vpop.f32.mrb[228].mxu1  ;;  %8343 = vst [vmem:[%s10241_s10 + $0x60] sm:$0xff] %v8324_v36  ;;  %v8306_v18 = vadd.f32 %v12849_v8, %v8280_v46  ;;  %v8244_v17 = vadd.f32 %v8243_v34, %v8083_v39  ;;  %v8085_v47 = vpop.f32.mrb[201].mxu0 }
 0x4d5   : > { %v9390_v14 = vpop.f32.mrb[229].mxu1 }
 0x4d6   : > { %v8325_v50 = vmax.f32 %v8306_v18, 0.0  ;;  %v8281_v59 = vadd.f32 %v8244_v17, %v12828_v29 }
 0x4d7   : > { %v8088_v58 = vpop.f32.mrb[202].mxu0 }
 0x4d8   : > { %8344 = vst [vmem:[%s10241_s10 + $0x68] sm:$0xff] %v8325_v50  ;;  %v8307_v43 = vadd.f32 %v12849_v8, %v8281_v59  ;;  %v8249_v27 = vadd.f32 %v8248_v26, %v8088_v58  ;;  %v8090_v1 = vpop.f32.mrb[203].mxu0 }
 0x4da   : > { %v8326_v52 = vmax.f32 %v8307_v43, 0.0  ;;  %v8282_v48 = vadd.f32 %v8249_v27, %v12831_v13 }
 0x4db   : > { %v8093_v19 = vpop.f32.mrb[204].mxu0 }
 0x4dc   : > { %8345 = vst [vmem:[%s10241_s10 + $0x70] sm:$0xff] %v8326_v52  ;;  %v8308_v49 = vadd.f32 %v12849_v8, %v8282_v48  ;;  %v8254_v24 = vadd.f32 %v8253_v30, %v8093_v19  ;;  %v8095_v15 = vpop.f32.mrb[205].mxu0 }
 0x4de   : > { %v8327_v61 = vmax.f32 %v8308_v49, 0.0  ;;  %v8283_v29 = vadd.f32 %v8254_v24, %v12834_v4 }
 0x4df   : > { %v8098_v12 = vpop.f32.mrb[206].mxu0 }
 0x4e0   : > { %8346 = vst [vmem:[%s10241_s10 + $0x78] sm:$0xff] %v8327_v61  ;;  %v8309_v31 = vadd.f32 %v12849_v8, %v8283_v29  ;;  %v8259_v55 = vadd.f32 %v8258_v60, %v8098_v12  ;;  %v8100_v62 = vpop.f32.mrb[207].mxu0 }
 0x4e2   : > { %v8328_v13 = vmax.f32 %v8309_v31, 0.0  ;;  %v8284_v34 = vadd.f32 %v8259_v55, %v12837_v0 }
 0x4e3   : > { %v8103_v44 = vpop.f32.mrb[208].mxu0 }
 0x4e4   : > { %8347 = vst [vmem:[%s10241_s10 + $0x80] sm:$0xff] %v8328_v13  ;;  %v8310_v40 = vadd.f32 %v12849_v8, %v8284_v34  ;;  %v8264_v25 = vadd.f32 %v8263_v9, %v8103_v44  ;;  %v8105_v6 = vpop.f32.mrb[209].mxu0 }
 0x4e6   : > { %v8329_v4 = vmax.f32 %v8310_v40, 0.0  ;;  %v8285_v37 = vadd.f32 %v8264_v25, %v12840_v57 }
 0x4e7   : > { %v8173_v63 = vpop.f32.mrb[210].mxu0 }
 0x4e8   : > { %8348 = vst [vmem:[%s10241_s10 + $0x88] sm:$0xff] %v8329_v4  ;;  %v8311_v35 = vadd.f32 %v12849_v8, %v8285_v37  ;;  %v8174_v26 = vadd.f32 %v8173_v63, %v12842_v10  ;;  %v9336_v0 = vpop.f32.mrb[211].mxu0 }
 0x4ea   : > { %v8330_v53 = vmax.f32 %v8311_v35, 0.0  ;;  %v8267_v56 = vadd.f32 %v8174_v26, %v12786_v22 }
 0x4eb   : > { %v8178_v42 = vpop.f32.mrb[212].mxu0 }
 0x4ec   : > { %8349 = vst [vmem:[%s10241_s10 + $0x90] sm:$0xff] %v8330_v53  ;;  %v8293_v57 = vadd.f32 %v12849_v8, %v8267_v56  ;;  %v8179_v7 = vadd.f32 %v8178_v42, %v12844_v33  ;;  %v9339_v32 = vpop.f32.mrb[213].mxu0 }
 0x4ee   : > { %v8312_v20 = vmax.f32 %v8293_v57, 0.0  ;;  %v8268_v28 = vadd.f32 %v8179_v7, %v12789_v38 }
 0x4f0   : > { %8331 = vst [vmem:[%s10241_s10] sm:$0xff] %v8312_v20  ;;  %v8294_v10 = vadd.f32 %v12849_v8, %v8268_v28 }
 0x4f2   : > { %v8313_v22 = vmax.f32 %v8294_v10, 0.0 }
 0x4f4   : > { %8332 = vst [vmem:[%s10241_s10 + $0x8] sm:$0xff] %v8313_v22 }
 0x4f5   : > { %9999 = shalt.err (!%p9996_p4)
}
 0x4f6   : > { %s10000_s10 = scalar_lea.hbm %s12917_s14, 2432  ;;  %s10004_s9 = scalar_lea.hbm %s12979_s5, 9728 }
 0x4f7   : > { %p10001_p3 = scmp.ne.s32.totalorder %s12917_s14, %s10000_s10  ;;  %p10005_p12 = scmp.lt.u32.totalorder %s12917_s14, %s12979_s5 }
 0x4f8   : > { %p10006_p0 = scmp.lt.u32.totalorder %s10004_s9, %s10000_s10  ;;  %p10008_p5 = scmp.lt.u32.totalorder %s10000_s10, %s12917_s14 }
 0x4f9   : > { %p10002_p8 = pnand %p10001_p3, %p13039_p6 }
 0x4fa   : > { %p10007_p2 = por %p10006_p0, %p10005_p12 }
 0x4fb   : > { %p10003_p10 = pneg %p10002_p8 }
 0x4fc   : > { %p10009_p7 = por %p10008_p5, %p10007_p2 }
 0x4fe   : > { %p10010_p9 = pnand %p10009_p7, %p10003_p10 }
 0x500   : > { %10013 = shalt.err (!%p10010_p9)
}
 0x501   : > { %s10097_s12 = smov 128   ;;  %s10098_s6 = smov 8  }
 0x502   : > { %9869 = dma.vmem_to_hbm [thread:$0]  (%p13039_p6), %s12912_s16, 2432, %s12917_s14, %s12922_s17, %s10097_s12, %s10097_s12, %s10098_s6  }
 0x503 PF: > { %p9881_p11 = scmp.ge.s32.totalorder %s10086_s25, 2  ;;  %s8381_s26 = sand.u32 1, %s10058_s18  }
 0x504   : > { %p13040_p13 = scmp.ne.s32.totalorder %s12988_s8, 0  ;;  %s8382_s30 = scalar_lea.sflag [#allocation7], %s8381_s26 }
 0x506   : > { %p9876_p1 = pnand %p9881_p11, %p13040_p13 }
 0x508   : > { %10053 = dma.done.wait (!%p9876_p1), %s8382_s30, 2432  }
 0x509   : > { %10055 = vsyncadd (!%p9876_p1), %s8382_s30, 4294964864  ;;  %s19_s25 = sadd.s32 1, %s10086_s25   ;;  %s13041_s18 = smov %s10062_s19 }
 0x50a   : > { %p16_p4 = scmp.ge.s32.totalorder %s19_s25, 6   ;;  %s13042_s19 = smov %s10066_s20 }
 0x50b   : > { %s13043_s20 = smov %s10208_s13  ;;  %s13044_s21 = smov %s10078_s23 }
 0x50c   : > { %s13045_s22 = smov %s10082_s24  ;;  %s13046_s23 = smov %s13049_s28 }
 0x50d   : > { %s13047_s24 = smov %s13053_s29  ;;  %18 = sbr.rel (!%p16_p4) target bundleno = 6 (0x6), region = 194 }
 0x514   :  { %8387 = vsyncpa [#allocation6], 1 }
 0x515   :  { %8389 = vsyncpa [#allocation6 + $0x1], 1 }
 0x516   :  { %8390 = vsyncpa [#allocation7], 1 }
 0x517   :  { %8392 = vsyncpa [#allocation7 + $0x1], 1 }
 0x518   :  { %8393 = vsyncmov [#allocation4] }
 0x51b   :  { %s8394_s7 = vpop.sfrf %8393 }
 0x51c   :  { %p8693_p6 = scmp.ne.s32.totalorder %s8394_s7, 0 }
 0x51e   :  { %8398 = shalt.err (%p8693_p6)  }
 0x51f   :  { %8400 = vsyncmov [#allocation4 + $0x1] }
 0x522   :  { %s8401_s8 = vpop.sfrf %8400 }
 0x523   :  { %p8694_p3 = scmp.ne.s32.totalorder %s8401_s8, 0 }
 0x525   :  { %8405 = shalt.err (%p8694_p3)  }

</bundles_post_ra>
